<compile_context>
chip_gen: v6e
topology: v6e:2x2x1
jax: 0.10.0
libtpu: 0.0.40
codegen_flags: <defaults>
</compile_context>

<pallas_src>
import jax
import jax.numpy as jnp
from jax.experimental import pallas as pl
from jax.experimental.pallas import tpu as pltpu

# ----------------------------- synthetic hyperparams -------------------------
B = 2                       # set_batch_size
S = 2                       # set_seqlen (run_train asserts S == 2)
Z, Y, X = 16, 8, 16         # voxel grid resolution
Z2, Y2, X2 = Z // 2, Y // 2, X // 2
C_IN = 4                    # Feat3dNet(in_dim=4): occ (1) ++ occ*unp (3)
C_FEAT = 8                  # hyp.feat3d_dim stand-in
VOX_SIZE = 1.0              # meters per full-res voxel (cube voxels)
NCAND = 9                   # EgoNet translation candidates: dz,dx in {-1,0,1}
DZ_CANDS = jnp.array([-1, -1, -1, 0, 0, 0, 1, 1, 1], jnp.float32)
DX_CANDS = jnp.array([-1, 0, 1, -1, 0, 1, -1, 0, 1], jnp.float32)

K_RAW = 27 * C_IN                    # 108 raw im2col contraction dim (no pad)
V_FLAT = Z2 * X2 * Y2 * C_FEAT       # 2048: lane-dense flattened half-res volume


# ============================ Pallas kernel: feat3d ===========================
# Feat3dNet stand-in: 3x3x3 stride-2 3D conv (im2col matmul, bf16 MXU, f32 acc)
# + bias + ReLU + channel-wise L2 normalization (F.normalize clamp semantics).
def _feat3d_kernel(patch_ref, w_ref, b_ref, out_ref):
    acc = jnp.dot(patch_ref[...], w_ref[...],
                  preferred_element_type=jnp.float32)           # (TILE_M, C_FEAT) f32
    acc = jnp.maximum(acc + b_ref[...], 0.0)
    ss = jnp.sum(acc * acc, axis=-1, keepdims=True)
    # x / max(||x||, eps) with eps=1e-12  ==  x * rsqrt(max(||x||^2, eps^2))
    inv = jax.lax.rsqrt(jnp.maximum(ss, 1e-24))
    out_ref[...] = acc * inv


def _pick_tile_m(M):
    """grid=(2,) on v7x (one step per TensorCore), grid=(1,) on single-TC v5e/v6e."""
    try:
        kind = jax.devices()[0].device_kind.lower()
    except Exception:
        kind = ""
    if "v7" in kind and M % 2 == 0 and (M // 2) % 16 == 0:
        return M // 2
    return M


def feat3d(patches_bf16, w_bf16, bias_f32):
    M, K = patches_bf16.shape
    assert K == K_RAW
    tile_m = _pick_tile_m(M)
    assert M % tile_m == 0
    return pl.pallas_call(
        _feat3d_kernel,
        out_shape=jax.ShapeDtypeStruct((M, C_FEAT), jnp.float32),
        grid_spec=pltpu.PrefetchScalarGridSpec(
            num_scalar_prefetch=0,
            grid=(M // tile_m,),
            in_specs=[pl.BlockSpec((tile_m, K_RAW), lambda i: (i, 0)),
                      pl.BlockSpec((K_RAW, C_FEAT), lambda i: (0, 0)),
                      pl.BlockSpec((1, C_FEAT), lambda i: (0, 0))],
            out_specs=pl.BlockSpec((tile_m, C_FEAT), lambda i: (i, 0))),
        compiler_params=pltpu.CompilerParams(
            dimension_semantics=("parallel",)),
    )(patches_bf16, w_bf16, bias_f32)


# ============================ Pallas kernel: ego_corr =========================
# EgoNet stand-in: cross-correlation of feat0 with 9 displacement-shifted views of
# feat1, flattened to lane-dense (..., V=2048) rows.  Single grid step, single
# (B, NCAND) store.
def _ego_corr_kernel(f0_ref, f1s_ref, out_ref):
    f0 = f0_ref[...]                                    # (B, V) f32
    f1s = f1s_ref[...]                                  # (B, NCAND, V) f32
    out_ref[...] = jnp.sum(f1s * f0[:, None, :], axis=-1)   # (B, NCAND)


def ego_corr(f0_flat, f1_shifted):
    Bv, V = f0_flat.shape
    return pl.pallas_call(
        _ego_corr_kernel,
        out_shape=jax.ShapeDtypeStruct((Bv, NCAND), jnp.float32),
        grid_spec=pltpu.PrefetchScalarGridSpec(
            num_scalar_prefetch=0,
            grid=(1,),
            in_specs=[pl.BlockSpec((Bv, V), lambda i: (0, 0)),
                      pl.BlockSpec((Bv, NCAND, V), lambda i: (0, 0, 0))],
            out_specs=pl.BlockSpec((Bv, NCAND), lambda i: (0, 0))),
        compiler_params=pltpu.CompilerParams(dimension_semantics=("arbitrary",)),
    )(f0_flat, f1_shifted)


# ============================ JAX glue ========================================
def safe_inverse(T):
    """Inverse of rigid 4x4 transforms [R t; 0 1] -> [R^T -R^T t; 0 1]."""
    R = T[..., :3, :3]
    t = T[..., :3, 3:4]
    Rt = jnp.swapaxes(R, -1, -2)
    top = jnp.concatenate([Rt, -(Rt @ t)], axis=-1)
    bot = jnp.broadcast_to(jnp.array([0.0, 0.0, 0.0, 1.0], jnp.float32),
                           top.shape[:-2] + (1, 4))
    return jnp.concatenate([top, bot], axis=-2)


def make_rigid(theta, trans):
    """Rigid 4x4 from yaw angle (rotation about Y) and translation."""
    c, s = jnp.cos(theta), jnp.sin(theta)
    z0, o1 = jnp.zeros_like(c), jnp.ones_like(c)
    R = jnp.stack([jnp.stack([c, z0, s], -1),
                   jnp.stack([z0, o1, z0], -1),
                   jnp.stack([-s, z0, c], -1)], -2)
    top = jnp.concatenate([R, trans[..., :, None]], axis=-1)
    bot = jnp.broadcast_to(jnp.array([0.0, 0.0, 0.0, 1.0], jnp.float32),
                           top.shape[:-2] + (1, 4))
    return jnp.concatenate([top, bot], axis=-2)


def extract_patches_3d(x):
    """x: [P, Z, X, Y, Cin] -> im2col patches [P*Z2*X2*Y2, 27*Cin].

    The flattened M axis is (P, Z2, X2, Y2) so feat3d's output lands directly in the
    layout the ego correlation consumes (no wrapper transposes).
    """
    xp = jnp.pad(x, ((0, 0), (1, 1), (1, 1), (1, 1), (0, 0)))
    pieces = []
    for kz in range(3):
        for kx in range(3):
            for ky in range(3):
                pieces.append(xp[:, kz:kz + Z:2, kx:kx + X:2, ky:ky + Y:2, :])
    patches = jnp.stack(pieces, axis=-2)          # [P, Z2, X2, Y2, 27, Cin]
    return patches.reshape(-1, K_RAW)


@jax.jit
def carla_ego_forward(occ_mems, unp_mems, origin_T_cams, w3d, b3d):
    """Mirrors CarlaEgoModel.run_train's compute graph on synthetic data."""
    P = B * S  # pack_seqdim

    # --- cam0_T_cam1 = safe_inverse(origin_T_cam0) @ origin_T_cam1 (4x4 glue) ---
    origin_T_cam0 = origin_T_cams[:, 0]
    origin_T_cam1 = origin_T_cams[:, 1]
    cam0_T_cam1 = safe_inverse(origin_T_cam0) @ origin_T_cam1

    # --- feat_mems_input = cat([occ_mems, occ_mems * unp_mems], channel) --------
    # Tiny elementwise op, fused by XLA into the im2col path.  Layout is built
    # channels-last with spatial order (Z, X, Y) so the downstream M-axis order is
    # (P, Z2, X2, Y2).
    occ = jnp.transpose(occ_mems.reshape(P, 1, Z, Y, X), (0, 2, 4, 3, 1))  # [P,Z,X,Y,1]
    unp = jnp.transpose(unp_mems.reshape(P, 3, Z, Y, X), (0, 2, 4, 3, 1))  # [P,Z,X,Y,3]
    feat_in = jnp.concatenate([occ, occ * unp], axis=-1)                   # [P,Z,X,Y,4]

    # --- Feat3dNet stand-in: strided 3D conv + ReLU + L2-norm -> half-res feats --
    patches = extract_patches_3d(feat_in).astype(jnp.bfloat16)             # [M, 108]
    w_flat = w3d.reshape(K_RAW, C_FEAT).astype(jnp.bfloat16)               # [108, 8]
    feat_flat = feat3d(patches, w_flat, b3d)                               # [M, 8] f32
    feat_halfmems = feat_flat.reshape(B, S, Z2, X2, Y2, C_FEAT)            # unpack_seqdim
    feat_loss = jnp.float32(0.0)  # TODO(synk): Feat3dNet training loss undefined here

    # --- EgoNet stand-in: translation cross-correlation + soft-argmax ------------
    feat0 = feat_halfmems[:, 0]                                   # [B,Z2,X2,Y2,C]
    feat1 = feat_halfmems[:, 1]
    f0_flat = feat0.reshape(B, V_FLAT)
    # 9 (dz, dx)-shifted views of feat1 against a zero halo; ~147 KB, assembled by XLA.
    f1_pad = jnp.pad(feat1, ((0, 0), (1, 1), (1, 1), (0, 0), (0, 0)))
    views = []
    for dz in (-1, 0, 1):
        for dx in (-1, 0, 1):
            views.append(
                f1_pad[:, 1 + dz:1 + dz + Z2, 1 + dx:1 + dx + X2, :, :].reshape(B, V_FLAT))
    f1_shifted = jnp.stack(views, axis=1)                         # [B, NCAND, V]

    scores = ego_corr(f0_flat, f1_shifted)                        # [B, NCAND]
    probs = jax.nn.softmax(scores, axis=-1)
    dz_e = jnp.sum(probs * DZ_CANDS, axis=-1)
    dx_e = jnp.sum(probs * DX_CANDS, axis=-1)
    tz = dz_e * VOX_SIZE * 2.0                                    # half-res voxels -> m
    tx = dx_e * VOX_SIZE * 2.0
    t_e = jnp.stack([tx, jnp.zeros_like(tx), tz], axis=-1)        # [B, 3]
    cam0_T_cam1_e = jnp.broadcast_to(jnp.eye(4, dtype=jnp.float32), (B, 4, 4))
    cam0_T_cam1_e = cam0_T_cam1_e.at[:, :3, 3].set(t_e)
    # TODO(synk): EgoNet rotation search (num_rots/max_deg) and multi-scale pyramid
    # are not reproduced; translation-only correlation at one scale is implemented.
    ego_loss = jnp.mean(jnp.abs(t_e - cam0_T_cam1[:, :3, 3]))

    total_loss = feat_loss + ego_loss
    # TODO(synk): vox_util.apply_4x4_to_vox (3D grid resample of occ_mems[:,1]) and
    # all summ_writer visualizations are omitted.
    results = dict(cam0_T_cam1_e=cam0_T_cam1_e,
                   feat_halfmems=feat_halfmems,   # layout [B,S,Z2,X2,Y2,C]
                   ego_loss=ego_loss)
    return total_loss, results


# ============================ main ============================================
if __name__ == "__main__":
    key = jax.random.PRNGKey(0)
    k1, k2, k3, k4, k5 = jax.random.split(key, 5)

    # Synthetic stand-ins for the voxelized inputs the real model builds in
    # prepare_common_tensors (voxelize_xyz / unproject_rgb_to_mem).
    occ_mems = (jax.random.uniform(k1, (B, S, 1, Z, Y, X)) > 0.7).astype(jnp.float32)
    unp_mems = jax.random.uniform(k2, (B, S, 3, Z, Y, X), dtype=jnp.float32)

    theta = jax.random.uniform(k3, (B, S), minval=-0.1, maxval=0.1)
    trans = jax.random.uniform(k4, (B, S, 3), minval=-1.0, maxval=1.0)
    origin_T_cams = make_rigid(theta, trans)                       # [B, S, 4, 4]

    # Deterministic synthetic parameters (Feat3dNet stand-in conv), tap order (kz,kx,ky).
    w3d = (jax.random.normal(k5, (3, 3, 3, C_IN, C_FEAT)) * 0.1).astype(jnp.float32)
    b3d = jnp.zeros((1, C_FEAT), jnp.float32)

    total_loss, results = carla_ego_forward(occ_mems, unp_mems, origin_T_cams, w3d, b3d)
    jax.block_until_ready(total_loss)
    print("KERNEL_OK")
</pallas_src>

<mosaic_0001>
module attributes {stable_mosaic.version = 11 : i64} {
  func.func @_feat3d_kernel(%arg0: i32, %arg1: memref<1024x108xbf16, #tpu.memory_space<vmem>>, %arg2: memref<108x8xbf16, #tpu.memory_space<vmem>>, %arg3: memref<1x8xf32, #tpu.memory_space<vmem>>, %arg4: memref<1024x8xf32, #tpu.memory_space<vmem>>) attributes {dimension_semantics = [#tpu.dimension_semantics<parallel>], iteration_bounds = array<i64: 1>, scalar_prefetch = 0 : i64, scratch_operands = 0 : i64, tpu.core_type = #tpu.core_type<tc>, window_params = [{transform_indices = @transform_0, window_bounds = array<i64: 1024, 108>}, {pipeline_mode = #tpu.pipeline_mode<synchronous>, transform_indices = @transform_1, window_bounds = array<i64: 108, 8>}, {pipeline_mode = #tpu.pipeline_mode<synchronous>, transform_indices = @transform_2, window_bounds = array<i64: 1, 8>}, {transform_indices = @transform_3, window_bounds = array<i64: 1024, 8>}]} {
    %c0 = arith.constant 0 : index
    %c0_0 = arith.constant 0 : index
    %0 = vector.load %arg1[%c0, %c0_0] : memref<1024x108xbf16, #tpu.memory_space<vmem>>, vector<1024x108xbf16>
    %c0_1 = arith.constant 0 : index
    %c0_2 = arith.constant 0 : index
    %1 = vector.load %arg2[%c0_1, %c0_2] : memref<108x8xbf16, #tpu.memory_space<vmem>>, vector<108x8xbf16>
    %cst = arith.constant dense<0.000000e+00> : vector<1024x8xf32>
    %2 = tpu.matmul %0, %1, %cst {dimension_numbers = #tpu.dot_dimension_numbers<[1], [0], [0], [1], [0, 0, 1, 1], [], []>} : vector<1024x108xbf16>, vector<108x8xbf16>, vector<1024x8xf32> -> vector<1024x8xf32>
    %c0_3 = arith.constant 0 : index
    %c0_4 = arith.constant 0 : index
    %3 = vector.load %arg3[%c0_3, %c0_4] : memref<1x8xf32, #tpu.memory_space<vmem>>, vector<1x8xf32>
    %4 = vector.broadcast %3 : vector<1x8xf32> to vector<1024x8xf32>
    %5 = arith.addf %2, %4 : vector<1024x8xf32>
    %cst_5 = arith.constant 0.000000e+00 : f32
    %6 = vector.broadcast %cst_5 : f32 to vector<1024x8xf32>
    %7 = arith.maximumf %5, %6 : vector<1024x8xf32>
    %8 = arith.mulf %7, %7 : vector<1024x8xf32>
    %cst_6 = arith.constant dense<0.000000e+00> : vector<1024xf32>
    %9 = vector.multi_reduction <add>, %8, %cst_6 [1] : vector<1024x8xf32> to vector<1024xf32>
    %10 = vector.shape_cast %9 : vector<1024xf32> to vector<1024x1xf32>
    %cst_7 = arith.constant 1.000000e-24 : f32
    %11 = vector.broadcast %cst_7 : f32 to vector<1024x1xf32>
    %12 = arith.maximumf %10, %11 : vector<1024x1xf32>
    %13 = math.rsqrt %12 : vector<1024x1xf32>
    %14 = vector.broadcast %13 : vector<1024x1xf32> to vector<1024x8xf32>
    %15 = arith.mulf %7, %14 : vector<1024x8xf32>
    %c0_8 = arith.constant 0 : index
    %c0_9 = arith.constant 0 : index
    %16 = vector.load %arg4[%c0_8, %c0_9] : memref<1024x8xf32, #tpu.memory_space<vmem>>, vector<1024x8xf32>
    tpu.vector_store %arg4[%c0_8, %c0_9], %15 {strides = array<i32>} : memref<1024x8xf32, #tpu.memory_space<vmem>>, vector<1024x8xf32>,
    return
  }
  func.func @transform_0(%arg0: i32) -> (i32, i32) {
    %c0_i32 = arith.constant 0 : i32
    %c0_i32_0 = arith.constant 0 : i32
    return %arg0, %c0_i32 : i32, i32
  }
  func.func @transform_1(%arg0: i32) -> (i32, i32) {
    %c0_i32 = arith.constant 0 : i32
    %c0_i32_0 = arith.constant 0 : i32
    %c0_i32_1 = arith.constant 0 : i32
    return %c0_i32, %c0_i32_0 : i32, i32
  }
  func.func @transform_2(%arg0: i32) -> (i32, i32) {
    %c0_i32 = arith.constant 0 : i32
    %c0_i32_0 = arith.constant 0 : i32
    %c0_i32_1 = arith.constant 0 : i32
    return %c0_i32, %c0_i32_0 : i32, i32
  }
  func.func @transform_3(%arg0: i32) -> (i32, i32) {
    %c0_i32 = arith.constant 0 : i32
    %c0_i32_0 = arith.constant 0 : i32
    return %arg0, %c0_i32 : i32, i32
  }
}

module attributes {stable_mosaic.version = 11 : i64} {
  func.func @_ego_corr_kernel(%arg0: i32, %arg1: memref<2x2048xf32, #tpu.memory_space<vmem>>, %arg2: memref<2x9x2048xf32, #tpu.memory_space<vmem>>, %arg3: memref<2x9xf32, #tpu.memory_space<vmem>>) attributes {dimension_semantics = [#tpu.dimension_semantics<arbitrary>], iteration_bounds = array<i64: 1>, scalar_prefetch = 0 : i64, scratch_operands = 0 : i64, tpu.core_type = #tpu.core_type<tc>, window_params = [{pipeline_mode = #tpu.pipeline_mode<synchronous>, transform_indices = @transform_0, window_bounds = array<i64: 2, 2048>}, {pipeline_mode = #tpu.pipeline_mode<synchronous>, transform_indices = @transform_1, window_bounds = array<i64: 2, 9, 2048>}, {pipeline_mode = #tpu.pipeline_mode<synchronous>, transform_indices = @transform_2, window_bounds = array<i64: 2, 9>}]} {
    %c0 = arith.constant 0 : index
    %c0_0 = arith.constant 0 : index
    %0 = vector.load %arg1[%c0, %c0_0] : memref<2x2048xf32, #tpu.memory_space<vmem>>, vector<2x2048xf32>
    %c0_1 = arith.constant 0 : index
    %c0_2 = arith.constant 0 : index
    %c0_3 = arith.constant 0 : index
    %1 = vector.load %arg2[%c0_1, %c0_2, %c0_3] : memref<2x9x2048xf32, #tpu.memory_space<vmem>>, vector<2x9x2048xf32>
    %2 = vector.shape_cast %0 : vector<2x2048xf32> to vector<2x1x2048xf32>
    %3 = vector.broadcast %2 : vector<2x1x2048xf32> to vector<2x9x2048xf32>
    %4 = arith.mulf %1, %3 : vector<2x9x2048xf32>
    %cst = arith.constant dense<0.000000e+00> : vector<2x9xf32>
    %5 = vector.multi_reduction <add>, %4, %cst [2] : vector<2x9x2048xf32> to vector<2x9xf32>
    %c0_4 = arith.constant 0 : index
    %c0_5 = arith.constant 0 : index
    %6 = vector.load %arg3[%c0_4, %c0_5] : memref<2x9xf32, #tpu.memory_space<vmem>>, vector<2x9xf32>
    tpu.vector_store %arg3[%c0_4, %c0_5], %5 {strides = array<i32>} : memref<2x9xf32, #tpu.memory_space<vmem>>, vector<2x9xf32>,
    return
  }
  func.func @transform_0(%arg0: i32) -> (i32, i32) {
    %c0_i32 = arith.constant 0 : i32
    %c0_i32_0 = arith.constant 0 : i32
    %c0_i32_1 = arith.constant 0 : i32
    return %c0_i32, %c0_i32_0 : i32, i32
  }
  func.func @transform_1(%arg0: i32) -> (i32, i32, i32) {
    %c0_i32 = arith.constant 0 : i32
    %c0_i32_0 = arith.constant 0 : i32
    %c0_i32_1 = arith.constant 0 : i32
    %c0_i32_2 = arith.constant 0 : i32
    return %c0_i32, %c0_i32_0, %c0_i32_1 : i32, i32, i32
  }
  func.func @transform_2(%arg0: i32) -> (i32, i32) {
    %c0_i32 = arith.constant 0 : i32
    %c0_i32_0 = arith.constant 0 : i32
    %c0_i32_1 = arith.constant 0 : i32
    return %c0_i32, %c0_i32_0 : i32, i32
  }
}

</mosaic_0001>

<bundles_post_ra>
// kernel: carla_ego_forward.2
= control target key start
LH: loop header
LB: loop body
LE: loop exit
PB: predicated region body
PF: predicated region fallthrough
CT: control target
= control target key end

     0   :  { %vm718_vm0 = vcmask 1045504   ;;  %vm525_vm1 = vcmask 883712   ;;  %vm1523_vm2 = vcmask 64512   ;;  %s4841_s1 = inlined_call_operand.vmem [shape: bf16[108,8], index: 1, kind: input, shape index: {}]   ;;  %s4842_s0 = inlined_call_operand.vmem [shape: bf16[1024,108], index: 0, kind: input, shape index: {}]   ;;  %s4843_s2 = inlined_call_operand.vmem [shape: f32[1,8], index: 2, kind: input, shape index: {}]   ;;  %s4844_s3 = inlined_call_operand.vmem [shape: f32[1024,8], index: 3, kind: output, shape index: {}]  }
   0x1   :  { %v2789_v0 = vld [vmem:[%s4841_s1 + $0x30] sm:$0x3f]   ;;  %v2790_v1 = vld [vmem:[%s4841_s1 + $0x28] sm:$0xff]   ;;  %v2791_v3 = vld [vmem:[%s4841_s1 + $0x20] sm:$0xff]  }
   0x2   :  { %2787 = vmatprep.subr.msk.bf16.mxu0 %vm718_vm0, %v2789_v0  ;;  %2788 = vmatprep.subr.msk.bf16.mxu1 %vm718_vm0, %v2789_v0  ;;  %v720_v2 = vsel %vm718_vm0, %v2789_v0, 0  ;;  %v2792_v4 = vld [vmem:[%s4841_s1 + $0x18] sm:$0xff]   ;;  %v2796_v5 = vld [vmem:[%s4842_s0] sm:$0xff]   ;;  %v2793_v7 = vld [vmem:[%s4841_s1 + $0x10] sm:$0xff]  }
   0x3   :  { %2632 = vmatpush3.bf16.msra.mxu0 %v720_v2  ;;  %2780 = vmatpush3.bf16.msra.mxu1 %v720_v2  ;;  %v2797_v6 = vld [vmem:[%s4842_s0 + $0x100] sm:$0xff]   ;;  %v2794_v8 = vld [vmem:[%s4841_s1 + $0x8] sm:$0xff]   ;;  %v2800_v12 = vld [vmem:[%s4842_s0 + $0x10] sm:$0xff]  }
   0x4   :  { %2633 = vmatprep.subr.bf16.mxu0 %v2790_v1  ;;  %2774 = vmatprep.subr.bf16.mxu1 %v2790_v1  ;;  %v2795_v9 = vld [vmem:[%s4841_s1] sm:$0xff]   ;;  %v2798_v10 = vld [vmem:[%s4842_s0 + $0x8] sm:$0xff]   ;;  %v2802_v13 = vld [vmem:[%s4842_s0 + $0x110] sm:$0xff]  }
   0x5   :  { %2645 = vmatprep.mubr.msk.bf16.mxu0 %vm525_vm1, %v2796_v5  ;;  %2709 = vmatprep.mubr.msk.bf16.mxu1 %vm525_vm1, %v2797_v6  ;;  %v2799_v11 = vld [vmem:[%s4842_s0 + $0x108] sm:$0xff]   ;;  %v2801_v14 = vld [vmem:[%s4842_s0 + $0x18] sm:$0xff]   ;;  %v2804_v16 = vld [vmem:[%s4842_s0 + $0x20] sm:$0xff]  }
   0x6   :  { %v2803_v15 = vld [vmem:[%s4842_s0 + $0x118] sm:$0xff]   ;;  %v2806_v17 = vld [vmem:[%s4842_s0 + $0x120] sm:$0xff]   ;;  %v2805_v18 = vld [vmem:[%s4842_s0 + $0x28] sm:$0xff]  }
   0x7   :  { %2634 = vmatpush3.bf16.msra.mxu0 %v2790_v1  ;;  %2781 = vmatpush3.bf16.msra.mxu1 %v2790_v1  ;;  %v2807_v19 = vld [vmem:[%s4842_s0 + $0x128] sm:$0xff]   ;;  %v2808_v20 = vld [vmem:[%s4842_s0 + $0x30] sm:$0xff]   ;;  %v2809_v22 = vld [vmem:[%s4842_s0 + $0x38] sm:$0xff]  }
   0x8   :  { %2635 = vmatprep.subr.bf16.mxu0 %v2791_v3  ;;  %2775 = vmatprep.subr.bf16.mxu1 %v2791_v3  ;;  %v2810_v21 = vld [vmem:[%s4842_s0 + $0x130] sm:$0xff]   ;;  %v2811_v23 = vld [vmem:[%s4842_s0 + $0x138] sm:$0xff]   ;;  %v2812_v24 = vld [vmem:[%s4842_s0 + $0x40] sm:$0xff]  }
   0x9   :  { %v2814_v25 = vld [vmem:[%s4842_s0 + $0x140] sm:$0xff]   ;;  %v2813_v26 = vld [vmem:[%s4842_s0 + $0x48] sm:$0xff]   ;;  %v2816_v28 = vld [vmem:[%s4842_s0 + $0x50] sm:$0xff]  }
   0xa   :  { %v2815_v27 = vld [vmem:[%s4842_s0 + $0x148] sm:$0xff]   ;;  %v2818_v29 = vld [vmem:[%s4842_s0 + $0x150] sm:$0xff]   ;;  %v2817_v30 = vld [vmem:[%s4842_s0 + $0x58] sm:$0xff]  }
   0xb   :  { %2636 = vmatpush3.bf16.msra.mxu0 %v2791_v3  ;;  %2782 = vmatpush3.bf16.msra.mxu1 %v2791_v3  ;;  %v2819_v31 = vld [vmem:[%s4842_s0 + $0x158] sm:$0xff]   ;;  %v2820_v32 = vld [vmem:[%s4842_s0 + $0x60] sm:$0xff]   ;;  %v2821_v34 = vld [vmem:[%s4842_s0 + $0x68] sm:$0xff]  }
   0xc   :  { %2637 = vmatprep.subr.bf16.mxu0 %v2792_v4  ;;  %2776 = vmatprep.subr.bf16.mxu1 %v2792_v4  ;;  %v2822_v33 = vld [vmem:[%s4842_s0 + $0x160] sm:$0xff]   ;;  %v2823_v35 = vld [vmem:[%s4842_s0 + $0x168] sm:$0xff]   ;;  %v2824_v36 = vld [vmem:[%s4842_s0 + $0x70] sm:$0xff]  }
   0xd   :  { %v2826_v37 = vld [vmem:[%s4842_s0 + $0x170] sm:$0xff]   ;;  %v2825_v38 = vld [vmem:[%s4842_s0 + $0x78] sm:$0xff]   ;;  %v2828_v40 = vld [vmem:[%s4842_s0 + $0x80] sm:$0xff]  }
   0xe   :  { %v2827_v39 = vld [vmem:[%s4842_s0 + $0x178] sm:$0xff]   ;;  %v2830_v41 = vld [vmem:[%s4842_s0 + $0x180] sm:$0xff]   ;;  %v2829_v42 = vld [vmem:[%s4842_s0 + $0x88] sm:$0xff]  }
   0xf   :  { %2638 = vmatpush3.bf16.msra.mxu0 %v2792_v4  ;;  %2783 = vmatpush3.bf16.msra.mxu1 %v2792_v4  ;;  %v2831_v43 = vld [vmem:[%s4842_s0 + $0x188] sm:$0xff]   ;;  %v2832_v44 = vld [vmem:[%s4842_s0 + $0x90] sm:$0xff]   ;;  %v2833_v46 = vld [vmem:[%s4842_s0 + $0x98] sm:$0xff]  }
  0x10   :  { %2639 = vmatprep.subr.bf16.mxu0 %v2793_v7  ;;  %2777 = vmatprep.subr.bf16.mxu1 %v2793_v7  ;;  %v2834_v45 = vld [vmem:[%s4842_s0 + $0x190] sm:$0xff]   ;;  %v2835_v47 = vld [vmem:[%s4842_s0 + $0x198] sm:$0xff]   ;;  %v2836_v48 = vld [vmem:[%s4842_s0 + $0xa0] sm:$0xff]  }
  0x11   :  { %v2838_v49 = vld [vmem:[%s4842_s0 + $0x1a0] sm:$0xff]   ;;  %v2837_v50 = vld [vmem:[%s4842_s0 + $0xa8] sm:$0xff]   ;;  %v2840_v52 = vld [vmem:[%s4842_s0 + $0xb0] sm:$0xff]  }
  0x12   :  { %v2839_v51 = vld [vmem:[%s4842_s0 + $0x1a8] sm:$0xff]   ;;  %v2842_v53 = vld [vmem:[%s4842_s0 + $0x1b0] sm:$0xff]   ;;  %v2841_v54 = vld [vmem:[%s4842_s0 + $0xb8] sm:$0xff]  }
  0x13   :  { %2640 = vmatpush3.bf16.msra.mxu0 %v2793_v7  ;;  %2784 = vmatpush3.bf16.msra.mxu1 %v2793_v7  ;;  %v2843_v55 = vld [vmem:[%s4842_s0 + $0x1b8] sm:$0xff]   ;;  %v2844_v56 = vld [vmem:[%s4842_s0 + $0xc0] sm:$0xff]   ;;  %v2845_v58 = vld [vmem:[%s4842_s0 + $0xc8] sm:$0xff]  }
  0x14   :  { %2641 = vmatprep.subr.bf16.mxu0 %v2794_v8  ;;  %2778 = vmatprep.subr.bf16.mxu1 %v2794_v8  ;;  %v2846_v57 = vld [vmem:[%s4842_s0 + $0x1c0] sm:$0xff]   ;;  %v2847_v59 = vld [vmem:[%s4842_s0 + $0x1c8] sm:$0xff]   ;;  %v2848_v60 = vld [vmem:[%s4842_s0 + $0xd0] sm:$0xff]  }
  0x15   :  { %v2850_v61 = vld [vmem:[%s4842_s0 + $0x1d0] sm:$0xff]   ;;  %v2849_v62 = vld [vmem:[%s4842_s0 + $0xd8] sm:$0xff]   ;;  %v2852_v0 = vld [vmem:[%s4842_s0 + $0xe0] sm:$0xff]  }
  0x16   :  { %v2851_v63 = vld [vmem:[%s4842_s0 + $0x1d8] sm:$0xff]   ;;  %v2854_v1 = vld [vmem:[%s4842_s0 + $0x1e0] sm:$0xff]   ;;  %v2853_v2 = vld [vmem:[%s4842_s0 + $0xe8] sm:$0xff]  }
  0x17   :  { %2642 = vmatpush3.bf16.msra.mxu0 %v2794_v8  ;;  %2785 = vmatpush3.bf16.msra.mxu1 %v2794_v8  ;;  %v2855_v3 = vld [vmem:[%s4842_s0 + $0x1e8] sm:$0xff]   ;;  %v2856_v4 = vld [vmem:[%s4842_s0 + $0xf0] sm:$0xff]   ;;  %v2857_v6 = vld [vmem:[%s4842_s0 + $0xf8] sm:$0xff]  }
  0x18   :  { %2643 = vmatprep.subr.bf16.mxu0 %v2795_v9  ;;  %2779 = vmatprep.subr.bf16.mxu1 %v2795_v9  ;;  %v2858_v5 = vld [vmem:[%s4842_s0 + $0x1f0] sm:$0xff]   ;;  %v2859_v7 = vld [vmem:[%s4842_s0 + $0x1f8] sm:$0xff]   ;;  %v3417_v8 = vld [vmem:[%s4843_s2] ss:$0 sm:$0xff] }
  0x1b   :  { %2644 = vmatpush3.bf16.msra.mxu0 %v2795_v9  ;;  %2786 = vmatpush3.bf16.msra.mxu1 %v2795_v9 }
  0x1e   :  { %2646 = vmatmul.mubr.msk.bf16.vlgmr.msra.gmra.mxu0 %vm525_vm1, %v2798_v10  ;;  %2710 = vmatmul.mubr.msk.bf16.vlgmr.msra.gmra.mxu1 %vm525_vm1, %v2799_v11 }
  0x1f   :  { %2649 = vmatprep.mubr.msk.bf16.mxu0 %vm525_vm1, %v2800_v12  ;;  %2713 = vmatprep.mubr.msk.bf16.mxu1 %vm525_vm1, %v2802_v13 }
  0x26   :  { %2650 = vmatmul.mubr.msk.bf16.gmra.mxu0 %vm525_vm1, %v2801_v14  ;;  %2714 = vmatmul.mubr.msk.bf16.gmra.mxu1 %vm525_vm1, %v2803_v15 }
  0x27   :  { %2653 = vmatprep.mubr.msk.bf16.mxu0 %vm525_vm1, %v2804_v16  ;;  %2717 = vmatprep.mubr.msk.bf16.mxu1 %vm525_vm1, %v2806_v17 }
  0x2e   :  { %2654 = vmatmul.mubr.msk.bf16.gmra.mxu0 %vm525_vm1, %v2805_v18  ;;  %2718 = vmatmul.mubr.msk.bf16.gmra.mxu1 %vm525_vm1, %v2807_v19 }
  0x2f   :  { %2657 = vmatprep.mubr.msk.bf16.mxu0 %vm525_vm1, %v2808_v20  ;;  %2721 = vmatprep.mubr.msk.bf16.mxu1 %vm525_vm1, %v2810_v21 }
  0x36   :  { %2658 = vmatmul.mubr.msk.bf16.gmra.mxu0 %vm525_vm1, %v2809_v22  ;;  %2722 = vmatmul.mubr.msk.bf16.gmra.mxu1 %vm525_vm1, %v2811_v23 }
  0x37   :  { %2661 = vmatprep.mubr.msk.bf16.mxu0 %vm525_vm1, %v2812_v24  ;;  %2725 = vmatprep.mubr.msk.bf16.mxu1 %vm525_vm1, %v2814_v25 }
  0x3e   :  { %2662 = vmatmul.mubr.msk.bf16.gmra.mxu0 %vm525_vm1, %v2813_v26  ;;  %2726 = vmatmul.mubr.msk.bf16.gmra.mxu1 %vm525_vm1, %v2815_v27 }
  0x3f   :  { %2665 = vmatprep.mubr.msk.bf16.mxu0 %vm525_vm1, %v2816_v28  ;;  %2729 = vmatprep.mubr.msk.bf16.mxu1 %vm525_vm1, %v2818_v29 }
  0x46   :  { %2666 = vmatmul.mubr.msk.bf16.gmra.mxu0 %vm525_vm1, %v2817_v30  ;;  %2730 = vmatmul.mubr.msk.bf16.gmra.mxu1 %vm525_vm1, %v2819_v31 }
  0x47   :  { %2669 = vmatprep.mubr.msk.bf16.mxu0 %vm525_vm1, %v2820_v32  ;;  %2733 = vmatprep.mubr.msk.bf16.mxu1 %vm525_vm1, %v2822_v33 }
  0x4e   :  { %2670 = vmatmul.mubr.msk.bf16.gmra.mxu0 %vm525_vm1, %v2821_v34  ;;  %2734 = vmatmul.mubr.msk.bf16.gmra.mxu1 %vm525_vm1, %v2823_v35 }
  0x4f   :  { %2673 = vmatprep.mubr.msk.bf16.mxu0 %vm525_vm1, %v2824_v36  ;;  %2737 = vmatprep.mubr.msk.bf16.mxu1 %vm525_vm1, %v2826_v37 }
  0x56   :  { %2674 = vmatmul.mubr.msk.bf16.gmra.mxu0 %vm525_vm1, %v2825_v38  ;;  %2738 = vmatmul.mubr.msk.bf16.gmra.mxu1 %vm525_vm1, %v2827_v39 }
  0x57   :  { %2677 = vmatprep.mubr.msk.bf16.mxu0 %vm525_vm1, %v2828_v40  ;;  %2741 = vmatprep.mubr.msk.bf16.mxu1 %vm525_vm1, %v2830_v41 }
  0x5e   :  { %2678 = vmatmul.mubr.msk.bf16.gmra.mxu0 %vm525_vm1, %v2829_v42  ;;  %2742 = vmatmul.mubr.msk.bf16.gmra.mxu1 %vm525_vm1, %v2831_v43 }
  0x5f   :  { %2681 = vmatprep.mubr.msk.bf16.mxu0 %vm525_vm1, %v2832_v44  ;;  %2745 = vmatprep.mubr.msk.bf16.mxu1 %vm525_vm1, %v2834_v45 }
  0x66   :  { %2682 = vmatmul.mubr.msk.bf16.gmra.mxu0 %vm525_vm1, %v2833_v46  ;;  %2746 = vmatmul.mubr.msk.bf16.gmra.mxu1 %vm525_vm1, %v2835_v47 }
  0x67   :  { %2685 = vmatprep.mubr.msk.bf16.mxu0 %vm525_vm1, %v2836_v48  ;;  %2749 = vmatprep.mubr.msk.bf16.mxu1 %vm525_vm1, %v2838_v49 }
  0x6e   :  { %2686 = vmatmul.mubr.msk.bf16.gmra.mxu0 %vm525_vm1, %v2837_v50  ;;  %2750 = vmatmul.mubr.msk.bf16.gmra.mxu1 %vm525_vm1, %v2839_v51 }
  0x6f   :  { %2689 = vmatprep.mubr.msk.bf16.mxu0 %vm525_vm1, %v2840_v52  ;;  %2753 = vmatprep.mubr.msk.bf16.mxu1 %vm525_vm1, %v2842_v53 }
  0x76   :  { %2690 = vmatmul.mubr.msk.bf16.gmra.mxu0 %vm525_vm1, %v2841_v54  ;;  %2754 = vmatmul.mubr.msk.bf16.gmra.mxu1 %vm525_vm1, %v2843_v55 }
  0x77   :  { %2693 = vmatprep.mubr.msk.bf16.mxu0 %vm525_vm1, %v2844_v56  ;;  %2757 = vmatprep.mubr.msk.bf16.mxu1 %vm525_vm1, %v2846_v57 }
  0x7e   :  { %2694 = vmatmul.mubr.msk.bf16.gmra.mxu0 %vm525_vm1, %v2845_v58  ;;  %2758 = vmatmul.mubr.msk.bf16.gmra.mxu1 %vm525_vm1, %v2847_v59 }
  0x7f   :  { %2697 = vmatprep.mubr.msk.bf16.mxu0 %vm525_vm1, %v2848_v60  ;;  %2761 = vmatprep.mubr.msk.bf16.mxu1 %vm525_vm1, %v2850_v61 }
  0x86   :  { %2698 = vmatmul.mubr.msk.bf16.gmra.mxu0 %vm525_vm1, %v2849_v62  ;;  %2762 = vmatmul.mubr.msk.bf16.gmra.mxu1 %vm525_vm1, %v2851_v63 }
  0x87   :  { %2701 = vmatprep.mubr.msk.bf16.mxu0 %vm525_vm1, %v2852_v0  ;;  %2765 = vmatprep.mubr.msk.bf16.mxu1 %vm525_vm1, %v2854_v1 }
  0x8e   :  { %2702 = vmatmul.mubr.msk.bf16.gmra.mxu0 %vm525_vm1, %v2853_v2  ;;  %2766 = vmatmul.mubr.msk.bf16.gmra.mxu1 %vm525_vm1, %v2855_v3 }
  0x8f   :  { %2705 = vmatprep.mubr.msk.bf16.mxu0 %vm525_vm1, %v2856_v4  ;;  %2769 = vmatprep.mubr.msk.bf16.mxu1 %vm525_vm1, %v2858_v5 }
  0x96   :  { %2706 = vmatmul.mubr.msk.bf16.gmra.mxu0 %vm525_vm1, %v2857_v6  ;;  %2770 = vmatmul.mubr.msk.bf16.gmra.mxu1 %vm525_vm1, %v2859_v7 }
  0xde   :  { %v2647_v9 = vpop.f32.mrf.mxu0  ;;  %v2711_v10 = vpop.f32.mrf.mxu1 }
  0xdf   :  { %v765_v11 = vadd.f32 %v2647_v9, %v3417_v8  ;;  %v1021_v12 = vadd.f32 %v2711_v10, %v3417_v8 }
  0xe0   :  { %v756_v13 = vpop.f32.mrf.mxu0  ;;  %v1012_v14 = vpop.f32.mrf.mxu1 }
  0xe1   :  { %v3421_v15 = vmax.f32 %v765_v11, 0.0  ;;  %v3423_v16 = vmax.f32 %v1021_v12, 0.0  ;;  %v757_v17 = vadd.f32 %v3417_v8, %v756_v13  ;;  %v1013_v18 = vadd.f32 %v3417_v8, %v1012_v14 }
  0xe2   :  { %v2648_v19 = vpop.f32.mrf.mxu0  ;;  %v2712_v20 = vpop.f32.mrf.mxu1 }
  0xe3   :  { %v3427_v21 = vmax.f32 %v757_v17, 0.0  ;;  %v768_v22 = vadd.f32 %v2648_v19, %v3417_v8  ;;  %v1024_v23 = vadd.f32 %v2712_v20, %v3417_v8  ;;  %v1461_v26 = vmul.f32 %v3423_v16, %v3423_v16 }
  0xe4   :  { %v759_v24 = vpop.f32.mrf.mxu0  ;;  %v1015_v25 = vpop.f32.mrf.mxu1  ;;  %v1397_v27 = vmul.f32 %v3421_v15, %v3421_v15  ;;  %v3435_v28 = vmax.f32 %v1013_v18, 0.0 }
  0xe5   :  { %v3437_v29 = vmax.f32 %v768_v22, 0.0  ;;  %v760_v30 = vadd.f32 %v3417_v8, %v759_v24  ;;  %v1016_v31 = vadd.f32 %v3417_v8, %v1015_v25  ;;  %v3441_v32 = vmax.f32 %v1024_v23, 0.0 }
  0xe6   :  { %v1722_v33 = vsel %vm1523_vm2, %v1461_v26, 0.0  ;;  %v1530_v34 = vsel %vm1523_vm2, %v1397_v27, 0.0  ;;  %v2651_v35 = vpop.f32.mrf.mxu0  ;;  %v2715_v36 = vpop.f32.mrf.mxu1  ;;  %v1395_v37 = vmul.f32 %v3427_v21, %v3427_v21  ;;  %v1459_v43 = vmul.f32 %v3435_v28, %v3435_v28 }
  0xe7   :  { %1723 = vadd.xlane.f32.xlu0 %v1722_v33  ;;  %1531 = vadd.xlane.f32.xlu1 %v1530_v34  ;;  %v1398_v39 = vmul.f32 %v3437_v29, %v3437_v29  ;;  %v3449_v40 = vmax.f32 %v760_v30, 0.0  ;;  %v3451_v41 = vmax.f32 %v1016_v31, 0.0  ;;  %v781_v44 = vadd.f32 %v2651_v35, %v3417_v8 }
  0xe8   :  { %v772_v38 = vpop.f32.mrf.mxu0  ;;  %v1028_v42 = vpop.f32.mrf.mxu1  ;;  %v1524_v47 = vsel %vm1523_vm2, %v1395_v37, 0.0  ;;  %v1462_v48 = vmul.f32 %v3441_v32, %v3441_v32  ;;  %v1037_v50 = vadd.f32 %v2715_v36, %v3417_v8  ;;  %v1716_v52 = vsel %vm1523_vm2, %v1459_v43, 0.0 }
  0xe9   :  { %v1533_v45 = vsel %vm1523_vm2, %v1398_v39, 0.0  ;;  %v1460_v53 = vmul.f32 %v3451_v41, %v3451_v41  ;;  %v1396_v54 = vmul.f32 %v3449_v40, %v3449_v40  ;;  %v3467_v55 = vmax.f32 %v781_v44, 0.0 }
  0xea   :  { %v2652_v46 = vpop.f32.mrf.mxu0  ;;  %v2716_v51 = vpop.f32.mrf.mxu1  ;;  %v1725_v58 = vsel %vm1523_vm2, %v1462_v48, 0.0  ;;  %v773_v60 = vadd.f32 %v3417_v8, %v772_v38  ;;  %v3474_v61 = vmax.f32 %v1037_v50, 0.0  ;;  %v1029_v7 = vadd.f32 %v3417_v8, %v1028_v42 }
  0xeb   :  { %1534 = vadd.xlane.f32.xlu1 %v1533_v45  ;;  %v784_v49 = vadd.f32 %v2652_v46, %v3417_v8  ;;  %1525 = vadd.xlane.f32.xlu0 %v1524_v47  ;;  %v1040_v57 = vadd.f32 %v2716_v51, %v3417_v8  ;;  %v1719_v62 = vsel %vm1523_vm2, %v1460_v53, 0.0  ;;  %v1527_v63 = vsel %vm1523_vm2, %v1396_v54, 0.0 }
  0xec   :  { %v775_v59 = vpop.f32.mrf.mxu0  ;;  %v1031_v3 = vpop.f32.mrf.mxu1  ;;  %v1401_v5 = vmul.f32 %v3467_v55, %v3467_v55  ;;  %v3485_v6 = vmax.f32 %v773_v60, 0.0  ;;  %v1465_v12 = vmul.f32 %v3474_v61, %v3474_v61  ;;  %v3497_v19 = vmax.f32 %v1029_v7, 0.0 }
  0xed   :  { %v3469_v56 = vmax.f32 %v784_v49, 0.0  ;;  %v776_v1 = vadd.f32 %v3417_v8, %v775_v59  ;;  %v3479_v2 = vmax.f32 %v1040_v57, 0.0  ;;  %v1032_v9 = vadd.f32 %v3417_v8, %v1031_v3 }
  0xee   :  { %v2655_v0 = vpop.f32.mrf.mxu0  ;;  %v2719_v11 = vpop.f32.mrf.mxu1  ;;  %v1542_v17 = vsel %vm1523_vm2, %v1401_v5, 0.0  ;;  %v1734_v24 = vsel %vm1523_vm2, %v1465_v12, 0.0  ;;  %v1399_v25 = vmul.f32 %v3485_v6, %v3485_v6  ;;  %v1463_v37 = vmul.f32 %v3497_v19, %v3497_v19 }
  0xef   :  { %1726 = vadd.xlane.f32.xlu1 %v1725_v58  ;;  %1717 = vadd.xlane.f32.xlu0 %v1716_v52  ;;  %v1402_v4 = vmul.f32 %v3469_v56, %v3469_v56  ;;  %v3491_v13 = vmax.f32 %v776_v1, 0.0  ;;  %v1466_v18 = vmul.f32 %v3479_v2, %v3479_v2  ;;  %v3499_v20 = vmax.f32 %v1032_v9, 0.0 }
  0xf0   :  { %v788_v10 = vpop.f32.mrf.mxu0  ;;  %v1044_v23 = vpop.f32.mrf.mxu1  ;;  %v797_v26 = vadd.f32 %v2655_v0, %v3417_v8  ;;  %v1053_v33 = vadd.f32 %v2719_v11, %v3417_v8  ;;  %v1536_v35 = vsel %vm1523_vm2, %v1399_v25, 0.0  ;;  %v1728_v48 = vsel %vm1523_vm2, %v1463_v37, 0.0 }
  0xf1   :  { %v1545_v14 = vsel %vm1523_vm2, %v1402_v4, 0.0  ;;  %v1737_v30 = vsel %vm1523_vm2, %v1466_v18, 0.0  ;;  %v1400_v31 = vmul.f32 %v3491_v13, %v3491_v13  ;;  %v1464_v36 = vmul.f32 %v3499_v20, %v3499_v20 }
  0xf2   :  { %v2656_v22 = vpop.f32.mrf.mxu0  ;;  %v2720_v34 = vpop.f32.mrf.mxu1  ;;  %v3515_v38 = vmax.f32 %v797_v26, 0.0  ;;  %v789_v45 = vadd.f32 %v3417_v8, %v788_v10  ;;  %v3522_v46 = vmax.f32 %v1053_v33, 0.0  ;;  %v1045_v58 = vadd.f32 %v3417_v8, %v1044_v23 }
  0xf3   :  { %1720 = vadd.xlane.f32.xlu1 %v1719_v62  ;;  %1528 = vadd.xlane.f32.xlu0 %v1527_v63  ;;  %v800_v27 = vadd.f32 %v2656_v22, %v3417_v8  ;;  %v1056_v42 = vadd.f32 %v2720_v34, %v3417_v8  ;;  %v1539_v43 = vsel %vm1523_vm2, %v1400_v31, 0.0  ;;  %v1731_v47 = vsel %vm1523_vm2, %v1464_v36, 0.0 }
  0xf4   :  { %v791_v44 = vpop.f32.mrf.mxu0  ;;  %v1047_v52 = vpop.f32.mrf.mxu1  ;;  %v1405_v54 = vmul.f32 %v3515_v38, %v3515_v38  ;;  %v3533_v57 = vmax.f32 %v789_v45, 0.0  ;;  %v1469_v63 = vmul.f32 %v3522_v46, %v3522_v46  ;;  %v3545_v5 = vmax.f32 %v1045_v58, 0.0 }
  0xf5   :  { %v3517_v39 = vmax.f32 %v800_v27, 0.0  ;;  %v792_v50 = vadd.f32 %v3417_v8, %v791_v44  ;;  %v3527_v51 = vmax.f32 %v1056_v42, 0.0  ;;  %v1048_v59 = vadd.f32 %v3417_v8, %v1047_v52 }
  0xf6   :  { %v2659_v49 = vpop.f32.mrf.mxu0  ;;  %v2723_v62 = vpop.f32.mrf.mxu1  ;;  %v1554_v3 = vsel %vm1523_vm2, %v1405_v54, 0.0  ;;  %v1746_v11 = vsel %vm1523_vm2, %v1469_v63, 0.0  ;;  %v1403_v12 = vmul.f32 %v3533_v57, %v3533_v57  ;;  %v1467_v27 = vmul.f32 %v3545_v5, %v3545_v5 }
  0xf7   :  { %1546 = vadd.xlane.f32.xlu1 %v1545_v14  ;;  %1543 = vadd.xlane.f32.xlu0 %v1542_v17  ;;  %v1406_v53 = vmul.f32 %v3517_v39, %v3517_v39  ;;  %v3539_v0 = vmax.f32 %v792_v50, 0.0  ;;  %v1470_v4 = vmul.f32 %v3527_v51, %v3527_v51  ;;  %v3547_v7 = vmax.f32 %v1048_v59, 0.0 }
  0xf8   :  { %v804_v60 = vpop.f32.mrf.mxu0  ;;  %v1060_v10 = vpop.f32.mrf.mxu1  ;;  %v813_v14 = vadd.f32 %v2659_v49, %v3417_v8  ;;  %v1069_v23 = vadd.f32 %v2723_v62, %v3417_v8  ;;  %v1548_v25 = vsel %vm1523_vm2, %v1403_v12, 0.0 }
  0xf9   :  { %v1557_v1 = vsel %vm1523_vm2, %v1406_v53, 0.0  ;;  %v1749_v18 = vsel %vm1523_vm2, %v1470_v4, 0.0  ;;  %v1404_v22 = vmul.f32 %v3539_v0, %v3539_v0  ;;  %v1468_v26 = vmul.f32 %v3547_v7, %v3547_v7 }
  0xfa   :  { %v2660_v9 = vpop.f32.mrf.mxu0  ;;  %v805_v36 = vadd.f32 %v3417_v8, %v804_v60  ;;  %v3570_v37 = vmax.f32 %v1069_v23, 0.0  ;;  %v1061_v53 = vadd.f32 %v3417_v8, %v1060_v10 }
  0xfb   :  { %1738 = vadd.xlane.f32.xlu1 %v1737_v30  ;;  %1735 = vadd.xlane.f32.xlu0 %v1734_v24  ;;  %v816_v17 = vadd.f32 %v2660_v9, %v3417_v8  ;;  %v2724_v24 = vpop.f32.mrf.mxu1  ;;  %v3563_v30 = vmax.f32 %v813_v14, 0.0  ;;  %v1551_v34 = vsel %vm1523_vm2, %v1404_v22, 0.0  ;;  %v1743_v42 = vsel %vm1523_vm2, %v1468_v26, 0.0 }
  0xfc   :  { %v1072_v33 = vadd.f32 %v2724_v24, %v3417_v8  ;;  %v3581_v52 = vmax.f32 %v805_v36, 0.0  ;;  %v1473_v60 = vmul.f32 %v3570_v37, %v3570_v37  ;;  %v3593_v4 = vmax.f32 %v1061_v53, 0.0 }
  0xfd   :  { %v3565_v31 = vmax.f32 %v816_v17, 0.0  ;;  %v1409_v50 = vmul.f32 %v3563_v30, %v3563_v30 }
  0xfe   :  { %v1758_v12 = vsel %vm1523_vm2, %v1473_v60, 0.0  ;;  %v1407_v14 = vmul.f32 %v3581_v52, %v3581_v52 }
  0xff   :  { %1540 = vadd.xlane.f32.xlu1 %v1539_v43  ;;  %1537 = vadd.xlane.f32.xlu0 %v1536_v35  ;;  %v807_v35 = vpop.f32.mrf.mxu0  ;;  %v1740_v43 = vsel %vm1523_vm2, %v1467_v27, 0.0  ;;  %v1410_v49 = vmul.f32 %v3565_v31, %v3565_v31 }
 0x100   :  { %v808_v45 = vadd.f32 %v3417_v8, %v807_v35  ;;  %v1560_v26 = vsel %vm1523_vm2, %v1407_v14, 0.0 }
 0x101   :  { %v2663_v44 = vpop.f32.mrf.mxu0  ;;  %v1569_v63 = vsel %vm1523_vm2, %v1410_v49, 0.0 }
 0x102   :  { %v3587_v62 = vmax.f32 %v808_v45, 0.0  ;;  %v829_v17 = vadd.f32 %v2663_v44, %v3417_v8 }
 0x103   :  { %1732 = vadd.xlane.f32.xlu1 %v1731_v47  ;;  %1729 = vadd.xlane.f32.xlu0 %v1728_v48  ;;  %v3575_v47 = vmax.f32 %v1072_v33, 0.0  ;;  %v1063_v48 = vpop.f32.mrf.mxu1  ;;  %v820_v58 = vpop.f32.mrf.mxu0  ;;  %v1471_v33 = vmul.f32 %v3593_v4, %v3593_v4 }
 0x104   :  { %v1064_v54 = vadd.f32 %v3417_v8, %v1063_v48  ;;  %v1408_v23 = vmul.f32 %v3587_v62, %v3587_v62  ;;  %v821_v44 = vadd.f32 %v3417_v8, %v820_v58 }
 0x105   :  { %v2727_v59 = vpop.f32.mrf.mxu1  ;;  %v2664_v10 = vpop.f32.mrf.mxu0  ;;  %v1752_v49 = vsel %vm1523_vm2, %v1471_v33, 0.0 }
 0x106   :  { %v3595_v9 = vmax.f32 %v1064_v54, 0.0  ;;  %v1085_v24 = vadd.f32 %v2727_v59, %v3417_v8  ;;  %v3629_v58 = vmax.f32 %v821_v44, 0.0 }
 0x107   :  { %1558 = vadd.xlane.f32.xlu1 %v1557_v1  ;;  %1555 = vadd.xlane.f32.xlu0 %v1554_v3  ;;  %v1566_v1 = vsel %vm1523_vm2, %v1409_v50, 0.0  ;;  %v1474_v3 = vmul.f32 %v3575_v47, %v3575_v47 }
 0x108   :  { %v1472_v27 = vmul.f32 %v3595_v9, %v3595_v9  ;;  %v3618_v45 = vmax.f32 %v1085_v24, 0.0  ;;  %v1411_v33 = vmul.f32 %v3629_v58, %v3629_v58 }
 0x109   :  { %v1761_v22 = vsel %vm1523_vm2, %v1474_v3, 0.0 }
 0x10a   :  { %v1755_v48 = vsel %vm1523_vm2, %v1472_v27, 0.0  ;;  %v1477_v14 = vmul.f32 %v3618_v45, %v3618_v45 }
 0x10b   :  { %1750 = vadd.xlane.f32.xlu1 %v1749_v18  ;;  %1747 = vadd.xlane.f32.xlu0 %v1746_v11  ;;  %v1076_v11 = vpop.f32.mrf.mxu1  ;;  %v832_v18 = vadd.f32 %v2664_v10, %v3417_v8 }
 0x10c   :  { %v1770_v27 = vsel %vm1523_vm2, %v1477_v14, 0.0 }
 0x10d   :  { %v3613_v35 = vmax.f32 %v832_v18, 0.0 }
 0x10f   :  { %1552 = vadd.xlane.f32.xlu1 %v1551_v34  ;;  %1549 = vadd.xlane.f32.xlu0 %v1548_v25  ;;  %v2728_v25 = vpop.f32.mrf.mxu1  ;;  %v3611_v34 = vmax.f32 %v829_v17, 0.0  ;;  %v1414_v60 = vmul.f32 %v3613_v35, %v3613_v35 }
 0x110   :  { %v1088_v36 = vadd.f32 %v2728_v25, %v3417_v8 }
 0x111   :  { %v1079_v59 = vpop.f32.mrf.mxu1  ;;  %v1581_v18 = vsel %vm1523_vm2, %v1414_v60, 0.0 }
 0x112   :  { %v3623_v54 = vmax.f32 %v1088_v36, 0.0  ;;  %v1080_v3 = vadd.f32 %v3417_v8, %v1079_v59 }
 0x113   :  { %1744 = vadd.xlane.f32.xlu1 %v1743_v42  ;;  %1741 = vadd.xlane.f32.xlu0 %v1740_v43  ;;  %v1563_v42 = vsel %vm1523_vm2, %v1408_v23, 0.0  ;;  %v823_v43 = vpop.f32.mrf.mxu0 }
 0x114   :  { %v824_v53 = vadd.f32 %v3417_v8, %v823_v43  ;;  %v1478_v23 = vmul.f32 %v3623_v54, %v3623_v54 }
 0x115   :  { %v2667_v50 = vpop.f32.mrf.mxu0 }
 0x116   :  { %v3635_v17 = vmax.f32 %v824_v53, 0.0  ;;  %v845_v36 = vadd.f32 %v2667_v50, %v3417_v8  ;;  %v1773_v43 = vsel %vm1523_vm2, %v1478_v23, 0.0  ;;  %v1572_v53 = vsel %vm1523_vm2, %v1411_v33, 0.0 }
 0x117   :  { %1570 = vadd.xlane.f32.xlu1 %v1569_v63  ;;  %1567 = vadd.xlane.f32.xlu0 %v1566_v1  ;;  %v1413_v63 = vmul.f32 %v3611_v34, %v3611_v34  ;;  %v1077_v1 = vadd.f32 %v3417_v8, %v1076_v11  ;;  %v836_v10 = vpop.f32.mrf.mxu0  ;;  %v3643_v11 = vmax.f32 %v1080_v3, 0.0 }
 0x118   :  { %v1412_v44 = vmul.f32 %v3635_v17, %v3635_v17  ;;  %v3659_v60 = vmax.f32 %v845_v36, 0.0 }
 0x119   :  { %v3641_v24 = vmax.f32 %v1077_v1, 0.0  ;;  %v2668_v25 = vpop.f32.mrf.mxu0  ;;  %v1476_v59 = vmul.f32 %v3643_v11, %v3643_v11 }
 0x11a   :  { %4891 = vst [vmem:[#allocation3_spill] sm:$0xff] %v3659_v60  ;;  %v1575_v3 = vsel %vm1523_vm2, %v1412_v44, 0.0 }
 0x11b   :  { %1762 = vadd.xlane.f32.xlu1 %v1761_v22  ;;  %1759 = vadd.xlane.f32.xlu0 %v1758_v12  ;;  %v2731_v12 = vpop.f32.mrf.mxu1  ;;  %v1578_v22 = vsel %vm1523_vm2, %v1413_v63, 0.0  ;;  %4890 = vst [vmem:[#allocation2_spill] sm:$0xff] %v3641_v24  ;;  %v1475_v50 = vmul.f32 %v3641_v24, %v3641_v24  ;;  %v839_v14 = vpop.f32.mrf.mxu0 }
 0x11d   :  { %v1764_v23 = vsel %vm1523_vm2, %v1475_v50, 0.0 }
 0x11f   :  { %1564 = vadd.xlane.f32.xlu1 %v1563_v42  ;;  %1561 = vadd.xlane.f32.xlu0 %v1560_v26  ;;  %v1092_v26 = vpop.f32.mrf.mxu1  ;;  %v848_v42 = vadd.f32 %v2668_v25, %v3417_v8  ;;  %v2671_v25 = vpop.f32.mrf.mxu0 }
 0x120   :  { %v1093_v44 = vadd.f32 %v3417_v8, %v1092_v26 }
 0x121   :  { %v3661_v63 = vmax.f32 %v848_v42, 0.0 }
 0x123   :  { %1756 = vadd.xlane.f32.xlu1 %v1755_v48  ;;  %1753 = vadd.xlane.f32.xlu0 %v1752_v49  ;;  %v1101_v48 = vadd.f32 %v2731_v12, %v3417_v8  ;;  %v2732_v49 = vpop.f32.mrf.mxu1  ;;  %4892 = vst [vmem:[#allocation4_spill] sm:$0xff] %v3661_v63  ;;  %v837_v12 = vadd.f32 %v3417_v8, %v836_v10 }
 0x124   :  { %v1104_v1 = vadd.f32 %v2732_v49, %v3417_v8  ;;  %v1418_v42 = vmul.f32 %v3661_v63, %v3661_v63  ;;  %v852_v49 = vpop.f32.mrf.mxu0 }
 0x125   :  { %v1095_v36 = vpop.f32.mrf.mxu1  ;;  %v3677_v10 = vmax.f32 %v837_v12, 0.0  ;;  %v3689_v12 = vmax.f32 %v1093_v44, 0.0 }
 0x126   :  { %v3671_v33 = vmax.f32 %v1104_v1, 0.0  ;;  %v1593_v1 = vsel %vm1523_vm2, %v1418_v42, 0.0  ;;  %v861_v42 = vadd.f32 %v2671_v25, %v3417_v8 }
 0x127   :  { %1582 = vadd.xlane.f32.xlu1 %v1581_v18  ;;  %1579 = vadd.xlane.f32.xlu0 %v1578_v22  ;;  %v3666_v18 = vmax.f32 %v1101_v48, 0.0  ;;  %v1767_v22 = vsel %vm1523_vm2, %v1476_v59, 0.0  ;;  %4895 = vst [vmem:[#allocation7_spill] sm:$0xff] %v3677_v10  ;;  %v1096_v48 = vadd.f32 %v3417_v8, %v1095_v36  ;;  %4897 = vst [vmem:[#allocation9_spill] sm:$0xff] %v3689_v12 }
 0x128   :  { %4894 = vst [vmem:[#allocation6_spill] sm:$0xff] %v3671_v33  ;;  %v1479_v25 = vmul.f32 %v3689_v12, %v3689_v12 }
 0x129   :  { %4893 = vst [vmem:[#allocation5_spill] sm:$0xff] %v3666_v18  ;;  %v1481_v59 = vmul.f32 %v3666_v18, %v3666_v18  ;;  %v3691_v26 = vmax.f32 %v1096_v48, 0.0 }
 0x12b   :  { %1774 = vadd.xlane.f32.xlu1 %v1773_v43  ;;  %1771 = vadd.xlane.f32.xlu0 %v1770_v27  ;;  %v840_v27 = vadd.f32 %v3417_v8, %v839_v14  ;;  %v1417_v43 = vmul.f32 %v3659_v60, %v3659_v60  ;;  %v1482_v14 = vmul.f32 %v3671_v33, %v3671_v33  ;;  %v1782_v36 = vsel %vm1523_vm2, %v1481_v59, 0.0 }
 0x12c   :  { %4898 = vst [vmem:[#allocation10_spill] sm:$0xff] %v3691_v26  ;;  %v1480_v59 = vmul.f32 %v3691_v26, %v3691_v26 }
 0x12d   :  { %v3683_v50 = vmax.f32 %v840_v27, 0.0  ;;  %v1415_v27 = vmul.f32 %v3677_v10, %v3677_v10  ;;  %v1785_v18 = vsel %vm1523_vm2, %v1482_v14, 0.0  ;;  %v3707_v10 = vmax.f32 %v861_v42, 0.0 }
 0x12e   :  { %v1779_v26 = vsel %vm1523_vm2, %v1480_v59, 0.0 }
 0x12f   :  { %1576 = vadd.xlane.f32.xlu1 %v1575_v3  ;;  %1573 = vadd.xlane.f32.xlu0 %v1572_v53  ;;  %v2735_v53 = vpop.f32.mrf.mxu1  ;;  %4896 = vst [vmem:[#allocation8_spill] sm:$0xff] %v3683_v50  ;;  %v1590_v3 = vsel %vm1523_vm2, %v1417_v43, 0.0  ;;  %4899 = vst [vmem:[#allocation11_spill] sm:$0xff] %v3707_v10 }
 0x130   :  { %v1117_v44 = vadd.f32 %v2735_v53, %v3417_v8  ;;  %v853_v53 = vadd.f32 %v3417_v8, %v852_v49 }
 0x132   :  { %v3725_v49 = vmax.f32 %v853_v53, 0.0 }
 0x133   :  { %1768 = vadd.xlane.f32.xlu1 %v1767_v22  ;;  %1765 = vadd.xlane.f32.xlu0 %v1764_v23  ;;  %v2672_v22 = vpop.f32.mrf.mxu0  ;;  %v1108_v23 = vpop.f32.mrf.mxu1 }
 0x134   :  { %v864_v43 = vadd.f32 %v2672_v22, %v3417_v8  ;;  %4903 = vst [vmem:[#allocation15_spill] sm:$0xff] %v3725_v49 }
 0x135   :  { %v2736_v48 = vpop.f32.mrf.mxu1 }
 0x136   :  { %v3709_v22 = vmax.f32 %v864_v43, 0.0  ;;  %v1120_v14 = vadd.f32 %v2736_v48, %v3417_v8  ;;  %v1421_v48 = vmul.f32 %v3707_v10, %v3707_v10 }
 0x137   :  { %1594 = vadd.xlane.f32.xlu1 %v1593_v1  ;;  %1591 = vadd.xlane.f32.xlu0 %v1590_v3  ;;  %v1416_v1 = vmul.f32 %v3683_v50, %v3683_v50  ;;  %v1584_v3 = vsel %vm1523_vm2, %v1415_v27, 0.0  ;;  %v3714_v27 = vmax.f32 %v1117_v44, 0.0  ;;  %v1776_v50 = vsel %vm1523_vm2, %v1479_v25, 0.0  ;;  %v1111_v33 = vpop.f32.mrf.mxu1 }
 0x138   :  { %4900 = vst [vmem:[#allocation12_spill] sm:$0xff] %v3709_v22  ;;  %v3719_v43 = vmax.f32 %v1120_v14, 0.0  ;;  %v1109_v44 = vadd.f32 %v3417_v8, %v1108_v23 }
 0x139   :  { %4901 = vst [vmem:[#allocation13_spill] sm:$0xff] %v3714_v27  ;;  %v2739_v25 = vpop.f32.mrf.mxu1  ;;  %v1485_v14 = vmul.f32 %v3714_v27, %v3714_v27 }
 0x13a   :  { %4902 = vst [vmem:[#allocation14_spill] sm:$0xff] %v3719_v43 }
 0x13b   :  { %1786 = vadd.xlane.f32.xlu1 %v1785_v18  ;;  %1783 = vadd.xlane.f32.xlu0 %v1782_v36  ;;  %v1587_v18 = vsel %vm1523_vm2, %v1416_v1, 0.0  ;;  %v855_v36 = vpop.f32.mrf.mxu0  ;;  %v1422_v1 = vmul.f32 %v3709_v22, %v3709_v22  ;;  %v1602_v22 = vsel %vm1523_vm2, %v1421_v48, 0.0  ;;  %v1124_v53 = vpop.f32.mrf.mxu1  ;;  %v1794_v10 = vsel %vm1523_vm2, %v1485_v14, 0.0 }
 0x13c   :  { %v856_v42 = vadd.f32 %v3417_v8, %v855_v36 }
 0x13d   :  { %v2675_v12 = vpop.f32.mrf.mxu0  ;;  %v1605_v36 = vsel %vm1523_vm2, %v1422_v1, 0.0 }
 0x13e   :  { %v877_v1 = vadd.f32 %v2675_v12, %v3417_v8 }
 0x13f   :  { %1588 = vadd.xlane.f32.xlu1 %v1587_v18  ;;  %1585 = vadd.xlane.f32.xlu0 %v1584_v3  ;;  %v1112_v3 = vadd.f32 %v3417_v8, %v1111_v33  ;;  %v868_v59 = vpop.f32.mrf.mxu0  ;;  %v3731_v18 = vmax.f32 %v856_v42, 0.0  ;;  %v1419_v42 = vmul.f32 %v3725_v49, %v3725_v49 }
 0x140   :  { %v3755_v49 = vmax.f32 %v877_v1, 0.0 }
 0x141   :  { %4904 = vst [vmem:[#allocation16_spill] sm:$0xff] %v3731_v18  ;;  %v3739_v23 = vmax.f32 %v1112_v3, 0.0  ;;  %v2676_v33 = vpop.f32.mrf.mxu0  ;;  %v2740_v3 = vpop.f32.mrf.mxu1 }
 0x142   :  { %v880_v48 = vadd.f32 %v2676_v33, %v3417_v8  ;;  %4907 = vst [vmem:[#allocation19_spill] sm:$0xff] %v3755_v49 }
 0x143   :  { %1780 = vadd.xlane.f32.xlu1 %v1779_v26  ;;  %1777 = vadd.xlane.f32.xlu0 %v1776_v50  ;;  %v1486_v50 = vmul.f32 %v3719_v43, %v3719_v43  ;;  %v3737_v26 = vmax.f32 %v1109_v44, 0.0  ;;  %4906 = vst [vmem:[#allocation18_spill] sm:$0xff] %v3739_v23  ;;  %v1133_v44 = vadd.f32 %v2739_v25, %v3417_v8  ;;  %v1127_v43 = vpop.f32.mrf.mxu1 }
 0x144   :  { %v1484_v14 = vmul.f32 %v3739_v23, %v3739_v23  ;;  %v3757_v33 = vmax.f32 %v880_v48, 0.0  ;;  %v869_v25 = vadd.f32 %v3417_v8, %v868_v59 }
 0x145   :  { %4905 = vst [vmem:[#allocation17_spill] sm:$0xff] %v3737_v26  ;;  %v1797_v27 = vsel %vm1523_vm2, %v1486_v50, 0.0  ;;  %v1483_v12 = vmul.f32 %v3737_v26, %v3737_v26  ;;  %v1136_v50 = vadd.f32 %v2740_v3, %v3417_v8  ;;  %v1425_v3 = vmul.f32 %v3755_v49, %v3755_v49 }
 0x146   :  { %4908 = vst [vmem:[#allocation20_spill] sm:$0xff] %v3757_v33  ;;  %v1791_v23 = vsel %vm1523_vm2, %v1484_v14, 0.0  ;;  %v3773_v59 = vmax.f32 %v869_v25, 0.0 }
 0x147   :  { %1606 = vadd.xlane.f32.xlu1 %v1605_v36  ;;  %1603 = vadd.xlane.f32.xlu0 %v1602_v22  ;;  %v1420_v22 = vmul.f32 %v3731_v18, %v3731_v18  ;;  %v1596_v36 = vsel %vm1523_vm2, %v1419_v42, 0.0  ;;  %v3762_v42 = vmax.f32 %v1133_v44, 0.0  ;;  %v1788_v18 = vsel %vm1523_vm2, %v1483_v12, 0.0  ;;  %v2743_v12 = vpop.f32.mrf.mxu1 }
 0x148   :  { %v3767_v48 = vmax.f32 %v1136_v50, 0.0  ;;  %4911 = vst [vmem:[#allocation23_spill] sm:$0xff] %v3773_v59  ;;  %v1125_v44 = vadd.f32 %v3417_v8, %v1124_v53 }
 0x149   :  { %4909 = vst [vmem:[#allocation21_spill] sm:$0xff] %v3762_v42  ;;  %v1489_v50 = vmul.f32 %v3762_v42, %v3762_v42  ;;  %v1140_v25 = vpop.f32.mrf.mxu1 }
 0x14a   :  { %4910 = vst [vmem:[#allocation22_spill] sm:$0xff] %v3767_v48 }
 0x14b   :  { %1798 = vadd.xlane.f32.xlu1 %v1797_v27  ;;  %1795 = vadd.xlane.f32.xlu0 %v1794_v10  ;;  %v1599_v27 = vsel %vm1523_vm2, %v1420_v22, 0.0  ;;  %v871_v10 = vpop.f32.mrf.mxu0  ;;  %v1426_v22 = vmul.f32 %v3757_v33, %v3757_v33  ;;  %v1614_v33 = vsel %vm1523_vm2, %v1425_v3, 0.0  ;;  %v1806_v49 = vsel %vm1523_vm2, %v1489_v50, 0.0 }
 0x14c   :  { %v872_v1 = vadd.f32 %v3417_v8, %v871_v10 }
 0x14d   :  { %v2679_v26 = vpop.f32.mrf.mxu0  ;;  %v1617_v10 = vsel %vm1523_vm2, %v1426_v22, 0.0 }
 0x14e   :  { %v893_v22 = vadd.f32 %v2679_v26, %v3417_v8 }
 0x14f   :  { %1600 = vadd.xlane.f32.xlu1 %v1599_v27  ;;  %1597 = vadd.xlane.f32.xlu0 %v1596_v36  ;;  %v1128_v36 = vadd.f32 %v3417_v8, %v1127_v43  ;;  %v884_v14 = vpop.f32.mrf.mxu0  ;;  %v3779_v27 = vmax.f32 %v872_v1, 0.0  ;;  %v1423_v1 = vmul.f32 %v3773_v59, %v3773_v59 }
 0x150   :  { %v3803_v59 = vmax.f32 %v893_v22, 0.0 }
 0x151   :  { %4912 = vst [vmem:[#allocation24_spill] sm:$0xff] %v3779_v27  ;;  %v3787_v53 = vmax.f32 %v1128_v36, 0.0  ;;  %v2680_v43 = vpop.f32.mrf.mxu0  ;;  %v2744_v36 = vpop.f32.mrf.mxu1 }
 0x152   :  { %v896_v3 = vadd.f32 %v2680_v43, %v3417_v8  ;;  %4915 = vst [vmem:[#allocation27_spill] sm:$0xff] %v3803_v59 }
 0x153   :  { %1792 = vadd.xlane.f32.xlu1 %v1791_v23  ;;  %1789 = vadd.xlane.f32.xlu0 %v1788_v18  ;;  %v1490_v18 = vmul.f32 %v3767_v48, %v3767_v48  ;;  %v3785_v23 = vmax.f32 %v1125_v44, 0.0  ;;  %4914 = vst [vmem:[#allocation26_spill] sm:$0xff] %v3787_v53  ;;  %v1149_v44 = vadd.f32 %v2743_v12, %v3417_v8  ;;  %v1143_v48 = vpop.f32.mrf.mxu1 }
 0x154   :  { %v1488_v50 = vmul.f32 %v3787_v53, %v3787_v53  ;;  %v3805_v43 = vmax.f32 %v896_v3, 0.0  ;;  %v885_v12 = vadd.f32 %v3417_v8, %v884_v14  ;;  %v1141_v14 = vadd.f32 %v3417_v8, %v1140_v25 }
 0x155   :  { %4913 = vst [vmem:[#allocation25_spill] sm:$0xff] %v3785_v23  ;;  %v1809_v42 = vsel %vm1523_vm2, %v1490_v18, 0.0  ;;  %v1487_v26 = vmul.f32 %v3785_v23, %v3785_v23  ;;  %v1152_v18 = vadd.f32 %v2744_v36, %v3417_v8  ;;  %v1429_v36 = vmul.f32 %v3803_v59, %v3803_v59 }
 0x156   :  { %4916 = vst [vmem:[#allocation28_spill] sm:$0xff] %v3805_v43  ;;  %v1803_v53 = vsel %vm1523_vm2, %v1488_v50, 0.0 }
 0x157   :  { %1618 = vadd.xlane.f32.xlu1 %v1617_v10  ;;  %1615 = vadd.xlane.f32.xlu0 %v1614_v33  ;;  %v1424_v33 = vmul.f32 %v3779_v27, %v3779_v27  ;;  %v1608_v10 = vsel %vm1523_vm2, %v1423_v1, 0.0  ;;  %v3810_v1 = vmax.f32 %v1149_v44, 0.0  ;;  %v1800_v27 = vsel %vm1523_vm2, %v1487_v26, 0.0  ;;  %v2747_v26 = vpop.f32.mrf.mxu1 }
 0x158   :  { %v3815_v3 = vmax.f32 %v1152_v18, 0.0  ;;  %v3822_v44 = vmax.f32 %v885_v12, 0.0 }
 0x159   :  { %4917 = vst [vmem:[#allocation29_spill] sm:$0xff] %v3810_v1  ;;  %v1493_v18 = vmul.f32 %v3810_v1, %v3810_v1  ;;  %v1156_v12 = vpop.f32.mrf.mxu1 }
 0x15a   :  { %4918 = vst [vmem:[#allocation30_spill] sm:$0xff] %v3815_v3  ;;  %4919 = vst [vmem:[#allocation31_spill] sm:$0xff] %v3822_v44 }
 0x15b   :  { %1810 = vadd.xlane.f32.xlu1 %v1809_v42  ;;  %1807 = vadd.xlane.f32.xlu0 %v1806_v49  ;;  %v1611_v42 = vsel %vm1523_vm2, %v1424_v33, 0.0  ;;  %v887_v49 = vpop.f32.mrf.mxu0  ;;  %v1430_v33 = vmul.f32 %v3805_v43, %v3805_v43  ;;  %v1626_v43 = vsel %vm1523_vm2, %v1429_v36, 0.0  ;;  %v1818_v59 = vsel %vm1523_vm2, %v1493_v18, 0.0  ;;  %v2748_v18 = vpop.f32.mrf.mxu1 }
 0x15c   :  { %v888_v22 = vadd.f32 %v3417_v8, %v887_v49 }
 0x15d   :  { %v2683_v23 = vpop.f32.mrf.mxu0  ;;  %v1629_v49 = vsel %vm1523_vm2, %v1430_v33, 0.0 }
 0x15e   :  { %v909_v33 = vadd.f32 %v2683_v23, %v3417_v8 }
 0x15f   :  { %1612 = vadd.xlane.f32.xlu1 %v1611_v42  ;;  %1609 = vadd.xlane.f32.xlu0 %v1608_v10  ;;  %v1144_v10 = vadd.f32 %v3417_v8, %v1143_v48  ;;  %v900_v50 = vpop.f32.mrf.mxu0  ;;  %v3827_v42 = vmax.f32 %v888_v22, 0.0  ;;  %v1427_v22 = vmul.f32 %v3822_v44, %v3822_v44 }
 0x160   :  { %v3851_v44 = vmax.f32 %v909_v33, 0.0 }
 0x161   :  { %4920 = vst [vmem:[#allocation32_spill] sm:$0xff] %v3827_v42  ;;  %v3835_v25 = vmax.f32 %v1144_v10, 0.0  ;;  %v2684_v48 = vpop.f32.mrf.mxu0  ;;  %v1165_v10 = vadd.f32 %v2747_v26, %v3417_v8 }
 0x162   :  { %v912_v36 = vadd.f32 %v2684_v48, %v3417_v8  ;;  %4923 = vst [vmem:[#allocation35_spill] sm:$0xff] %v3851_v44 }
 0x163   :  { %1804 = vadd.xlane.f32.xlu1 %v1803_v53  ;;  %1801 = vadd.xlane.f32.xlu0 %v1800_v27  ;;  %v1494_v27 = vmul.f32 %v3815_v3, %v3815_v3  ;;  %v3833_v53 = vmax.f32 %v1141_v14, 0.0  ;;  %4922 = vst [vmem:[#allocation34_spill] sm:$0xff] %v3835_v25  ;;  %v1492_v23 = vmul.f32 %v3835_v25, %v3835_v25  ;;  %v3859_v3 = vmax.f32 %v1165_v10, 0.0  ;;  %v1159_v25 = vpop.f32.mrf.mxu1 }
 0x164   :  { %v3853_v48 = vmax.f32 %v912_v36, 0.0 }
 0x165   :  { %4921 = vst [vmem:[#allocation33_spill] sm:$0xff] %v3833_v53  ;;  %v1821_v1 = vsel %vm1523_vm2, %v1494_v27, 0.0  ;;  %v1491_v14 = vmul.f32 %v3833_v53, %v3833_v53  ;;  %v1168_v27 = vadd.f32 %v2748_v18, %v3417_v8  ;;  %v901_v53 = vadd.f32 %v3417_v8, %v900_v50  ;;  %4925 = vst [vmem:[#allocation37_spill] sm:$0xff] %v3859_v3  ;;  %v2751_v24 = vpop.f32.mrf.mxu1 }
 0x166   :  { %4924 = vst [vmem:[#allocation36_spill] sm:$0xff] %v3853_v48  ;;  %v1815_v36 = vsel %vm1523_vm2, %v1492_v23, 0.0  ;;  %v1433_v50 = vmul.f32 %v3851_v44, %v3851_v44 }
 0x167   :  { %1630 = vadd.xlane.f32.xlu1 %v1629_v49  ;;  %1627 = vadd.xlane.f32.xlu0 %v1626_v43  ;;  %v1428_v43 = vmul.f32 %v3827_v42, %v3827_v42  ;;  %v1620_v49 = vsel %vm1523_vm2, %v1427_v22, 0.0  ;;  %v1812_v22 = vsel %vm1523_vm2, %v1491_v14, 0.0  ;;  %v1157_v14 = vadd.f32 %v3417_v8, %v1156_v12 }
 0x16b   :  { %1822 = vadd.xlane.f32.xlu1 %v1821_v1  ;;  %1819 = vadd.xlane.f32.xlu0 %v1818_v59  ;;  %v1623_v1 = vsel %vm1523_vm2, %v1428_v43, 0.0  ;;  %v903_v59 = vpop.f32.mrf.mxu0  ;;  %v3863_v43 = vmax.f32 %v1168_v27, 0.0 }
 0x16c   :  { %v904_v18 = vadd.f32 %v3417_v8, %v903_v59 }
 0x16d   :  { %v2687_v63 = vpop.f32.mrf.mxu0  ;;  %4926 = vst [vmem:[#allocation38_spill] sm:$0xff] %v3863_v43 }
 0x16e   :  { %v3875_v44 = vmax.f32 %v904_v18, 0.0  ;;  %v925_v18 = vadd.f32 %v2687_v63, %v3417_v8 }
 0x16f   :  { %1624 = vadd.xlane.f32.xlu1 %v1623_v1  ;;  %1621 = vadd.xlane.f32.xlu0 %v1620_v49  ;;  %v1434_v49 = vmul.f32 %v3853_v48, %v3853_v48  ;;  %v3871_v1 = vmax.f32 %v901_v53, 0.0  ;;  %v1497_v48 = vmul.f32 %v3859_v3, %v3859_v3  ;;  %v1172_v3 = vpop.f32.mrf.mxu1 }
 0x170   :  { %v1724_v26 = vpop.xlane.xlu0 %1723  ;;  %v1532_v42 = vpop.xlane.xlu1 %1531  ;;  %4928 = vst [vmem:[#allocation40_spill] sm:$0xff] %v3875_v44 }
 0x171   :  { %v1974_v33 = vmax.f32 %v1724_v26, 1e-24  ;;  %v1910_v60 = vmax.f32 %v1532_v42, 1e-24  ;;  %v1160_v42 = vadd.f32 %v3417_v8, %v1159_v25  ;;  %4927 = vst [vmem:[#allocation39_spill] sm:$0xff] %v3871_v1  ;;  %v916_v26 = vpop.f32.mrf.mxu0  ;;  %v1641_v12 = vsel %vm1523_vm2, %v1434_v49, 0.0 }
 0x172   :  { %v3881_v25 = vmax.f32 %v1157_v14, 0.0 }
 0x173   :  { %2860 = vrsqrt.f32 %v1974_v33  ;;  %1816 = vadd.xlane.f32.xlu1 %v1815_v36  ;;  %1813 = vadd.xlane.f32.xlu0 %v1812_v22  ;;  %v1638_v22 = vsel %vm1523_vm2, %v1433_v50, 0.0  ;;  %v3883_v53 = vmax.f32 %v1160_v42, 0.0  ;;  %v2688_v49 = vpop.f32.mrf.mxu0  ;;  %v1830_v50 = vsel %vm1523_vm2, %v1497_v48, 0.0 }
 0x174   :  { %2862 = vrsqrt.f32 %v1910_v60  ;;  %v1535_v10 = vpop.xlane.xlu1 %1534  ;;  %v1526_v23 = vpop.xlane.xlu0 %1525  ;;  %v1498_v60 = vmul.f32 %v3863_v43, %v3863_v43  ;;  %4929 = vst [vmem:[#allocation41_spill] sm:$0xff] %v3881_v25  ;;  %v928_v43 = vadd.f32 %v2688_v49, %v3417_v8  ;;  %v1431_v42 = vmul.f32 %v3871_v1, %v3871_v1 }
 0x175   :  { %v1911_v27 = vmax.f32 %v1535_v10, 1e-24  ;;  %v1908_v59 = vmax.f32 %v1526_v23, 1e-24  ;;  %4930 = vst [vmem:[#allocation42_spill] sm:$0xff] %v3883_v53  ;;  %v1495_v63 = vmul.f32 %v3881_v25, %v3881_v25  ;;  %v2752_v49 = vpop.f32.mrf.mxu1 }
 0x176   :  { %v1833_v14 = vsel %vm1523_vm2, %v1498_v60, 0.0  ;;  %v3898_v60 = vmax.f32 %v925_v18, 0.0  ;;  %v3900_v1 = vmax.f32 %v928_v43, 0.0  ;;  %v3909_v18 = vld [vmem:[%s4843_s2] ss:$0 sm:$0xff] }
 0x177   :  { %2864 = vrsqrt.f32 %v1911_v27  ;;  %1642 = vadd.xlane.f32.xlu1 %v1641_v12  ;;  %1639 = vadd.xlane.f32.xlu0 %v1638_v22  ;;  %v1432_v27 = vmul.f32 %v3875_v44, %v3875_v44  ;;  %v1496_v22 = vmul.f32 %v3883_v53, %v3883_v53  ;;  %v917_v43 = vadd.f32 %v3909_v18, %v916_v26 }
 0x178   :  { %2866 = vrsqrt.f32 %v1908_v59  ;;  %v1727_v33 = vpop.xlane.xlu1 %1726  ;;  %v1718_v36 = vpop.xlane.xlu0 %1717  ;;  %v1181_v59 = vadd.f32 %v2751_v24, %v3417_v8  ;;  %v1824_v24 = vsel %vm1523_vm2, %v1495_v63, 0.0  ;;  %v1437_v53 = vmul.f32 %v3898_v60, %v3898_v60 }
 0x179   :  { %v1975_v10 = vmax.f32 %v1727_v33, 1e-24  ;;  %v1972_v23 = vmax.f32 %v1718_v36, 1e-24 }
 0x17b   :  { %2868 = vrsqrt.f32 %v1975_v10  ;;  %1834 = vadd.xlane.f32.xlu1 %v1833_v14  ;;  %1831 = vadd.xlane.f32.xlu0 %v1830_v50  ;;  %v1184_v10 = vadd.f32 %v2752_v49, %v3417_v8  ;;  %v1635_v50 = vsel %vm1523_vm2, %v1432_v27, 0.0  ;;  %v919_v14 = vpop.f32.mrf.mxu0  ;;  %v1175_v49 = vpop.f32.mrf.mxu1 }
 0x17c   :  { %2870 = vrsqrt.f32 %v1972_v23  ;;  %v1721_v48 = vpop.xlane.xlu1 %1720  ;;  %v1529_v12 = vpop.xlane.xlu0 %1528  ;;  %v1632_v23 = vsel %vm1523_vm2, %v1431_v42, 0.0  ;;  %v1827_v42 = vsel %vm1523_vm2, %v1496_v22, 0.0  ;;  %v920_v26 = vadd.f32 %v3909_v18, %v919_v14 }
 0x17d   :  { %v1973_v33 = vmax.f32 %v1721_v48, 1e-24  ;;  %v1909_v36 = vmax.f32 %v1529_v12, 1e-24  ;;  %v3912_v48 = vmax.f32 %v1181_v59, 0.0  ;;  %v3920_v59 = vmax.f32 %v1184_v10, 0.0 }
 0x17e   :  { %v1176_v22 = vadd.f32 %v3909_v18, %v1175_v49 }
 0x17f   :  { %2872 = vrsqrt.f32 %v1973_v33  ;;  %1636 = vadd.xlane.f32.xlu1 %v1635_v50  ;;  %1633 = vadd.xlane.f32.xlu0 %v1632_v23  ;;  %v2691_v23 = vpop.f32.mrf.mxu0 }
 0x180   :  { %v2861_v25 = vpop.eup %2860  ;;  %2874 = vrsqrt.f32 %v1909_v36  ;;  %v1547_v8 = vpop.xlane.xlu1 %1546  ;;  %v1438_v36 = vmul.f32 %v3900_v1, %v3900_v1 }
 0x181   :  { %v1544_v27 = vpop.xlane.xlu0 %1543  ;;  %v2863_v12 = vpop.eup %2862  ;;  %v2230_v33 = vmul.f32 %v2861_v25, %v3423_v16  ;;  %v1915_v63 = vmax.f32 %v1547_v8, 1e-24  ;;  %v1173_v16 = vadd.f32 %v3909_v18, %v1172_v3  ;;  %v1501_v8 = vmul.f32 %v3912_v48, %v3912_v48 }
 0x182   :  { %v1914_v50 = vmax.f32 %v1544_v27, 1e-24  ;;  %v2166_v44 = vmul.f32 %v2863_v12, %v3421_v15  ;;  %v3933_v15 = vmax.f32 %v917_v43, 0.0  ;;  %v932_v12 = vpop.f32.mrf.mxu0  ;;  %v3941_v43 = vmax.f32 %v920_v26, 0.0 }
 0x183   :  { %2358 = vst.msk [vmem:[%s4844_s3 + $0x210] sm:$0xff] %vm1523_vm2, %v2230_v33  ;;  %2876 = vrsqrt.f32 %v1915_v63  ;;  %1828 = vadd.xlane.f32.xlu1 %v1827_v42  ;;  %1825 = vadd.xlane.f32.xlu0 %v1824_v24  ;;  %v1650_v33 = vsel %vm1523_vm2, %v1437_v53, 0.0  ;;  %v2755_v63 = vpop.f32.mrf.mxu1  ;;  %v1653_v49 = vsel %vm1523_vm2, %v1438_v36, 0.0 }
 0x184   :  { %v2865_v25 = vpop.eup %2864  ;;  %2294 = vst.msk [vmem:[%s4844_s3 + $0x10] sm:$0xff] %vm1523_vm2, %v2166_v44  ;;  %2878 = vrsqrt.f32 %v1914_v50  ;;  %v1739_v10 = vpop.xlane.xlu1 %1738  ;;  %v1502_v50 = vmul.f32 %v3920_v59, %v3920_v59 }
 0x185   :  { %v1736_v14 = vpop.xlane.xlu0 %1735  ;;  %v2867_v3 = vpop.eup %2866  ;;  %v2167_v27 = vmul.f32 %v2865_v25, %v3437_v29  ;;  %v1979_v24 = vmax.f32 %v1739_v10, 1e-24  ;;  %v3950_v29 = vmax.f32 %v1173_v16, 0.0  ;;  %v1842_v25 = vsel %vm1523_vm2, %v1501_v8, 0.0 }
 0x186   :  { %v1978_v42 = vmax.f32 %v1736_v14, 1e-24  ;;  %v2164_v44 = vmul.f32 %v2867_v3, %v3427_v21  ;;  %v3956_v21 = vmax.f32 %v1176_v22, 0.0  ;;  %v1435_v16 = vmul.f32 %v3933_v15, %v3933_v15 }
 0x187   :  { %2295 = vst.msk [vmem:[%s4844_s3 + $0x18] sm:$0xff] %vm1523_vm2, %v2167_v27  ;;  %4931 = vst [vmem:[#allocation43_spill] sm:$0xff] %v3950_v29  ;;  %2880 = vrsqrt.f32 %v1979_v24  ;;  %1654 = vadd.xlane.f32.xlu1 %v1653_v49  ;;  %1651 = vadd.xlane.f32.xlu0 %v1650_v33  ;;  %v941_v3 = vadd.f32 %v3909_v18, %v2691_v23  ;;  %v2692_v33 = vpop.f32.mrf.mxu0  ;;  %v1188_v49 = vpop.f32.mrf.mxu1  ;;  %v1436_v8 = vmul.f32 %v3941_v43, %v3941_v43 }
 0x188   :  { %v2869_v53 = vpop.eup %2868  ;;  %2292 = vst.msk [vmem:[%s4844_s3] sm:$0xff] %vm1523_vm2, %v2164_v44  ;;  %2882 = vrsqrt.f32 %v1978_v42  ;;  %v1541_v26 = vpop.xlane.xlu1 %1540  ;;  %v944_v42 = vadd.f32 %v3909_v18, %v2692_v33  ;;  %v1845_v44 = vsel %vm1523_vm2, %v1502_v50, 0.0 }
 0x189   :  { %v1538_v36 = vpop.xlane.xlu0 %1537  ;;  %v2871_v10 = vpop.eup %2870  ;;  %v2231_v14 = vmul.f32 %v2869_v53, %v3441_v32  ;;  %v1913_v27 = vmax.f32 %v1541_v26, 1e-24  ;;  %v1499_v32 = vmul.f32 %v3950_v29, %v3950_v29  ;;  %v1644_v26 = vsel %vm1523_vm2, %v1435_v16, 0.0 }
 0x18a   :  { %v1912_v24 = vmax.f32 %v1538_v36, 1e-24  ;;  %v2228_v22 = vmul.f32 %v2871_v10, %v3435_v28  ;;  %v1197_v28 = vadd.f32 %v3909_v18, %v2755_v63  ;;  %v1500_v36 = vmul.f32 %v3956_v21, %v3956_v21  ;;  %v935_v16 = vpop.f32.mrf.mxu0 }
 0x18b   :  { %2359 = vst.msk [vmem:[%s4844_s3 + $0x218] sm:$0xff] %vm1523_vm2, %v2231_v14  ;;  %2884 = vrsqrt.f32 %v1913_v27  ;;  %1846 = vadd.xlane.f32.xlu1 %v1845_v44  ;;  %1843 = vadd.xlane.f32.xlu0 %v1842_v25  ;;  %v3983_v14 = vmax.f32 %v941_v3, 0.0  ;;  %v2756_v44 = vpop.f32.mrf.mxu1  ;;  %v1647_v29 = vsel %vm1523_vm2, %v1436_v8, 0.0 }
 0x18c   :  { %v2873_v23 = vpop.eup %2872  ;;  %2356 = vst.msk [vmem:[%s4844_s3 + $0x200] sm:$0xff] %vm1523_vm2, %v2228_v22  ;;  %2886 = vrsqrt.f32 %v1912_v24  ;;  %v1733_v50 = vpop.xlane.xlu1 %1732  ;;  %v3986_v24 = vmax.f32 %v944_v42, 0.0  ;;  %v1200_v63 = vadd.f32 %v3909_v18, %v2756_v44  ;;  %v4000_v42 = vmax.f32 %v1197_v28, 0.0 }
 0x18d   :  { %v1730_v53 = vpop.xlane.xlu0 %1729  ;;  %v2875_v25 = vpop.eup %2874  ;;  %v2229_v10 = vmul.f32 %v2873_v23, %v3451_v41  ;;  %v1977_v27 = vmax.f32 %v1733_v50, 1e-24  ;;  %v1836_v41 = vsel %vm1523_vm2, %v1499_v32, 0.0  ;;  %v1839_v50 = vsel %vm1523_vm2, %v1500_v36, 0.0 }
 0x18e   :  { %v1976_v33 = vmax.f32 %v1730_v53, 1e-24  ;;  %v2165_v22 = vmul.f32 %v2875_v25, %v3449_v40  ;;  %v933_v40 = vadd.f32 %v3909_v18, %v932_v12  ;;  %v936_v12 = vadd.f32 %v3909_v18, %v935_v16 }
 0x18f   :  { %2357 = vst.msk [vmem:[%s4844_s3 + $0x208] sm:$0xff] %vm1523_vm2, %v2229_v10  ;;  %2888 = vrsqrt.f32 %v1977_v27  ;;  %1648 = vadd.xlane.f32.xlu1 %v1647_v29  ;;  %1645 = vadd.xlane.f32.xlu0 %v1644_v26  ;;  %v1191_v26 = vpop.f32.mrf.mxu1  ;;  %v2695_v10 = vpop.f32.mrf.mxu0  ;;  %v1441_v27 = vmul.f32 %v3983_v14, %v3983_v14  ;;  %v4008_v28 = vmax.f32 %v1200_v63, 0.0 }
 0x190   :  { %v2877_v3 = vpop.eup %2876  ;;  %2293 = vst.msk [vmem:[%s4844_s3 + $0x8] sm:$0xff] %vm1523_vm2, %v2165_v22  ;;  %2890 = vrsqrt.f32 %v1976_v33  ;;  %v1559_v8 = vpop.xlane.xlu1 %1558  ;;  %v1442_v33 = vmul.f32 %v3986_v24, %v3986_v24  ;;  %v1192_v22 = vadd.f32 %v3909_v18, %v1191_v26 }
 0x191   :  { %v1556_v23 = vpop.xlane.xlu0 %1555  ;;  %v2879_v53 = vpop.eup %2878  ;;  %v2171_v29 = vmul.f32 %v2877_v3, %v3469_v56  ;;  %v1919_v32 = vmax.f32 %v1559_v8, 1e-24  ;;  %v1189_v56 = vadd.f32 %v3909_v18, %v1188_v49  ;;  %v1505_v3 = vmul.f32 %v4000_v42, %v4000_v42 }
 0x192   :  { %v1918_v25 = vmax.f32 %v1556_v23, 1e-24  ;;  %v2170_v44 = vmul.f32 %v2879_v53, %v3467_v55  ;;  %v4021_v55 = vmax.f32 %v933_v40, 0.0  ;;  %v1662_v53 = vsel %vm1523_vm2, %v1441_v27, 0.0 }
 0x193   :  { %2299 = vst.msk [vmem:[%s4844_s3 + $0x38] sm:$0xff] %vm1523_vm2, %v2171_v29  ;;  %2892 = vrsqrt.f32 %v1919_v32  ;;  %1840 = vadd.xlane.f32.xlu1 %v1839_v50  ;;  %1837 = vadd.xlane.f32.xlu0 %v1836_v41  ;;  %v948_v50 = vpop.f32.mrf.mxu0  ;;  %v2759_v29 = vpop.f32.mrf.mxu1  ;;  %v4029_v32 = vmax.f32 %v936_v12, 0.0  ;;  %v1665_v26 = vsel %vm1523_vm2, %v1442_v33, 0.0  ;;  %v1854_v33 = vsel %vm1523_vm2, %v1505_v3, 0.0 }
 0x194   :  { %v2881_v36 = vpop.eup %2880  ;;  %2298 = vst.msk [vmem:[%s4844_s3 + $0x30] sm:$0xff] %vm1523_vm2, %v2170_v44  ;;  %2894 = vrsqrt.f32 %v1918_v25  ;;  %v1751_v63 = vpop.xlane.xlu1 %1750  ;;  %v1506_v25 = vmul.f32 %v4008_v28, %v4008_v28 }
 0x195   :  { %v1748_v16 = vpop.xlane.xlu0 %1747  ;;  %v2883_v49 = vpop.eup %2882  ;;  %v2235_v8 = vmul.f32 %v2881_v36, %v3479_v2  ;;  %v1983_v41 = vmax.f32 %v1751_v63, 1e-24  ;;  %v4038_v2 = vmax.f32 %v1189_v56, 0.0  ;;  %v1439_v56 = vmul.f32 %v4021_v55, %v4021_v55 }
 0x196   :  { %v1982_v23 = vmax.f32 %v1748_v16, 1e-24  ;;  %v2234_v40 = vmul.f32 %v2883_v49, %v3474_v61  ;;  %v4044_v61 = vmax.f32 %v1192_v22, 0.0  ;;  %v957_v16 = vadd.f32 %v3909_v18, %v2695_v10 }
 0x197   :  { %2363 = vst.msk [vmem:[%s4844_s3 + $0x238] sm:$0xff] %vm1523_vm2, %v2235_v8  ;;  %2896 = vrsqrt.f32 %v1983_v41  ;;  %1666 = vadd.xlane.f32.xlu1 %v1665_v26  ;;  %1663 = vadd.xlane.f32.xlu0 %v1662_v53  ;;  %v2696_v41 = vpop.f32.mrf.mxu0  ;;  %v1204_v53 = vpop.f32.mrf.mxu1  ;;  %v1440_v3 = vmul.f32 %v4029_v32, %v4029_v32 }
 0x198   :  { %v2885_v27 = vpop.eup %2884  ;;  %2362 = vst.msk [vmem:[%s4844_s3 + $0x230] sm:$0xff] %vm1523_vm2, %v2234_v40  ;;  %2898 = vrsqrt.f32 %v1982_v23  ;;  %v1553_v44 = vpop.xlane.xlu1 %1552  ;;  %v960_v23 = vadd.f32 %v3909_v18, %v2696_v41  ;;  %v1857_v40 = vsel %vm1523_vm2, %v1506_v25, 0.0 }
 0x199   :  { %v1550_v12 = vpop.xlane.xlu0 %1549  ;;  %v2887_v36 = vpop.eup %2886  ;;  %v2169_v63 = vmul.f32 %v2885_v27, %v3491_v13  ;;  %v1917_v49 = vmax.f32 %v1553_v44, 1e-24  ;;  %v1503_v13 = vmul.f32 %v4038_v2, %v4038_v2  ;;  %v1656_v27 = vsel %vm1523_vm2, %v1439_v56, 0.0 }
 0x19a   :  { %v1916_v8 = vmax.f32 %v1550_v12, 1e-24  ;;  %v2168_v22 = vmul.f32 %v2887_v36, %v3485_v6  ;;  %v1213_v6 = vadd.f32 %v3909_v18, %v2759_v29  ;;  %v1504_v44 = vmul.f32 %v4044_v61, %v4044_v61  ;;  %v2760_v41 = vpop.f32.mrf.mxu1  ;;  %v951_v56 = vpop.f32.mrf.mxu0 }
 0x19b   :  { %2297 = vst.msk [vmem:[%s4844_s3 + $0x28] sm:$0xff] %vm1523_vm2, %v2169_v63  ;;  %2900 = vrsqrt.f32 %v1917_v49  ;;  %1858 = vadd.xlane.f32.xlu1 %v1857_v40  ;;  %1855 = vadd.xlane.f32.xlu0 %v1854_v33  ;;  %v4071_v36 = vmax.f32 %v957_v16, 0.0  ;;  %v1216_v29 = vadd.f32 %v3909_v18, %v2760_v41  ;;  %v1659_v40 = vsel %vm1523_vm2, %v1440_v3, 0.0 }
 0x19c   :  { %v2889_v10 = vpop.eup %2888  ;;  %2296 = vst.msk [vmem:[%s4844_s3 + $0x20] sm:$0xff] %vm1523_vm2, %v2168_v22  ;;  %2902 = vrsqrt.f32 %v1916_v8  ;;  %v1745_v26 = vpop.xlane.xlu1 %1744  ;;  %v4074_v8 = vmax.f32 %v960_v23, 0.0  ;;  %v4088_v23 = vmax.f32 %v1213_v6, 0.0 }
 0x19d   :  { %v1742_v25 = vpop.xlane.xlu0 %1741  ;;  %v2891_v12 = vpop.eup %2890  ;;  %v2233_v33 = vmul.f32 %v2889_v10, %v3499_v20  ;;  %v1981_v63 = vmax.f32 %v1745_v26, 1e-24  ;;  %v1848_v20 = vsel %vm1523_vm2, %v1503_v13, 0.0  ;;  %v1851_v26 = vsel %vm1523_vm2, %v1504_v44, 0.0 }
 0x19e   :  { %v1980_v49 = vmax.f32 %v1742_v25, 1e-24  ;;  %v2232_v22 = vmul.f32 %v2891_v12, %v3497_v19  ;;  %v949_v19 = vadd.f32 %v3909_v18, %v948_v50  ;;  %v1207_v12 = vpop.f32.mrf.mxu1  ;;  %v1445_v41 = vmul.f32 %v4071_v36, %v4071_v36 }
 0x19f   :  { %2361 = vst.msk [vmem:[%s4844_s3 + $0x228] sm:$0xff] %vm1523_vm2, %v2233_v33  ;;  %2904 = vrsqrt.f32 %v1981_v63  ;;  %1660 = vadd.xlane.f32.xlu1 %v1659_v40  ;;  %1657 = vadd.xlane.f32.xlu0 %v1656_v27  ;;  %v2699_v63 = vpop.f32.mrf.mxu0  ;;  %v952_v50 = vadd.f32 %v3909_v18, %v951_v56  ;;  %v4096_v6 = vmax.f32 %v1216_v29, 0.0  ;;  %v1509_v29 = vmul.f32 %v4088_v23, %v4088_v23 }
 0x1a0   :  { %v2893_v16 = vpop.eup %2892  ;;  %2360 = vst.msk [vmem:[%s4844_s3 + $0x220] sm:$0xff] %vm1523_vm2, %v2232_v22  ;;  %2906 = vrsqrt.f32 %v1980_v49  ;;  %v1571_v3 = vpop.xlane.xlu1 %1570  ;;  %v1446_v49 = vmul.f32 %v4074_v8, %v4074_v8  ;;  %v1208_v40 = vadd.f32 %v3909_v18, %v1207_v12 }
 0x1a1   :  { %v1568_v10 = vpop.xlane.xlu0 %1567  ;;  %v2895_v25 = vpop.eup %2894  ;;  %v2175_v27 = vmul.f32 %v2893_v16, %v3517_v39  ;;  %v1923_v13 = vmax.f32 %v1571_v3, 1e-24  ;;  %v1205_v39 = vadd.f32 %v3909_v18, %v1204_v53  ;;  %v1510_v12 = vmul.f32 %v4096_v6, %v4096_v6 }
 0x1a2   :  { %v1922_v33 = vmax.f32 %v1568_v10, 1e-24  ;;  %v2174_v22 = vmul.f32 %v2895_v25, %v3515_v38  ;;  %v4109_v38 = vmax.f32 %v949_v19, 0.0  ;;  %v1674_v25 = vsel %vm1523_vm2, %v1445_v41, 0.0 }
 0x1a3   :  { %2303 = vst.msk [vmem:[%s4844_s3 + $0x58] sm:$0xff] %vm1523_vm2, %v2175_v27  ;;  %2908 = vrsqrt.f32 %v1923_v13  ;;  %1852 = vadd.xlane.f32.xlu1 %v1851_v26  ;;  %1849 = vadd.xlane.f32.xlu0 %v1848_v20  ;;  %v4115_v26 = vpop.f32.mrf.mxu0  ;;  %v2763_v27 = vpop.f32.mrf.mxu1  ;;  %v4119_v13 = vmax.f32 %v952_v50, 0.0 }
 0x1a4   :  { %v2897_v44 = vpop.eup %2896  ;;  %2302 = vst.msk [vmem:[%s4844_s3 + $0x50] sm:$0xff] %vm1523_vm2, %v2174_v22  ;;  %2910 = vrsqrt.f32 %v1922_v33  ;;  %v1763_v56 = vpop.xlane.xlu1 %1762  ;;  %v1677_v33 = vsel %vm1523_vm2, %v1446_v49, 0.0  ;;  %v973_v22 = vadd.f32 %v3909_v18, %v2699_v63 }
 0x1a5   :  { %v1760_v16 = vpop.xlane.xlu0 %1759  ;;  %v2899_v53 = vpop.eup %2898  ;;  %v2239_v3 = vmul.f32 %v2897_v44, %v3527_v51  ;;  %v1987_v20 = vmax.f32 %v1763_v56, 1e-24  ;;  %v4128_v51 = vmax.f32 %v1205_v39, 0.0  ;;  %v1866_v39 = vsel %vm1523_vm2, %v1509_v29, 0.0 }
 0x1a6   :  { %v1986_v10 = vmax.f32 %v1760_v16, 1e-24  ;;  %v2238_v19 = vmul.f32 %v2899_v53, %v3522_v46  ;;  %v1443_v46 = vmul.f32 %v4109_v38, %v4109_v38  ;;  %v4139_v16 = vmax.f32 %v1208_v40, 0.0 }
 0x1a7   :  { %2367 = vst.msk [vmem:[%s4844_s3 + $0x258] sm:$0xff] %vm1523_vm2, %v2239_v3  ;;  %2912 = vrsqrt.f32 %v1987_v20  ;;  %1678 = vadd.xlane.f32.xlu1 %v1677_v33  ;;  %1675 = vadd.xlane.f32.xlu0 %v1674_v25  ;;  %v2700_v20 = vpop.f32.mrf.mxu0  ;;  %v1220_v25 = vpop.f32.mrf.mxu1  ;;  %v1869_v33 = vsel %vm1523_vm2, %v1510_v12, 0.0  ;;  %v1229_v40 = vadd.f32 %v3909_v18, %v2763_v27 }
 0x1a8   :  { %v2901_v41 = vpop.eup %2900  ;;  %2366 = vst.msk [vmem:[%s4844_s3 + $0x250] sm:$0xff] %vm1523_vm2, %v2238_v19  ;;  %2914 = vrsqrt.f32 %v1986_v10  ;;  %v1565_v50 = vpop.xlane.xlu1 %1564  ;;  %v1444_v10 = vmul.f32 %v4119_v13, %v4119_v13  ;;  %v976_v63 = vadd.f32 %v3909_v18, %v2700_v20 }
 0x1a9   :  { %v1562_v49 = vpop.xlane.xlu0 %1561  ;;  %v2903_v44 = vpop.eup %2902  ;;  %v2173_v56 = vmul.f32 %v2901_v41, %v3539_v0  ;;  %v1921_v53 = vmax.f32 %v1565_v50, 1e-24  ;;  %v1507_v0 = vmul.f32 %v4128_v51, %v4128_v51  ;;  %v1668_v50 = vsel %vm1523_vm2, %v1443_v46, 0.0 }
 0x1aa   :  { %v1920_v3 = vmax.f32 %v1562_v49, 1e-24  ;;  %v2172_v19 = vmul.f32 %v2903_v44, %v3533_v57  ;;  %v4156_v57 = vmax.f32 %v973_v22, 0.0  ;;  %v2764_v20 = vpop.f32.mrf.mxu1  ;;  %v4164_v22 = vmax.f32 %v976_v63, 0.0 }
 0x1ab   :  { %2301 = vst.msk [vmem:[%s4844_s3 + $0x48] sm:$0xff] %vm1523_vm2, %v2173_v56  ;;  %2916 = vrsqrt.f32 %v1921_v53  ;;  %1870 = vadd.xlane.f32.xlu1 %v1869_v33  ;;  %1867 = vadd.xlane.f32.xlu0 %v1866_v39  ;;  %v1508_v39 = vmul.f32 %v4139_v16, %v4139_v16  ;;  %v1671_v27 = vsel %vm1523_vm2, %v1444_v10, 0.0  ;;  %v1860_v46 = vsel %vm1523_vm2, %v1507_v0, 0.0 }
 0x1ac   :  { %v2905_v29 = vpop.eup %2904  ;;  %2300 = vst.msk [vmem:[%s4844_s3 + $0x40] sm:$0xff] %vm1523_vm2, %v2172_v19  ;;  %2918 = vrsqrt.f32 %v1920_v3  ;;  %v1757_v12 = vpop.xlane.xlu1 %1756  ;;  %v1232_v3 = vadd.f32 %v3909_v18, %v2764_v20  ;;  %v965_v10 = vadd.f32 %v3909_v18, %v4115_v26  ;;  %v4181_v63 = vmax.f32 %v1229_v40, 0.0 }
 0x1ad   :  { %v1754_v41 = vpop.xlane.xlu0 %1753  ;;  %v2907_v49 = vpop.eup %2906  ;;  %v2237_v44 = vmul.f32 %v2905_v29, %v3547_v7  ;;  %v1985_v56 = vmax.f32 %v1757_v12, 1e-24 }
 0x1ae   :  { %v1984_v53 = vmax.f32 %v1754_v41, 1e-24  ;;  %v2236_v19 = vmul.f32 %v2907_v49, %v3545_v5  ;;  %v967_v7 = vpop.f32.mrf.mxu0  ;;  %v1449_v5 = vmul.f32 %v4156_v57, %v4156_v57  ;;  %v4189_v40 = vmax.f32 %v1232_v3, 0.0 }
 0x1af   :  { %2365 = vst.msk [vmem:[%s4844_s3 + $0x248] sm:$0xff] %vm1523_vm2, %v2237_v44  ;;  %2920 = vrsqrt.f32 %v1985_v56  ;;  %1672 = vadd.xlane.f32.xlu1 %v1671_v27  ;;  %1669 = vadd.xlane.f32.xlu0 %v1668_v50  ;;  %v1223_v50 = vpop.f32.mrf.mxu1  ;;  %v1863_v56 = vsel %vm1523_vm2, %v1508_v39, 0.0  ;;  %v1450_v27 = vmul.f32 %v4164_v22, %v4164_v22  ;;  %v968_v26 = vadd.f32 %v3909_v18, %v967_v7 }
 0x1b0   :  { %v2909_v33 = vpop.eup %2908  ;;  %2364 = vst.msk [vmem:[%s4844_s3 + $0x240] sm:$0xff] %vm1523_vm2, %v2236_v19  ;;  %2922 = vrsqrt.f32 %v1984_v53  ;;  %v1583_v29 = vpop.xlane.xlu1 %1582  ;;  %v1513_v53 = vmul.f32 %v4181_v63, %v4181_v63  ;;  %v1224_v3 = vadd.f32 %v3909_v18, %v1223_v50  ;;  %v1514_v50 = vmul.f32 %v4189_v40, %v4189_v40 }
 0x1b1   :  { %v1580_v12 = vpop.xlane.xlu0 %1579  ;;  %v2911_v41 = vpop.eup %2910  ;;  %v2179_v0 = vmul.f32 %v2909_v33, %v3565_v31  ;;  %v1927_v49 = vmax.f32 %v1583_v29, 1e-24  ;;  %v1221_v31 = vadd.f32 %v3909_v18, %v1220_v25 }
 0x1b2   :  { %v1926_v44 = vmax.f32 %v1580_v12, 1e-24  ;;  %v2703_v20 = vpop.f32.mrf.mxu0  ;;  %v2178_v19 = vmul.f32 %v2911_v41, %v3563_v30  ;;  %v4200_v30 = vmax.f32 %v965_v10, 0.0 }
 0x1b3   :  { %2307 = vst.msk [vmem:[%s4844_s3 + $0x78] sm:$0xff] %vm1523_vm2, %v2179_v0  ;;  %2924 = vrsqrt.f32 %v1927_v49  ;;  %1864 = vadd.xlane.f32.xlu1 %v1863_v56  ;;  %1861 = vadd.xlane.f32.xlu0 %v1860_v46  ;;  %v1686_v0 = vsel %vm1523_vm2, %v1449_v5, 0.0  ;;  %v2767_v49 = vpop.f32.mrf.mxu1  ;;  %v4210_v56 = vmax.f32 %v968_v26, 0.0 }
 0x1b4   :  { %v2913_v39 = vpop.eup %2912  ;;  %2306 = vst.msk [vmem:[%s4844_s3 + $0x70] sm:$0xff] %vm1523_vm2, %v2178_v19  ;;  %2926 = vrsqrt.f32 %v1926_v44  ;;  %v1775_v7 = vpop.xlane.xlu1 %1774  ;;  %v1689_v44 = vsel %vm1523_vm2, %v1450_v27, 0.0  ;;  %v989_v19 = vadd.f32 %v3909_v18, %v2703_v20 }
 0x1b5   :  { %v1772_v33 = vpop.xlane.xlu0 %1771  ;;  %v2915_v25 = vpop.eup %2914  ;;  %v2243_v29 = vmul.f32 %v2913_v39, %v3575_v47  ;;  %v1991_v46 = vmax.f32 %v1775_v7, 1e-24  ;;  %v4219_v47 = vmax.f32 %v1221_v31, 0.0  ;;  %v1878_v31 = vsel %vm1523_vm2, %v1513_v53, 0.0 }
 0x1b6   :  { %v1990_v12 = vmax.f32 %v1772_v33, 1e-24  ;;  %v4206_v41 = vpop.f32.mrf.mxu0  ;;  %v2242_v10 = vmul.f32 %v2915_v25, %v3570_v37  ;;  %v1447_v37 = vmul.f32 %v4200_v30, %v4200_v30  ;;  %v4230_v33 = vmax.f32 %v1224_v3, 0.0 }
 0x1b7   :  { %2371 = vst.msk [vmem:[%s4844_s3 + $0x278] sm:$0xff] %vm1523_vm2, %v2243_v29  ;;  %2928 = vrsqrt.f32 %v1991_v46  ;;  %1690 = vadd.xlane.f32.xlu1 %v1689_v44  ;;  %1687 = vadd.xlane.f32.xlu0 %v1686_v0  ;;  %v1236_v0 = vpop.f32.mrf.mxu1  ;;  %v1881_v44 = vsel %vm1523_vm2, %v1514_v50, 0.0  ;;  %v1245_v3 = vadd.f32 %v3909_v18, %v2767_v49 }
 0x1b8   :  { %v2917_v5 = vpop.eup %2916  ;;  %2370 = vst.msk [vmem:[%s4844_s3 + $0x270] sm:$0xff] %vm1523_vm2, %v2242_v10  ;;  %2930 = vrsqrt.f32 %v1990_v12  ;;  %v1577_v27 = vpop.xlane.xlu1 %1576  ;;  %v1448_v12 = vmul.f32 %v4210_v56, %v4210_v56 }
 0x1b9   :  { %v1574_v26 = vpop.xlane.xlu0 %1573  ;;  %v2919_v39 = vpop.eup %2918  ;;  %v2177_v7 = vmul.f32 %v2917_v5, %v3587_v62  ;;  %v1925_v25 = vmax.f32 %v1577_v27, 1e-24  ;;  %v1511_v62 = vmul.f32 %v4219_v47, %v4219_v47  ;;  %v1680_v27 = vsel %vm1523_vm2, %v1447_v37, 0.0 }
 0x1ba   :  { %v1924_v29 = vmax.f32 %v1574_v26, 1e-24  ;;  %v2704_v46 = vpop.f32.mrf.mxu0  ;;  %v2176_v10 = vmul.f32 %v2919_v39, %v3581_v52  ;;  %v4247_v52 = vmax.f32 %v989_v19, 0.0 }
 0x1bb   :  { %v992_v20 = vadd.f32 %v3909_v18, %v2704_v46  ;;  %2305 = vst.msk [vmem:[%s4844_s3 + $0x68] sm:$0xff] %vm1523_vm2, %v2177_v7  ;;  %2932 = vrsqrt.f32 %v1925_v25  ;;  %1882 = vadd.xlane.f32.xlu1 %v1881_v44  ;;  %1879 = vadd.xlane.f32.xlu0 %v1878_v31  ;;  %v1512_v31 = vmul.f32 %v4230_v33, %v4230_v33  ;;  %v2768_v44 = vpop.f32.mrf.mxu1 }
 0x1bc   :  { %v2921_v53 = vpop.eup %2920  ;;  %2304 = vst.msk [vmem:[%s4844_s3 + $0x60] sm:$0xff] %vm1523_vm2, %v2176_v10  ;;  %2934 = vrsqrt.f32 %v1924_v29  ;;  %v1769_v50 = vpop.xlane.xlu1 %1768  ;;  %v1248_v49 = vadd.f32 %v3909_v18, %v2768_v44  ;;  %v1683_v29 = vsel %vm1523_vm2, %v1448_v12, 0.0  ;;  %v981_v12 = vadd.f32 %v3909_v18, %v4206_v41 }
 0x1bd   :  { %v1766_v5 = vpop.xlane.xlu0 %1765  ;;  %v2923_v26 = vpop.eup %2922  ;;  %v2241_v39 = vmul.f32 %v2921_v53, %v3595_v9  ;;  %v1989_v25 = vmax.f32 %v1769_v50, 1e-24  ;;  %v4255_v10 = vmax.f32 %v992_v20, 0.0  ;;  %v1872_v9 = vsel %vm1523_vm2, %v1511_v62, 0.0 }
 0x1be   :  { %v983_v7 = vpop.f32.mrf.mxu0  ;;  %v1988_v46 = vmax.f32 %v1766_v5, 1e-24  ;;  %v2240_v19 = vmul.f32 %v2923_v26, %v3593_v4  ;;  %v1453_v4 = vmul.f32 %v4247_v52, %v4247_v52  ;;  %v4272_v20 = vmax.f32 %v1245_v3, 0.0  ;;  %v1239_v26 = vpop.f32.mrf.mxu1 }
 0x1bf   :  { %2369 = vst.msk [vmem:[%s4844_s3 + $0x268] sm:$0xff] %vm1523_vm2, %v2241_v39  ;;  %2936 = vrsqrt.f32 %v1989_v25  ;;  %1684 = vadd.xlane.f32.xlu1 %v1683_v29  ;;  %1681 = vadd.xlane.f32.xlu0 %v1680_v27  ;;  %v1875_v44 = vsel %vm1523_vm2, %v1512_v31, 0.0  ;;  %v1454_v29 = vmul.f32 %v4255_v10, %v4255_v10  ;;  %v984_v41 = vadd.f32 %v3909_v18, %v983_v7 }
 0x1c0   :  { %v2707_v37 = vpop.f32.mrf.mxu0  ;;  %v2925_v53 = vpop.eup %2924  ;;  %2368 = vst.msk [vmem:[%s4844_s3 + $0x260] sm:$0xff] %vm1523_vm2, %v2240_v19  ;;  %4932 = vst [vmem:[#allocation44_spill] sm:$0xff] %v4272_v20  ;;  %2938 = vrsqrt.f32 %v1988_v46  ;;  %v4280_v3 = vmax.f32 %v1248_v49, 0.0  ;;  %v4293_v7 = vmax.f32 %v981_v12, 0.0  ;;  %v1517_v49 = vmul.f32 %v4272_v20, %v4272_v20 }
 0x1c1   :  { %v1595_v50 = vpop.xlane.xlu1 %1594  ;;  %v1592_v5 = vpop.xlane.xlu0 %1591  ;;  %v2183_v62 = vmul.f32 %v2925_v53, %v3613_v35  ;;  %v1237_v35 = vadd.f32 %v3909_v18, %v1236_v0  ;;  %v1240_v53 = vadd.f32 %v3909_v18, %v1239_v26  ;;  %v1701_v20 = vsel %vm1523_vm2, %v1454_v29, 0.0 }
 0x1c2   :  { %v2927_v27 = vpop.eup %2926  ;;  %v1931_v39 = vmax.f32 %v1595_v50, 1e-24  ;;  %v1930_v25 = vmax.f32 %v1592_v5, 1e-24  ;;  %v996_v31 = vpop.f32.mrf.mxu0  ;;  %v1518_v12 = vmul.f32 %v4280_v3, %v4280_v3  ;;  %v1005_v29 = vadd.f32 %v3909_v18, %v2707_v37 }
 0x1c3   :  { %v2182_v19 = vmul.f32 %v2927_v27, %v3611_v34  ;;  %2311 = vst.msk [vmem:[%s4844_s3 + $0x98] sm:$0xff] %vm1523_vm2, %v2183_v62  ;;  %1876 = vadd.xlane.f32.xlu1 %v1875_v44  ;;  %1873 = vadd.xlane.f32.xlu0 %v1872_v9  ;;  %v4287_v46 = vpop.f32.mrf.mxu1  ;;  %v4310_v26 = vmax.f32 %v1237_v35, 0.0 }
 0x1c4   :  { %2940 = vrsqrt.f32 %v1931_v39  ;;  %v2929_v34 = vpop.eup %2928  ;;  %v1698_v39 = vsel %vm1523_vm2, %v1453_v4, 0.0  ;;  %v1893_v37 = vsel %vm1523_vm2, %v1518_v12, 0.0  ;;  %v997_v12 = vadd.f32 %v3909_v18, %v996_v31 }
 0x1c5   :  { %2310 = vst.msk [vmem:[%s4844_s3 + $0x90] sm:$0xff] %vm1523_vm2, %v2182_v19  ;;  %2942 = vrsqrt.f32 %v1930_v25  ;;  %v1787_v0 = vpop.xlane.xlu1 %1786  ;;  %v1784_v50 = vpop.xlane.xlu0 %1783  ;;  %v2247_v5 = vmul.f32 %v2929_v34, %v3623_v54  ;;  %v4301_v19 = vmax.f32 %v984_v41, 0.0  ;;  %4933 = vst [vmem:[#allocation45_spill] sm:$0xff] %v4310_v26  ;;  %v1451_v25 = vmul.f32 %v4293_v7, %v4293_v7 }
 0x1c6   :  { %v2931_v9 = vpop.eup %2930  ;;  %v1995_v27 = vmax.f32 %v1787_v0, 1e-24  ;;  %v1994_v62 = vmax.f32 %v1784_v50, 1e-24  ;;  %v2708_v54 = vpop.f32.mrf.mxu0  ;;  %v1890_v34 = vsel %vm1523_vm2, %v1517_v49, 0.0  ;;  %v4321_v50 = vmax.f32 %v1240_v53, 0.0 }
 0x1c7   :  { %v2246_v44 = vmul.f32 %v2931_v9, %v3618_v45  ;;  %2375 = vst.msk [vmem:[%s4844_s3 + $0x298] sm:$0xff] %vm1523_vm2, %v2247_v5  ;;  %1702 = vadd.xlane.f32.xlu1 %v1701_v20  ;;  %1699 = vadd.xlane.f32.xlu0 %v1698_v39  ;;  %v1252_v4 = vpop.f32.mrf.mxu1  ;;  %v1452_v39 = vmul.f32 %v4301_v19, %v4301_v19 }
 0x1c8   :  { %2944 = vrsqrt.f32 %v1995_v27  ;;  %v2933_v45 = vpop.eup %2932  ;;  %v999_v49 = vpop.f32.mrf.mxu0 }
 0x1c9   :  { %2374 = vst.msk [vmem:[%s4844_s3 + $0x290] sm:$0xff] %vm1523_vm2, %v2246_v44  ;;  %2946 = vrsqrt.f32 %v1994_v62  ;;  %v1589_v41 = vpop.xlane.xlu1 %1588  ;;  %v1586_v35 = vpop.xlane.xlu0 %1585  ;;  %v2181_v0 = vmul.f32 %v2933_v45, %v3635_v17  ;;  %v1008_v62 = vadd.f32 %v3909_v18, %v2708_v54  ;;  %v1515_v17 = vmul.f32 %v4310_v26, %v4310_v26 }
 0x1ca   :  { %v2935_v20 = vpop.eup %2934  ;;  %v1929_v9 = vmax.f32 %v1589_v41, 1e-24  ;;  %v1928_v5 = vmax.f32 %v1586_v35, 1e-24  ;;  %v4338_v44 = vmax.f32 %v1005_v29, 0.0  ;;  %v1692_v41 = vsel %vm1523_vm2, %v1451_v25, 0.0 }
 0x1cb   :  { %v2180_v27 = vmul.f32 %v2935_v20, %v3629_v58  ;;  %2309 = vst.msk [vmem:[%s4844_s3 + $0x88] sm:$0xff] %vm1523_vm2, %v2181_v0  ;;  %1894 = vadd.xlane.f32.xlu1 %v1893_v37  ;;  %1891 = vadd.xlane.f32.xlu0 %v1890_v34  ;;  %v2772_v58 = vpop.f32.mrf.mxu1  ;;  %v1516_v34 = vmul.f32 %v4321_v50, %v4321_v50  ;;  %v4935_v37 = vld [vmem:[#allocation2_spill] sm:$0xff]  ;;  %v1695_v31 = vsel %vm1523_vm2, %v1452_v39, 0.0  ;;  %v1884_v25 = vsel %vm1523_vm2, %v1515_v17, 0.0 }
 0x1cc   :  { %2948 = vrsqrt.f32 %v1929_v9  ;;  %v2937_v53 = vpop.eup %2936  ;;  %4934 = vst [vmem:[#allocation46_spill] sm:$0xff] %v4338_v44  ;;  %v1000_v29 = vadd.f32 %v3909_v18, %v999_v49  ;;  %v1457_v39 = vmul.f32 %v4338_v44, %v4338_v44  ;;  %v1253_v49 = vadd.f32 %v3909_v18, %v1252_v4 }
 0x1cd   :  { %2308 = vst.msk [vmem:[%s4844_s3 + $0x80] sm:$0xff] %vm1523_vm2, %v2180_v27  ;;  %2950 = vrsqrt.f32 %v1928_v5  ;;  %v1781_v54 = vpop.xlane.xlu1 %1780  ;;  %v1778_v45 = vpop.xlane.xlu0 %1777  ;;  %v2245_v20 = vmul.f32 %v2937_v53, %v3643_v11  ;;  %v4346_v27 = vmax.f32 %v1008_v62, 0.0  ;;  %v4361_v62 = vmax.f32 %v997_v12, 0.0 }
 0x1ce   :  { %v2939_v35 = vpop.eup %2938  ;;  %v1993_v0 = vmax.f32 %v1781_v54, 1e-24  ;;  %v1992_v9 = vmax.f32 %v1778_v45, 1e-24  ;;  %v1255_v11 = vpop.f32.mrf.mxu1  ;;  %v4369_v44 = vmax.f32 %v1000_v29, 0.0  ;;  %v1261_v4 = vadd.f32 %v3909_v18, %v4287_v46 }
 0x1cf   :  { %v2244_v26 = vmul.f32 %v2939_v35, %v4935_v37  ;;  %2373 = vst.msk [vmem:[%s4844_s3 + $0x288] sm:$0xff] %vm1523_vm2, %v2245_v20  ;;  %1696 = vadd.xlane.f32.xlu1 %v1695_v31  ;;  %1693 = vadd.xlane.f32.xlu0 %v1692_v41  ;;  %v4936_v41 = vld [vmem:[#allocation4_spill] sm:$0xff]  ;;  %v4937_v37 = vld [vmem:[#allocation3_spill] sm:$0xff]  ;;  %v1256_v12 = vadd.f32 %v3909_v18, %v1255_v11  ;;  %v4384_v29 = vmax.f32 %v1253_v49, 0.0 }
 0x1d0   :  { %2952 = vrsqrt.f32 %v1993_v0  ;;  %v1887_v0 = vsel %vm1523_vm2, %v1516_v34, 0.0  ;;  %v1264_v11 = vadd.f32 %v3909_v18, %v2772_v58  ;;  %v4403_v58 = vmax.f32 %v1261_v4, 0.0 }
 0x1d1   :  { %v2941_v5 = vpop.eup %2940  ;;  %2372 = vst.msk [vmem:[%s4844_s3 + $0x280] sm:$0xff] %vm1523_vm2, %v2244_v26  ;;  %2954 = vrsqrt.f32 %v1992_v9  ;;  %v1607_v53 = vpop.xlane.xlu1 %1606  ;;  %v1458_v26 = vmul.f32 %v4346_v27, %v4346_v27  ;;  %v1455_v9 = vmul.f32 %v4361_v62, %v4361_v62 }
 0x1d2   :  { %v1604_v54 = vpop.xlane.xlu0 %1603  ;;  %v2943_v45 = vpop.eup %2942  ;;  %v2187_v35 = vmul.f32 %v2941_v5, %v4936_v41  ;;  %v1935_v17 = vmax.f32 %v1607_v53, 1e-24 }
 0x1d3   :  { %v1934_v20 = vmax.f32 %v1604_v54, 1e-24  ;;  %v2186_v31 = vmul.f32 %v2943_v45, %v4937_v37  ;;  %1888 = vadd.xlane.f32.xlu1 %v1887_v0  ;;  %1885 = vadd.xlane.f32.xlu0 %v1884_v25  ;;  %v4938_v54 = vld [vmem:[#allocation6_spill] sm:$0xff]  ;;  %v1456_v37 = vmul.f32 %v4369_v44, %v4369_v44  ;;  %v1713_v49 = vsel %vm1523_vm2, %v1458_v26, 0.0 }
 0x1d4   :  { %2315 = vst.msk [vmem:[%s4844_s3 + $0xb8] sm:$0xff] %vm1523_vm2, %v2187_v35  ;;  %2956 = vrsqrt.f32 %v1935_v17  ;;  %v1710_v35 = vsel %vm1523_vm2, %v1457_v39, 0.0  ;;  %v4939_v17 = vld [vmem:[#allocation5_spill] sm:$0xff]  ;;  %v4405_v39 = vmax.f32 %v1264_v11, 0.0  ;;  %v1704_v11 = vsel %vm1523_vm2, %v1455_v9, 0.0 }
 0x1d5   :  { %v2945_v34 = vpop.eup %2944  ;;  %2314 = vst.msk [vmem:[%s4844_s3 + $0xb0] sm:$0xff] %vm1523_vm2, %v2186_v31  ;;  %2958 = vrsqrt.f32 %v1934_v20  ;;  %v1799_v5 = vpop.xlane.xlu1 %1798  ;;  %v4392_v31 = vmax.f32 %v1256_v12, 0.0  ;;  %v1707_v4 = vsel %vm1523_vm2, %v1456_v37, 0.0  ;;  %v1521_v9 = vmul.f32 %v4403_v58, %v4403_v58 }
 0x1d6   :  { %v1796_v53 = vpop.xlane.xlu0 %1795  ;;  %v2947_v46 = vpop.eup %2946  ;;  %v2251_v45 = vmul.f32 %v2945_v34, %v4938_v54  ;;  %v1999_v25 = vmax.f32 %v1799_v5, 1e-24  ;;  %v4940_v34 = vld [vmem:[#allocation8_spill] sm:$0xff] }
 0x1d7   :  { %v1998_v41 = vmax.f32 %v1796_v53, 1e-24  ;;  %v2250_v0 = vmul.f32 %v2947_v46, %v4939_v17  ;;  %1714 = vadd.xlane.f32.xlu1 %v1713_v49  ;;  %1711 = vadd.xlane.f32.xlu0 %v1710_v35  ;;  %v1519_v53 = vmul.f32 %v4384_v29, %v4384_v29  ;;  %v1520_v35 = vmul.f32 %v4392_v31, %v4392_v31  ;;  %v4942_v49 = vld [vmem:[#allocation10_spill] sm:$0xff] }
 0x1d8   :  { %2379 = vst.msk [vmem:[%s4844_s3 + $0x2b8] sm:$0xff] %vm1523_vm2, %v2251_v45  ;;  %2960 = vrsqrt.f32 %v1999_v25  ;;  %v4941_v45 = vld [vmem:[#allocation7_spill] sm:$0xff] }
 0x1d9   :  { %v2949_v18 = vpop.eup %2948  ;;  %2378 = vst.msk [vmem:[%s4844_s3 + $0x2b0] sm:$0xff] %vm1523_vm2, %v2250_v0  ;;  %2962 = vrsqrt.f32 %v1998_v41  ;;  %v1601_v20 = vpop.xlane.xlu1 %1600 }
 0x1da   :  { %v1598_v26 = vpop.xlane.xlu0 %1597  ;;  %v2951_v12 = vpop.eup %2950  ;;  %v2185_v5 = vmul.f32 %v2949_v18, %v4940_v34  ;;  %v1933_v46 = vmax.f32 %v1601_v20, 1e-24 }
 0x1db   :  { %v1932_v54 = vmax.f32 %v1598_v26, 1e-24  ;;  %v2184_v25 = vmul.f32 %v2951_v12, %v4941_v45  ;;  %1708 = vadd.xlane.f32.xlu1 %v1707_v4  ;;  %1705 = vadd.xlane.f32.xlu0 %v1704_v11  ;;  %v4943_v12 = vld [vmem:[#allocation9_spill] sm:$0xff]  ;;  %v1896_v45 = vsel %vm1523_vm2, %v1519_v53, 0.0  ;;  %v4944_v11 = vld [vmem:[#allocation12_spill] sm:$0xff] }
 0x1dc   :  { %2313 = vst.msk [vmem:[%s4844_s3 + $0xa8] sm:$0xff] %vm1523_vm2, %v2185_v5  ;;  %2964 = vrsqrt.f32 %v1933_v46  ;;  %v1522_v5 = vmul.f32 %v4405_v39, %v4405_v39  ;;  %v1899_v46 = vsel %vm1523_vm2, %v1520_v35, 0.0 }
 0x1dd   :  { %v2953_v41 = vpop.eup %2952  ;;  %2312 = vst.msk [vmem:[%s4844_s3 + $0xa0] sm:$0xff] %vm1523_vm2, %v2184_v25  ;;  %2966 = vrsqrt.f32 %v1932_v54  ;;  %v1793_v17 = vpop.xlane.xlu1 %1792 }
 0x1de   :  { %v1790_v0 = vpop.xlane.xlu0 %1789  ;;  %v2955_v37 = vpop.eup %2954  ;;  %v2249_v18 = vmul.f32 %v2953_v41, %v4942_v49  ;;  %v1997_v20 = vmax.f32 %v1793_v17, 1e-24  ;;  %v1905_v49 = vsel %vm1523_vm2, %v1522_v5, 0.0  ;;  %v4946_v5 = vld [vmem:[#allocation14_spill] sm:$0xff] }
 0x1df   :  { %v1996_v26 = vmax.f32 %v1790_v0, 1e-24  ;;  %v2248_v34 = vmul.f32 %v2955_v37, %v4943_v12  ;;  %1900 = vadd.xlane.f32.xlu1 %v1899_v46  ;;  %1897 = vadd.xlane.f32.xlu0 %v1896_v45  ;;  %v4945_v0 = vld [vmem:[#allocation11_spill] sm:$0xff] }
 0x1e0   :  { %2377 = vst.msk [vmem:[%s4844_s3 + $0x2a8] sm:$0xff] %vm1523_vm2, %v2249_v18  ;;  %2968 = vrsqrt.f32 %v1997_v20  ;;  %v1902_v18 = vsel %vm1523_vm2, %v1521_v9, 0.0 }
 0x1e1   :  { %v2957_v54 = vpop.eup %2956  ;;  %2376 = vst.msk [vmem:[%s4844_s3 + $0x2a0] sm:$0xff] %vm1523_vm2, %v2248_v34  ;;  %2970 = vrsqrt.f32 %v1996_v26  ;;  %v1619_v25 = vpop.xlane.xlu1 %1618 }
 0x1e2   :  { %v1616_v4 = vpop.xlane.xlu0 %1615  ;;  %v2959_v35 = vpop.eup %2958  ;;  %v2191_v53 = vmul.f32 %v2957_v54, %v4944_v11  ;;  %v1939_v41 = vmax.f32 %v1619_v25, 1e-24  ;;  %v4947_v54 = vld [vmem:[#allocation13_spill] sm:$0xff] }
 0x1e3   :  { %v1938_v17 = vmax.f32 %v1616_v4, 1e-24  ;;  %v2190_v37 = vmul.f32 %v2959_v35, %v4945_v0  ;;  %1906 = vadd.xlane.f32.xlu1 %v1905_v49  ;;  %1903 = vadd.xlane.f32.xlu0 %v1902_v18  ;;  %v4949_v49 = vld [vmem:[#allocation15_spill] sm:$0xff] }
 0x1e4   :  { %2319 = vst.msk [vmem:[%s4844_s3 + $0xd8] sm:$0xff] %vm1523_vm2, %v2191_v53  ;;  %2972 = vrsqrt.f32 %v1939_v41  ;;  %v4948_v41 = vld [vmem:[#allocation16_spill] sm:$0xff] }
 0x1e5   :  { %v2961_v20 = vpop.eup %2960  ;;  %2318 = vst.msk [vmem:[%s4844_s3 + $0xd0] sm:$0xff] %vm1523_vm2, %v2190_v37  ;;  %2974 = vrsqrt.f32 %v1938_v17  ;;  %v1811_v26 = vpop.xlane.xlu1 %1810 }
 0x1e6   :  { %v1808_v12 = vpop.xlane.xlu0 %1807  ;;  %v2963_v34 = vpop.eup %2962  ;;  %v2255_v9 = vmul.f32 %v2961_v20, %v4946_v5  ;;  %v2003_v46 = vmax.f32 %v1811_v26, 1e-24  ;;  %v4950_v5 = vld [vmem:[#allocation18_spill] sm:$0xff] }
 0x1e7   :  { %v2002_v45 = vmax.f32 %v1808_v12, 1e-24  ;;  %v2254_v25 = vmul.f32 %v2963_v34, %v4947_v54  ;;  %v4951_v54 = vld [vmem:[#allocation17_spill] sm:$0xff] }
 0x1e8   :  { %2383 = vst.msk [vmem:[%s4844_s3 + $0x2d8] sm:$0xff] %vm1523_vm2, %v2255_v9  ;;  %2976 = vrsqrt.f32 %v2003_v46 }
 0x1e9   :  { %v2965_v4 = vpop.eup %2964  ;;  %2382 = vst.msk [vmem:[%s4844_s3 + $0x2d0] sm:$0xff] %vm1523_vm2, %v2254_v25  ;;  %2978 = vrsqrt.f32 %v2002_v45  ;;  %v1613_v35 = vpop.xlane.xlu1 %1612 }
 0x1ea   :  { %v1610_v11 = vpop.xlane.xlu0 %1609  ;;  %v2967_v53 = vpop.eup %2966  ;;  %v2189_v17 = vmul.f32 %v2965_v4, %v4948_v41  ;;  %v1937_v0 = vmax.f32 %v1613_v35, 1e-24  ;;  %v4952_v41 = vld [vmem:[#allocation20_spill] sm:$0xff] }
 0x1eb   :  { %v1936_v37 = vmax.f32 %v1610_v11, 1e-24  ;;  %v2188_v18 = vmul.f32 %v2967_v53, %v4949_v49  ;;  %v4953_v49 = vld [vmem:[#allocation19_spill] sm:$0xff] }
 0x1ec   :  { %2317 = vst.msk [vmem:[%s4844_s3 + $0xc8] sm:$0xff] %vm1523_vm2, %v2189_v17  ;;  %2980 = vrsqrt.f32 %v1937_v0 }
 0x1ed   :  { %v2969_v20 = vpop.eup %2968  ;;  %2316 = vst.msk [vmem:[%s4844_s3 + $0xc0] sm:$0xff] %vm1523_vm2, %v2188_v18  ;;  %2982 = vrsqrt.f32 %v1936_v37  ;;  %v1805_v26 = vpop.xlane.xlu1 %1804 }
 0x1ee   :  { %v1802_v12 = vpop.xlane.xlu0 %1801  ;;  %v2971_v34 = vpop.eup %2970  ;;  %v2253_v9 = vmul.f32 %v2969_v20, %v4950_v5  ;;  %v2001_v46 = vmax.f32 %v1805_v26, 1e-24  ;;  %v4954_v5 = vld [vmem:[#allocation22_spill] sm:$0xff] }
 0x1ef   :  { %v2000_v45 = vmax.f32 %v1802_v12, 1e-24  ;;  %v2252_v25 = vmul.f32 %v2971_v34, %v4951_v54  ;;  %v4955_v54 = vld [vmem:[#allocation21_spill] sm:$0xff] }
 0x1f0   :  { %2381 = vst.msk [vmem:[%s4844_s3 + $0x2c8] sm:$0xff] %vm1523_vm2, %v2253_v9  ;;  %2984 = vrsqrt.f32 %v2001_v46 }
 0x1f1   :  { %v2973_v4 = vpop.eup %2972  ;;  %2380 = vst.msk [vmem:[%s4844_s3 + $0x2c0] sm:$0xff] %vm1523_vm2, %v2252_v25  ;;  %2986 = vrsqrt.f32 %v2000_v45  ;;  %v1631_v35 = vpop.xlane.xlu1 %1630 }
 0x1f2   :  { %v1628_v11 = vpop.xlane.xlu0 %1627  ;;  %v2975_v53 = vpop.eup %2974  ;;  %v2195_v17 = vmul.f32 %v2973_v4, %v4952_v41  ;;  %v1943_v0 = vmax.f32 %v1631_v35, 1e-24  ;;  %v4956_v41 = vld [vmem:[#allocation24_spill] sm:$0xff] }
 0x1f3   :  { %v1942_v37 = vmax.f32 %v1628_v11, 1e-24  ;;  %v2194_v18 = vmul.f32 %v2975_v53, %v4953_v49  ;;  %v4957_v49 = vld [vmem:[#allocation23_spill] sm:$0xff] }
 0x1f4   :  { %2323 = vst.msk [vmem:[%s4844_s3 + $0xf8] sm:$0xff] %vm1523_vm2, %v2195_v17  ;;  %2988 = vrsqrt.f32 %v1943_v0 }
 0x1f5   :  { %v2977_v20 = vpop.eup %2976  ;;  %2322 = vst.msk [vmem:[%s4844_s3 + $0xf0] sm:$0xff] %vm1523_vm2, %v2194_v18  ;;  %2990 = vrsqrt.f32 %v1942_v37  ;;  %v1823_v26 = vpop.xlane.xlu1 %1822 }
 0x1f6   :  { %v1820_v12 = vpop.xlane.xlu0 %1819  ;;  %v2979_v34 = vpop.eup %2978  ;;  %v2259_v9 = vmul.f32 %v2977_v20, %v4954_v5  ;;  %v2007_v46 = vmax.f32 %v1823_v26, 1e-24  ;;  %v4958_v5 = vld [vmem:[#allocation26_spill] sm:$0xff] }
 0x1f7   :  { %v2006_v45 = vmax.f32 %v1820_v12, 1e-24  ;;  %v2258_v25 = vmul.f32 %v2979_v34, %v4955_v54  ;;  %v4959_v54 = vld [vmem:[#allocation25_spill] sm:$0xff] }
 0x1f8   :  { %2387 = vst.msk [vmem:[%s4844_s3 + $0x2f8] sm:$0xff] %vm1523_vm2, %v2259_v9  ;;  %2992 = vrsqrt.f32 %v2007_v46 }
 0x1f9   :  { %v2981_v4 = vpop.eup %2980  ;;  %2386 = vst.msk [vmem:[%s4844_s3 + $0x2f0] sm:$0xff] %vm1523_vm2, %v2258_v25  ;;  %2994 = vrsqrt.f32 %v2006_v45  ;;  %v1625_v35 = vpop.xlane.xlu1 %1624 }
 0x1fa   :  { %v1622_v11 = vpop.xlane.xlu0 %1621  ;;  %v2983_v53 = vpop.eup %2982  ;;  %v2193_v17 = vmul.f32 %v2981_v4, %v4956_v41  ;;  %v1941_v0 = vmax.f32 %v1625_v35, 1e-24  ;;  %v4960_v41 = vld [vmem:[#allocation28_spill] sm:$0xff] }
 0x1fb   :  { %v1940_v37 = vmax.f32 %v1622_v11, 1e-24  ;;  %v2192_v18 = vmul.f32 %v2983_v53, %v4957_v49  ;;  %v4961_v49 = vld [vmem:[#allocation27_spill] sm:$0xff] }
 0x1fc   :  { %2321 = vst.msk [vmem:[%s4844_s3 + $0xe8] sm:$0xff] %vm1523_vm2, %v2193_v17  ;;  %2996 = vrsqrt.f32 %v1941_v0 }
 0x1fd   :  { %v2985_v20 = vpop.eup %2984  ;;  %2320 = vst.msk [vmem:[%s4844_s3 + $0xe0] sm:$0xff] %vm1523_vm2, %v2192_v18  ;;  %2998 = vrsqrt.f32 %v1940_v37  ;;  %v1817_v26 = vpop.xlane.xlu1 %1816 }
 0x1fe   :  { %v1814_v12 = vpop.xlane.xlu0 %1813  ;;  %v2987_v34 = vpop.eup %2986  ;;  %v2257_v9 = vmul.f32 %v2985_v20, %v4958_v5  ;;  %v2005_v46 = vmax.f32 %v1817_v26, 1e-24  ;;  %v4962_v5 = vld [vmem:[#allocation30_spill] sm:$0xff] }
 0x1ff   :  { %v2004_v45 = vmax.f32 %v1814_v12, 1e-24  ;;  %v2256_v25 = vmul.f32 %v2987_v34, %v4959_v54  ;;  %v4963_v54 = vld [vmem:[#allocation29_spill] sm:$0xff] }
 0x200   :  { %2385 = vst.msk [vmem:[%s4844_s3 + $0x2e8] sm:$0xff] %vm1523_vm2, %v2257_v9  ;;  %3000 = vrsqrt.f32 %v2005_v46 }
 0x201   :  { %v2989_v4 = vpop.eup %2988  ;;  %2384 = vst.msk [vmem:[%s4844_s3 + $0x2e0] sm:$0xff] %vm1523_vm2, %v2256_v25  ;;  %3002 = vrsqrt.f32 %v2004_v45  ;;  %v1643_v35 = vpop.xlane.xlu1 %1642 }
 0x202   :  { %v1640_v11 = vpop.xlane.xlu0 %1639  ;;  %v2991_v53 = vpop.eup %2990  ;;  %v2199_v17 = vmul.f32 %v2989_v4, %v4960_v41  ;;  %v1947_v0 = vmax.f32 %v1643_v35, 1e-24  ;;  %v4964_v41 = vld [vmem:[#allocation32_spill] sm:$0xff] }
 0x203   :  { %v1946_v37 = vmax.f32 %v1640_v11, 1e-24  ;;  %v2198_v18 = vmul.f32 %v2991_v53, %v4961_v49  ;;  %v4965_v49 = vld [vmem:[#allocation31_spill] sm:$0xff] }
 0x204   :  { %2327 = vst.msk [vmem:[%s4844_s3 + $0x118] sm:$0xff] %vm1523_vm2, %v2199_v17  ;;  %3004 = vrsqrt.f32 %v1947_v0 }
 0x205   :  { %v2993_v20 = vpop.eup %2992  ;;  %2326 = vst.msk [vmem:[%s4844_s3 + $0x110] sm:$0xff] %vm1523_vm2, %v2198_v18  ;;  %3006 = vrsqrt.f32 %v1946_v37  ;;  %v1835_v26 = vpop.xlane.xlu1 %1834 }
 0x206   :  { %v1832_v12 = vpop.xlane.xlu0 %1831  ;;  %v2995_v34 = vpop.eup %2994  ;;  %v2263_v9 = vmul.f32 %v2993_v20, %v4962_v5  ;;  %v2011_v46 = vmax.f32 %v1835_v26, 1e-24  ;;  %v4966_v5 = vld [vmem:[#allocation34_spill] sm:$0xff] }
 0x207   :  { %v2010_v45 = vmax.f32 %v1832_v12, 1e-24  ;;  %v2262_v25 = vmul.f32 %v2995_v34, %v4963_v54  ;;  %v4967_v54 = vld [vmem:[#allocation33_spill] sm:$0xff] }
 0x208   :  { %2391 = vst.msk [vmem:[%s4844_s3 + $0x318] sm:$0xff] %vm1523_vm2, %v2263_v9  ;;  %3008 = vrsqrt.f32 %v2011_v46 }
 0x209   :  { %v2997_v4 = vpop.eup %2996  ;;  %2390 = vst.msk [vmem:[%s4844_s3 + $0x310] sm:$0xff] %vm1523_vm2, %v2262_v25  ;;  %3010 = vrsqrt.f32 %v2010_v45  ;;  %v1637_v35 = vpop.xlane.xlu1 %1636 }
 0x20a   :  { %v1634_v11 = vpop.xlane.xlu0 %1633  ;;  %v2999_v53 = vpop.eup %2998  ;;  %v2197_v17 = vmul.f32 %v2997_v4, %v4964_v41  ;;  %v1945_v0 = vmax.f32 %v1637_v35, 1e-24  ;;  %v4968_v41 = vld [vmem:[#allocation36_spill] sm:$0xff] }
 0x20b   :  { %v1944_v37 = vmax.f32 %v1634_v11, 1e-24  ;;  %v2196_v18 = vmul.f32 %v2999_v53, %v4965_v49  ;;  %v4969_v49 = vld [vmem:[#allocation35_spill] sm:$0xff] }
 0x20c   :  { %2325 = vst.msk [vmem:[%s4844_s3 + $0x108] sm:$0xff] %vm1523_vm2, %v2197_v17  ;;  %3012 = vrsqrt.f32 %v1945_v0 }
 0x20d   :  { %v3001_v20 = vpop.eup %3000  ;;  %2324 = vst.msk [vmem:[%s4844_s3 + $0x100] sm:$0xff] %vm1523_vm2, %v2196_v18  ;;  %3014 = vrsqrt.f32 %v1944_v37  ;;  %v1829_v26 = vpop.xlane.xlu1 %1828 }
 0x20e   :  { %v1826_v12 = vpop.xlane.xlu0 %1825  ;;  %v3003_v34 = vpop.eup %3002  ;;  %v2261_v9 = vmul.f32 %v3001_v20, %v4966_v5  ;;  %v2009_v46 = vmax.f32 %v1829_v26, 1e-24  ;;  %v4970_v5 = vld [vmem:[#allocation38_spill] sm:$0xff] }
 0x20f   :  { %v2008_v45 = vmax.f32 %v1826_v12, 1e-24  ;;  %v2260_v25 = vmul.f32 %v3003_v34, %v4967_v54  ;;  %v4971_v54 = vld [vmem:[#allocation37_spill] sm:$0xff] }
 0x210   :  { %2389 = vst.msk [vmem:[%s4844_s3 + $0x308] sm:$0xff] %vm1523_vm2, %v2261_v9  ;;  %3016 = vrsqrt.f32 %v2009_v46 }
 0x211   :  { %v3005_v4 = vpop.eup %3004  ;;  %2388 = vst.msk [vmem:[%s4844_s3 + $0x300] sm:$0xff] %vm1523_vm2, %v2260_v25  ;;  %3018 = vrsqrt.f32 %v2008_v45  ;;  %v1655_v35 = vpop.xlane.xlu1 %1654 }
 0x212   :  { %v1652_v11 = vpop.xlane.xlu0 %1651  ;;  %v3007_v53 = vpop.eup %3006  ;;  %v2203_v17 = vmul.f32 %v3005_v4, %v4968_v41  ;;  %v1951_v0 = vmax.f32 %v1655_v35, 1e-24  ;;  %v4972_v41 = vld [vmem:[#allocation40_spill] sm:$0xff] }
 0x213   :  { %v1950_v37 = vmax.f32 %v1652_v11, 1e-24  ;;  %v2202_v18 = vmul.f32 %v3007_v53, %v4969_v49  ;;  %v4973_v49 = vld [vmem:[#allocation39_spill] sm:$0xff] }
 0x214   :  { %2331 = vst.msk [vmem:[%s4844_s3 + $0x138] sm:$0xff] %vm1523_vm2, %v2203_v17  ;;  %3020 = vrsqrt.f32 %v1951_v0 }
 0x215   :  { %v3009_v20 = vpop.eup %3008  ;;  %2330 = vst.msk [vmem:[%s4844_s3 + $0x130] sm:$0xff] %vm1523_vm2, %v2202_v18  ;;  %3022 = vrsqrt.f32 %v1950_v37  ;;  %v1847_v26 = vpop.xlane.xlu1 %1846 }
 0x216   :  { %v1844_v12 = vpop.xlane.xlu0 %1843  ;;  %v3011_v34 = vpop.eup %3010  ;;  %v2267_v9 = vmul.f32 %v3009_v20, %v4970_v5  ;;  %v2015_v46 = vmax.f32 %v1847_v26, 1e-24  ;;  %v4974_v5 = vld [vmem:[#allocation42_spill] sm:$0xff] }
 0x217   :  { %v2014_v45 = vmax.f32 %v1844_v12, 1e-24  ;;  %v2266_v25 = vmul.f32 %v3011_v34, %v4971_v54  ;;  %v4975_v54 = vld [vmem:[#allocation41_spill] sm:$0xff] }
 0x218   :  { %2395 = vst.msk [vmem:[%s4844_s3 + $0x338] sm:$0xff] %vm1523_vm2, %v2267_v9  ;;  %3024 = vrsqrt.f32 %v2015_v46 }
 0x219   :  { %v3013_v4 = vpop.eup %3012  ;;  %2394 = vst.msk [vmem:[%s4844_s3 + $0x330] sm:$0xff] %vm1523_vm2, %v2266_v25  ;;  %3026 = vrsqrt.f32 %v2014_v45  ;;  %v1649_v35 = vpop.xlane.xlu1 %1648 }
 0x21a   :  { %v1646_v11 = vpop.xlane.xlu0 %1645  ;;  %v3015_v53 = vpop.eup %3014  ;;  %v2201_v17 = vmul.f32 %v3013_v4, %v4972_v41  ;;  %v1949_v0 = vmax.f32 %v1649_v35, 1e-24 }
 0x21b   :  { %v1948_v37 = vmax.f32 %v1646_v11, 1e-24  ;;  %v2200_v18 = vmul.f32 %v3015_v53, %v4973_v49 }
 0x21c   :  { %2329 = vst.msk [vmem:[%s4844_s3 + $0x128] sm:$0xff] %vm1523_vm2, %v2201_v17  ;;  %3028 = vrsqrt.f32 %v1949_v0 }
 0x21d   :  { %v3017_v20 = vpop.eup %3016  ;;  %2328 = vst.msk [vmem:[%s4844_s3 + $0x120] sm:$0xff] %vm1523_vm2, %v2200_v18  ;;  %3030 = vrsqrt.f32 %v1948_v37  ;;  %v1841_v26 = vpop.xlane.xlu1 %1840 }
 0x21e   :  { %v1838_v12 = vpop.xlane.xlu0 %1837  ;;  %v3019_v34 = vpop.eup %3018  ;;  %v2265_v9 = vmul.f32 %v3017_v20, %v4974_v5  ;;  %v2013_v46 = vmax.f32 %v1841_v26, 1e-24 }
 0x21f   :  { %v2012_v45 = vmax.f32 %v1838_v12, 1e-24  ;;  %v2264_v25 = vmul.f32 %v3019_v34, %v4975_v54 }
 0x220   :  { %2393 = vst.msk [vmem:[%s4844_s3 + $0x328] sm:$0xff] %vm1523_vm2, %v2265_v9  ;;  %3032 = vrsqrt.f32 %v2013_v46 }
 0x221   :  { %v3021_v4 = vpop.eup %3020  ;;  %2392 = vst.msk [vmem:[%s4844_s3 + $0x320] sm:$0xff] %vm1523_vm2, %v2264_v25  ;;  %3034 = vrsqrt.f32 %v2012_v45  ;;  %v1667_v35 = vpop.xlane.xlu1 %1666 }
 0x222   :  { %v1664_v11 = vpop.xlane.xlu0 %1663  ;;  %v3023_v53 = vpop.eup %3022  ;;  %v2207_v41 = vmul.f32 %v3021_v4, %v3900_v1  ;;  %v1955_v17 = vmax.f32 %v1667_v35, 1e-24 }
 0x223   :  { %v1954_v0 = vmax.f32 %v1664_v11, 1e-24  ;;  %v2206_v37 = vmul.f32 %v3023_v53, %v3898_v60 }
 0x224   :  { %2335 = vst.msk [vmem:[%s4844_s3 + $0x158] sm:$0xff] %vm1523_vm2, %v2207_v41  ;;  %3036 = vrsqrt.f32 %v1955_v17  ;;  %v4976_v17 = vld [vmem:[#allocation43_spill] sm:$0xff] }
 0x225   :  { %v3025_v49 = vpop.eup %3024  ;;  %2334 = vst.msk [vmem:[%s4844_s3 + $0x150] sm:$0xff] %vm1523_vm2, %v2206_v37  ;;  %3038 = vrsqrt.f32 %v1954_v0  ;;  %v1859_v18 = vpop.xlane.xlu1 %1858 }
 0x226   :  { %v1856_v20 = vpop.xlane.xlu0 %1855  ;;  %v3027_v1 = vpop.eup %3026  ;;  %v2271_v26 = vmul.f32 %v3025_v49, %v3920_v59  ;;  %v2019_v12 = vmax.f32 %v1859_v18, 1e-24 }
 0x227   :  { %v2018_v60 = vmax.f32 %v1856_v20, 1e-24  ;;  %v2270_v34 = vmul.f32 %v3027_v1, %v3912_v48 }
 0x228   :  { %2399 = vst.msk [vmem:[%s4844_s3 + $0x358] sm:$0xff] %vm1523_vm2, %v2271_v26  ;;  %3040 = vrsqrt.f32 %v2019_v12 }
 0x229   :  { %v3029_v5 = vpop.eup %3028  ;;  %2398 = vst.msk [vmem:[%s4844_s3 + $0x350] sm:$0xff] %vm1523_vm2, %v2270_v34  ;;  %3042 = vrsqrt.f32 %v2018_v60  ;;  %v1661_v9 = vpop.xlane.xlu1 %1660 }
 0x22a   :  { %v1658_v46 = vpop.xlane.xlu0 %1657  ;;  %v3031_v59 = vpop.eup %3030  ;;  %v2205_v45 = vmul.f32 %v3029_v5, %v3941_v43  ;;  %v1953_v54 = vmax.f32 %v1661_v9, 1e-24 }
 0x22b   :  { %v1952_v48 = vmax.f32 %v1658_v46, 1e-24  ;;  %v2204_v25 = vmul.f32 %v3031_v59, %v3933_v15 }
 0x22c   :  { %2333 = vst.msk [vmem:[%s4844_s3 + $0x148] sm:$0xff] %vm1523_vm2, %v2205_v45  ;;  %3044 = vrsqrt.f32 %v1953_v54 }
 0x22d   :  { %v3033_v4 = vpop.eup %3032  ;;  %2332 = vst.msk [vmem:[%s4844_s3 + $0x140] sm:$0xff] %vm1523_vm2, %v2204_v25  ;;  %3046 = vrsqrt.f32 %v1952_v48  ;;  %v1853_v35 = vpop.xlane.xlu1 %1852 }
 0x22e   :  { %v1850_v11 = vpop.xlane.xlu0 %1849  ;;  %v3035_v43 = vpop.eup %3034  ;;  %v2269_v53 = vmul.f32 %v3033_v4, %v3956_v21  ;;  %v2017_v41 = vmax.f32 %v1853_v35, 1e-24 }
 0x22f   :  { %v2016_v15 = vmax.f32 %v1850_v11, 1e-24  ;;  %v2268_v0 = vmul.f32 %v3035_v43, %v4976_v17 }
 0x230   :  { %2397 = vst.msk [vmem:[%s4844_s3 + $0x348] sm:$0xff] %vm1523_vm2, %v2269_v53  ;;  %3048 = vrsqrt.f32 %v2017_v41 }
 0x231   :  { %v3037_v37 = vpop.eup %3036  ;;  %2396 = vst.msk [vmem:[%s4844_s3 + $0x340] sm:$0xff] %vm1523_vm2, %v2268_v0  ;;  %3050 = vrsqrt.f32 %v2016_v15  ;;  %v1679_v49 = vpop.xlane.xlu1 %1678 }
 0x232   :  { %v1676_v18 = vpop.xlane.xlu0 %1675  ;;  %v3039_v21 = vpop.eup %3038  ;;  %v2211_v20 = vmul.f32 %v3037_v37, %v3986_v24  ;;  %v1959_v1 = vmax.f32 %v1679_v49, 1e-24 }
 0x233   :  { %v1958_v26 = vmax.f32 %v1676_v18, 1e-24  ;;  %v2210_v12 = vmul.f32 %v3039_v21, %v3983_v14 }
 0x234   :  { %2339 = vst.msk [vmem:[%s4844_s3 + $0x178] sm:$0xff] %vm1523_vm2, %v2211_v20  ;;  %3052 = vrsqrt.f32 %v1959_v1 }
 0x235   :  { %v3041_v60 = vpop.eup %3040  ;;  %2338 = vst.msk [vmem:[%s4844_s3 + $0x170] sm:$0xff] %vm1523_vm2, %v2210_v12  ;;  %3054 = vrsqrt.f32 %v1958_v26  ;;  %v1871_v34 = vpop.xlane.xlu1 %1870 }
 0x236   :  { %v1868_v5 = vpop.xlane.xlu0 %1867  ;;  %v3043_v24 = vpop.eup %3042  ;;  %v2275_v9 = vmul.f32 %v3041_v60, %v4008_v28  ;;  %v2023_v46 = vmax.f32 %v1871_v34, 1e-24 }
 0x237   :  { %v2022_v14 = vmax.f32 %v1868_v5, 1e-24  ;;  %v2274_v59 = vmul.f32 %v3043_v24, %v4000_v42 }
 0x238   :  { %2403 = vst.msk [vmem:[%s4844_s3 + $0x378] sm:$0xff] %vm1523_vm2, %v2275_v9  ;;  %3056 = vrsqrt.f32 %v2023_v46 }
 0x239   :  { %v3045_v45 = vpop.eup %3044  ;;  %2402 = vst.msk [vmem:[%s4844_s3 + $0x370] sm:$0xff] %vm1523_vm2, %v2274_v59  ;;  %3058 = vrsqrt.f32 %v2022_v14  ;;  %v1673_v54 = vpop.xlane.xlu1 %1672 }
 0x23a   :  { %v1670_v48 = vpop.xlane.xlu0 %1669  ;;  %v3047_v28 = vpop.eup %3046  ;;  %v2209_v25 = vmul.f32 %v3045_v45, %v4029_v32  ;;  %v1957_v4 = vmax.f32 %v1673_v54, 1e-24 }
 0x23b   :  { %v1956_v42 = vmax.f32 %v1670_v48, 1e-24  ;;  %v2208_v35 = vmul.f32 %v3047_v28, %v4021_v55 }
 0x23c   :  { %2337 = vst.msk [vmem:[%s4844_s3 + $0x168] sm:$0xff] %vm1523_vm2, %v2209_v25  ;;  %3060 = vrsqrt.f32 %v1957_v4 }
 0x23d   :  { %v3049_v11 = vpop.eup %3048  ;;  %2336 = vst.msk [vmem:[%s4844_s3 + $0x160] sm:$0xff] %vm1523_vm2, %v2208_v35  ;;  %3062 = vrsqrt.f32 %v1956_v42  ;;  %v1865_v43 = vpop.xlane.xlu1 %1864 }
 0x23e   :  { %v1862_v53 = vpop.xlane.xlu0 %1861  ;;  %v3051_v32 = vpop.eup %3050  ;;  %v2273_v41 = vmul.f32 %v3049_v11, %v4044_v61  ;;  %v2021_v15 = vmax.f32 %v1865_v43, 1e-24 }
 0x23f   :  { %v2020_v55 = vmax.f32 %v1862_v53, 1e-24  ;;  %v2272_v17 = vmul.f32 %v3051_v32, %v4038_v2 }
 0x240   :  { %2401 = vst.msk [vmem:[%s4844_s3 + $0x368] sm:$0xff] %vm1523_vm2, %v2273_v41  ;;  %3064 = vrsqrt.f32 %v2021_v15 }
 0x241   :  { %v3053_v0 = vpop.eup %3052  ;;  %2400 = vst.msk [vmem:[%s4844_s3 + $0x360] sm:$0xff] %vm1523_vm2, %v2272_v17  ;;  %3066 = vrsqrt.f32 %v2020_v55  ;;  %v1691_v37 = vpop.xlane.xlu1 %1690 }
 0x242   :  { %v1688_v49 = vpop.xlane.xlu0 %1687  ;;  %v3055_v61 = vpop.eup %3054  ;;  %v2215_v18 = vmul.f32 %v3053_v0, %v4074_v8  ;;  %v1963_v21 = vmax.f32 %v1691_v37, 1e-24 }
 0x243   :  { %v1962_v2 = vmax.f32 %v1688_v49, 1e-24  ;;  %v2214_v20 = vmul.f32 %v3055_v61, %v4071_v36 }
 0x244   :  { %2343 = vst.msk [vmem:[%s4844_s3 + $0x198] sm:$0xff] %vm1523_vm2, %v2215_v18  ;;  %3068 = vrsqrt.f32 %v1963_v21 }
 0x245   :  { %v3057_v1 = vpop.eup %3056  ;;  %2342 = vst.msk [vmem:[%s4844_s3 + $0x190] sm:$0xff] %vm1523_vm2, %v2214_v20  ;;  %3070 = vrsqrt.f32 %v1962_v2  ;;  %v1883_v26 = vpop.xlane.xlu1 %1882 }
 0x246   :  { %v1880_v12 = vpop.xlane.xlu0 %1879  ;;  %v3059_v8 = vpop.eup %3058  ;;  %v2279_v60 = vmul.f32 %v3057_v1, %v4096_v6  ;;  %v2027_v34 = vmax.f32 %v1883_v26, 1e-24 }
 0x247   :  { %v2026_v36 = vmax.f32 %v1880_v12, 1e-24  ;;  %v2278_v5 = vmul.f32 %v3059_v8, %v4088_v23 }
 0x248   :  { %2407 = vst.msk [vmem:[%s4844_s3 + $0x398] sm:$0xff] %vm1523_vm2, %v2279_v60  ;;  %3072 = vrsqrt.f32 %v2027_v34 }
 0x249   :  { %v3061_v24 = vpop.eup %3060  ;;  %2406 = vst.msk [vmem:[%s4844_s3 + $0x390] sm:$0xff] %vm1523_vm2, %v2278_v5  ;;  %3074 = vrsqrt.f32 %v2026_v36  ;;  %v1685_v9 = vpop.xlane.xlu1 %1684 }
 0x24a   :  { %v1682_v46 = vpop.xlane.xlu0 %1681  ;;  %v3063_v6 = vpop.eup %3062  ;;  %v2213_v14 = vmul.f32 %v3061_v24, %v4119_v13  ;;  %v1961_v59 = vmax.f32 %v1685_v9, 1e-24 }
 0x24b   :  { %v1960_v23 = vmax.f32 %v1682_v46, 1e-24  ;;  %v2212_v45 = vmul.f32 %v3063_v6, %v4109_v38 }
 0x24c   :  { %2341 = vst.msk [vmem:[%s4844_s3 + $0x188] sm:$0xff] %vm1523_vm2, %v2213_v14  ;;  %3076 = vrsqrt.f32 %v1961_v59 }
 0x24d   :  { %v3065_v54 = vpop.eup %3064  ;;  %2340 = vst.msk [vmem:[%s4844_s3 + $0x180] sm:$0xff] %vm1523_vm2, %v2212_v45  ;;  %3078 = vrsqrt.f32 %v1960_v23  ;;  %v1877_v48 = vpop.xlane.xlu1 %1876 }
 0x24e   :  { %v1874_v28 = vpop.xlane.xlu0 %1873  ;;  %v3067_v13 = vpop.eup %3066  ;;  %v2277_v25 = vmul.f32 %v3065_v54, %v4139_v16  ;;  %v2025_v4 = vmax.f32 %v1877_v48, 1e-24 }
 0x24f   :  { %v2024_v38 = vmax.f32 %v1874_v28, 1e-24  ;;  %v2276_v42 = vmul.f32 %v3067_v13, %v4128_v51  ;;  %v4977_v28 = vld [vmem:[#allocation44_spill] sm:$0xff] }
 0x250   :  { %2405 = vst.msk [vmem:[%s4844_s3 + $0x388] sm:$0xff] %vm1523_vm2, %v2277_v25  ;;  %3080 = vrsqrt.f32 %v2025_v4 }
 0x251   :  { %v3069_v35 = vpop.eup %3068  ;;  %2404 = vst.msk [vmem:[%s4844_s3 + $0x380] sm:$0xff] %vm1523_vm2, %v2276_v42  ;;  %3082 = vrsqrt.f32 %v2024_v38  ;;  %v1703_v11 = vpop.xlane.xlu1 %1702 }
 0x252   :  { %v1700_v43 = vpop.xlane.xlu0 %1699  ;;  %v3071_v16 = vpop.eup %3070  ;;  %v2219_v53 = vmul.f32 %v3069_v35, %v4164_v22  ;;  %v1967_v32 = vmax.f32 %v1703_v11, 1e-24 }
 0x253   :  { %v1966_v51 = vmax.f32 %v1700_v43, 1e-24  ;;  %v2218_v41 = vmul.f32 %v3071_v16, %v4156_v57 }
 0x254   :  { %2347 = vst.msk [vmem:[%s4844_s3 + $0x1b8] sm:$0xff] %vm1523_vm2, %v2219_v53  ;;  %3084 = vrsqrt.f32 %v1967_v32 }
 0x255   :  { %v3073_v15 = vpop.eup %3072  ;;  %2346 = vst.msk [vmem:[%s4844_s3 + $0x1b0] sm:$0xff] %vm1523_vm2, %v2218_v41  ;;  %3086 = vrsqrt.f32 %v1966_v51  ;;  %v1895_v55 = vpop.xlane.xlu1 %1894 }
 0x256   :  { %v1892_v17 = vpop.xlane.xlu0 %1891  ;;  %v3075_v22 = vpop.eup %3074  ;;  %v2283_v0 = vmul.f32 %v3073_v15, %v4189_v40  ;;  %v2031_v37 = vmax.f32 %v1895_v55, 1e-24  ;;  %v4978_v15 = vld [vmem:[#allocation45_spill] sm:$0xff] }
 0x257   :  { %v2030_v57 = vmax.f32 %v1892_v17, 1e-24  ;;  %v2282_v49 = vmul.f32 %v3075_v22, %v4181_v63 }
 0x258   :  { %2411 = vst.msk [vmem:[%s4844_s3 + $0x3b8] sm:$0xff] %vm1523_vm2, %v2283_v0  ;;  %3088 = vrsqrt.f32 %v2031_v37  ;;  %v4979_v0 = vld [vmem:[#allocation46_spill] sm:$0xff] }
 0x259   :  { %v3077_v61 = vpop.eup %3076  ;;  %2410 = vst.msk [vmem:[%s4844_s3 + $0x3b0] sm:$0xff] %vm1523_vm2, %v2282_v49  ;;  %3090 = vrsqrt.f32 %v2030_v57  ;;  %v1697_v18 = vpop.xlane.xlu1 %1696 }
 0x25a   :  { %v1694_v21 = vpop.xlane.xlu0 %1693  ;;  %v3079_v40 = vpop.eup %3078  ;;  %v2217_v2 = vmul.f32 %v3077_v61, %v4210_v56  ;;  %v1965_v20 = vmax.f32 %v1697_v18, 1e-24 }
 0x25b   :  { %v1964_v63 = vmax.f32 %v1694_v21, 1e-24  ;;  %v2216_v1 = vmul.f32 %v3079_v40, %v4200_v30 }
 0x25c   :  { %2345 = vst.msk [vmem:[%s4844_s3 + $0x1a8] sm:$0xff] %vm1523_vm2, %v2217_v2  ;;  %3092 = vrsqrt.f32 %v1965_v20 }
 0x25d   :  { %v3081_v26 = vpop.eup %3080  ;;  %2344 = vst.msk [vmem:[%s4844_s3 + $0x1a0] sm:$0xff] %vm1523_vm2, %v2216_v1  ;;  %3094 = vrsqrt.f32 %v1964_v63  ;;  %v1889_v12 = vpop.xlane.xlu1 %1888 }
 0x25e   :  { %v1886_v8 = vpop.xlane.xlu0 %1885  ;;  %v3083_v56 = vpop.eup %3082  ;;  %v2281_v60 = vmul.f32 %v3081_v26, %v4230_v33  ;;  %v2029_v34 = vmax.f32 %v1889_v12, 1e-24 }
 0x25f   :  { %v2028_v30 = vmax.f32 %v1886_v8, 1e-24  ;;  %v2280_v36 = vmul.f32 %v3083_v56, %v4219_v47 }
 0x260   :  { %2409 = vst.msk [vmem:[%s4844_s3 + $0x3a8] sm:$0xff] %vm1523_vm2, %v2281_v60  ;;  %3096 = vrsqrt.f32 %v2029_v34 }
 0x261   :  { %v3085_v5 = vpop.eup %3084  ;;  %2408 = vst.msk [vmem:[%s4844_s3 + $0x3a0] sm:$0xff] %vm1523_vm2, %v2280_v36  ;;  %3098 = vrsqrt.f32 %v2028_v30  ;;  %v1715_v24 = vpop.xlane.xlu1 %1714 }
 0x262   :  { %v1712_v9 = vpop.xlane.xlu0 %1711  ;;  %v3087_v33 = vpop.eup %3086  ;;  %v2223_v46 = vmul.f32 %v3085_v5, %v4255_v10  ;;  %v1971_v6 = vmax.f32 %v1715_v24, 1e-24 }
 0x263   :  { %v1970_v47 = vmax.f32 %v1712_v9, 1e-24  ;;  %v2222_v14 = vmul.f32 %v3087_v33, %v4247_v52 }
 0x264   :  { %2351 = vst.msk [vmem:[%s4844_s3 + $0x1d8] sm:$0xff] %vm1523_vm2, %v2223_v46  ;;  %3100 = vrsqrt.f32 %v1971_v6 }
 0x265   :  { %v3089_v59 = vpop.eup %3088  ;;  %2350 = vst.msk [vmem:[%s4844_s3 + $0x1d0] sm:$0xff] %vm1523_vm2, %v2222_v14  ;;  %3102 = vrsqrt.f32 %v1970_v47  ;;  %v1709_v23 = vpop.xlane.xlu1 %1708 }
 0x266   :  { %v1706_v45 = vpop.xlane.xlu0 %1705  ;;  %v3091_v10 = vpop.eup %3090  ;;  %v2287_v54 = vmul.f32 %v3089_v59, %v4280_v3  ;;  %v1969_v48 = vmax.f32 %v1709_v23, 1e-24 }
 0x267   :  { %v1968_v52 = vmax.f32 %v1706_v45, 1e-24  ;;  %v2286_v13 = vmul.f32 %v3091_v10, %v4977_v28 }
 0x268   :  { %2415 = vst.msk [vmem:[%s4844_s3 + $0x3d8] sm:$0xff] %vm1523_vm2, %v2287_v54  ;;  %3104 = vrsqrt.f32 %v1969_v48 }
 0x269   :  { %v3093_v25 = vpop.eup %3092  ;;  %2414 = vst.msk [vmem:[%s4844_s3 + $0x3d0] sm:$0xff] %vm1523_vm2, %v2286_v13  ;;  %3106 = vrsqrt.f32 %v1968_v52  ;;  %v1901_v4 = vpop.xlane.xlu1 %1900 }
 0x26a   :  { %v1898_v38 = vpop.xlane.xlu0 %1897  ;;  %v3095_v3 = vpop.eup %3094  ;;  %v2221_v42 = vmul.f32 %v3093_v25, %v4301_v19  ;;  %v2033_v35 = vmax.f32 %v1901_v4, 1e-24 }
 0x26b   :  { %v2032_v11 = vmax.f32 %v1898_v38, 1e-24  ;;  %v2220_v43 = vmul.f32 %v3095_v3, %v4293_v7 }
 0x26c   :  { %2349 = vst.msk [vmem:[%s4844_s3 + $0x1c8] sm:$0xff] %vm1523_vm2, %v2221_v42  ;;  %3108 = vrsqrt.f32 %v2033_v35 }
 0x26d   :  { %v3097_v16 = vpop.eup %3096  ;;  %2348 = vst.msk [vmem:[%s4844_s3 + $0x1c0] sm:$0xff] %vm1523_vm2, %v2220_v43  ;;  %3110 = vrsqrt.f32 %v2032_v11  ;;  %v1907_v53 = vpop.xlane.xlu1 %1906 }
 0x26e   :  { %v1904_v32 = vpop.xlane.xlu0 %1903  ;;  %v3099_v19 = vpop.eup %3098  ;;  %v2285_v51 = vmul.f32 %v3097_v16, %v4321_v50  ;;  %v2035_v41 = vmax.f32 %v1907_v53, 1e-24 }
 0x26f   :  { %v2034_v7 = vmax.f32 %v1904_v32, 1e-24  ;;  %v2284_v55 = vmul.f32 %v3099_v19, %v4978_v15 }
 0x270   :  { %2413 = vst.msk [vmem:[%s4844_s3 + $0x3c8] sm:$0xff] %vm1523_vm2, %v2285_v51  ;;  %3112 = vrsqrt.f32 %v2035_v41 }
 0x271   :  { %v3101_v17 = vpop.eup %3100  ;;  %2412 = vst.msk [vmem:[%s4844_s3 + $0x3c0] sm:$0xff] %vm1523_vm2, %v2284_v55  ;;  %3114 = vrsqrt.f32 %v2034_v7 }
 0x272   :  { %v3103_v22 = vpop.eup %3102  ;;  %v2227_v50 = vmul.f32 %v3101_v17, %v4346_v27 }
 0x273   :  { %v2226_v37 = vmul.f32 %v3103_v22, %v4979_v0 }
 0x274   :  { %2355 = vst.msk [vmem:[%s4844_s3 + $0x1f8] sm:$0xff] %vm1523_vm2, %v2227_v50 }
 0x275   :  { %v3105_v57 = vpop.eup %3104  ;;  %2354 = vst.msk [vmem:[%s4844_s3 + $0x1f0] sm:$0xff] %vm1523_vm2, %v2226_v37 }
 0x276   :  { %v3107_v49 = vpop.eup %3106  ;;  %v2225_v61 = vmul.f32 %v3105_v57, %v4369_v44 }
 0x277   :  { %v2224_v18 = vmul.f32 %v3107_v49, %v4361_v62 }
 0x278   :  { %2353 = vst.msk [vmem:[%s4844_s3 + $0x1e8] sm:$0xff] %vm1523_vm2, %v2225_v61 }
 0x279   :  { %v3109_v27 = vpop.eup %3108  ;;  %2352 = vst.msk [vmem:[%s4844_s3 + $0x1e0] sm:$0xff] %vm1523_vm2, %v2224_v18 }
 0x27a   :  { %v3111_v21 = vpop.eup %3110  ;;  %v2289_v40 = vmul.f32 %v3109_v27, %v4392_v31 }
 0x27b   :  { %v2288_v2 = vmul.f32 %v3111_v21, %v4384_v29 }
 0x27c   :  { %2417 = vst.msk [vmem:[%s4844_s3 + $0x3e8] sm:$0xff] %vm1523_vm2, %v2289_v40 }
 0x27d   :  { %v3113_v44 = vpop.eup %3112  ;;  %2416 = vst.msk [vmem:[%s4844_s3 + $0x3e0] sm:$0xff] %vm1523_vm2, %v2288_v2 }
 0x27e   :  { %v3115_v62 = vpop.eup %3114  ;;  %v2291_v20 = vmul.f32 %v3113_v44, %v4405_v39 }
 0x27f   :  { %v2290_v63 = vmul.f32 %v3115_v62, %v4403_v58 }
 0x280   :  { %2419 = vst.msk [vmem:[%s4844_s3 + $0x3f8] sm:$0xff] %vm1523_vm2, %v2291_v20 }
 0x281   :  { %2418 = vst.msk [vmem:[%s4844_s3 + $0x3f0] sm:$0xff] %vm1523_vm2, %v2290_v63 }

// kernel: squeeze.8
= control target key start
LH: loop header
LB: loop body
LE: loop exit
PB: predicated region body
PF: predicated region fallthrough
CT: control target
= control target key end

     0   :  { %vm644_vm0 = vcmask 1041409   ;;  %vm648_vm1 = vcmask 1042434   ;;  %vm652_vm2 = vcmask 1043459   ;;  %vm656_vm3 = vcmask 1044484   ;;  %s3632_s8 = smov 120   ;;  %s3633_s13 = smov 112   ;;  %s5019_s0 = inlined_call_operand.vmem [shape: f32[2,1,8,8,4,8], index: 0, kind: input, shape index: {}]   ;;  %s5020_s1 = inlined_call_operand.vmem [shape: f32[2,2048], index: 1, kind: output, shape index: {}]  }
   0x1   :  { %v3523_v0 = vld [vmem:[%s5019_s0 + $0x13c] sm:$0xf]  ;;  %v3527_v1 = vld [vmem:[%s5019_s0 + $0x12c] sm:$0xf]  ;;  %vm660_vm4 = vcmask 1045509   ;;  %vm664_vm5 = vcmask 1046534  }
   0x2   :  { %v3531_v2 = vld [vmem:[%s5019_s0 + $0x11c] sm:$0xf]  ;;  %249 = vst [vmem:[#allocation1 + $0x278] sm:$0xf] %v3523_v0  ;;  %269 = vst [vmem:[#allocation1 + $0x258] sm:$0xf] %v3527_v1 }
   0x3   :  { %289 = vst [vmem:[#allocation1 + $0x238] sm:$0xf] %v3531_v2  ;;  %v3535_v3 = vld [vmem:[%s5019_s0 + $0x10c] sm:$0xf]  ;;  %v3587_v4 = vld [vmem:[%s5019_s0 + $0x3c] sm:$0xf] }
   0x4   :  { %v3591_v5 = vld [vmem:[%s5019_s0 + $0x2c] sm:$0xf]  ;;  %309 = vst [vmem:[#allocation1 + $0x218] sm:$0xf] %v3535_v3  ;;  %569 = vst [vmem:[#allocation1 + $0x78] sm:$0xf] %v3587_v4 }
   0x5   :  { %589 = vst [vmem:[#allocation1 + $0x58] sm:$0xf] %v3591_v5  ;;  %v3595_v6 = vld [vmem:[%s5019_s0 + $0x1c] sm:$0xf]  ;;  %v3599_v7 = vld [vmem:[%s5019_s0 + $0xc] sm:$0xf] }
   0x6   :  { %609 = vst [vmem:[#allocation1 + $0x38] sm:$0xf] %v3595_v6  ;;  %629 = vst [vmem:[#allocation1 + $0x18] sm:$0xf] %v3599_v7  ;;  %v3491_v8 = vld [vmem:[%s5019_s0 + $0x1bc] sm:$0xf] }
   0x7   :  { %v3495_v9 = vld [vmem:[%s5019_s0 + $0x1ac] sm:$0xf]  ;;  %89 = vst [vmem:[#allocation1 + $0x378] sm:$0xf] %v3491_v8  ;;  %v3499_v10 = vld [vmem:[%s5019_s0 + $0x19c] sm:$0xf] }
   0x8   :  { %109 = vst [vmem:[#allocation1 + $0x358] sm:$0xf] %v3495_v9  ;;  %v3503_v11 = vld [vmem:[%s5019_s0 + $0x18c] sm:$0xf]  ;;  %v3555_v12 = vld [vmem:[%s5019_s0 + $0xbc] sm:$0xf] }
   0x9   :  { %129 = vst [vmem:[#allocation1 + $0x338] sm:$0xf] %v3499_v10  ;;  %149 = vst [vmem:[#allocation1 + $0x318] sm:$0xf] %v3503_v11  ;;  %v3559_v13 = vld [vmem:[%s5019_s0 + $0xac] sm:$0xf] }
   0xa   :  { %409 = vst [vmem:[#allocation1 + $0x178] sm:$0xf] %v3555_v12  ;;  %v3563_v14 = vld [vmem:[%s5019_s0 + $0x9c] sm:$0xf]  ;;  %v3567_v15 = vld [vmem:[%s5019_s0 + $0x8c] sm:$0xf] }
   0xb   :  { %429 = vst [vmem:[#allocation1 + $0x158] sm:$0xf] %v3559_v13  ;;  %449 = vst [vmem:[#allocation1 + $0x138] sm:$0xf] %v3563_v14  ;;  %v3507_v16 = vld [vmem:[%s5019_s0 + $0x17c] sm:$0xf] }
   0xc   :  { %469 = vst [vmem:[#allocation1 + $0x118] sm:$0xf] %v3567_v15  ;;  %v3511_v17 = vld [vmem:[%s5019_s0 + $0x16c] sm:$0xf]  ;;  %v3515_v18 = vld [vmem:[%s5019_s0 + $0x15c] sm:$0xf] }
   0xd   :  { %169 = vst [vmem:[#allocation1 + $0x2f8] sm:$0xf] %v3507_v16  ;;  %189 = vst [vmem:[#allocation1 + $0x2d8] sm:$0xf] %v3511_v17  ;;  %v781_v19 = vld [vmem:[#allocation1 + $0x21a] sm:$0x2]  }
   0xe   :  { %209 = vst [vmem:[#allocation1 + $0x2b8] sm:$0xf] %v3515_v18  ;;  %v789_v20 = vld [vmem:[#allocation1 + $0x238] sm:$0x8]   ;;  %v3519_v24 = vld [vmem:[%s5019_s0 + $0x14c] sm:$0xf] }
   0xf   :  { %v793_v21 = vld [vmem:[#allocation1 + $0x57] sm:$0x10]   ;;  %229 = vst [vmem:[#allocation1 + $0x298] sm:$0xf] %v3519_v24  ;;  %v3571_v26 = vld [vmem:[%s5019_s0 + $0x7c] sm:$0xf] }
  0x10   :  { %v779_v22 = vld [vmem:[#allocation1 + $0x1b] sm:$0x1]   ;;  %v3575_v27 = vld [vmem:[%s5019_s0 + $0x6c] sm:$0xf]  ;;  %v3579_v28 = vld [vmem:[%s5019_s0 + $0x5c] sm:$0xf] }
  0x11   :  { %v785_v23 = vld [vmem:[#allocation1 + $0x39] sm:$0x4]   ;;  %v783_v25 = vsel %vm644_vm0, %v781_v19, %v779_v22  ;;  %vm668_vm6 = vcmask 1047559   ;;  %489 = vst [vmem:[#allocation1 + $0xf8] sm:$0xf] %v3571_v26  ;;  %s3634_s14 = smov 104  }
  0x12   :  { %v787_v29 = vsel %vm648_vm1, %v785_v23, %v783_v25  ;;  %v797_v30 = vld [vmem:[#allocation1 + $0x256] sm:$0x20]   ;;  %509 = vst [vmem:[#allocation1 + $0xd8] sm:$0xf] %v3575_v27  ;;  %529 = vst [vmem:[#allocation1 + $0xb8] sm:$0xf] %v3579_v28 }
  0x13   :  { %v3583_v31 = vld [vmem:[%s5019_s0 + $0x4c] sm:$0xf]  ;;  %v791_v32 = vsel %vm652_vm2, %v789_v20, %v787_v29  ;;  %v801_v33 = vld [vmem:[#allocation1 + $0x75] sm:$0x40]   ;;  %v3475_v48 = vld [vmem:[%s5019_s0 + $0x1fc] sm:$0xf] }
  0x14   :  { %v805_v34 = vld [vmem:[#allocation1 + $0x274] sm:$0x80]   ;;  %549 = vst [vmem:[#allocation1 + $0x98] sm:$0xf] %v3583_v31  ;;  %v795_v36 = vsel %vm656_vm3, %v793_v21, %v791_v32  ;;  %v3479_v49 = vld [vmem:[%s5019_s0 + $0x1ec] sm:$0xf] }
  0x15   :  { %v862_v35 = vld [vmem:[#allocation1 + $0x31a] sm:$0x2]   ;;  %v799_v40 = vsel %vm660_vm4, %v797_v30, %v795_v36  ;;  %v3483_v50 = vld [vmem:[%s5019_s0 + $0x1dc] sm:$0xf]  ;;  %9 = vst [vmem:[#allocation1 + $0x3f8] sm:$0xf] %v3475_v48 }
  0x16   :  { %v860_v37 = vld [vmem:[#allocation1 + $0x11b] sm:$0x1]   ;;  %v803_v45 = vsel %vm664_vm5, %v801_v33, %v799_v40  ;;  %29 = vst [vmem:[#allocation1 + $0x3d8] sm:$0xf] %v3479_v49  ;;  %49 = vst [vmem:[#allocation1 + $0x3b8] sm:$0xf] %v3483_v50 }
  0x17   :  { %v866_v38 = vld [vmem:[#allocation1 + $0x139] sm:$0x4]   ;;  %v864_v41 = vsel %vm644_vm0, %v862_v35, %v860_v37  ;;  %v807_v51 = vsel %vm668_vm6, %v805_v34, %v803_v45  ;;  %v3487_v53 = vld [vmem:[%s5019_s0 + $0x1cc] sm:$0xf]  ;;  %v3539_v54 = vld [vmem:[%s5019_s0 + $0xfc] sm:$0xf] }
  0x18   :  { %v870_v39 = vld [vmem:[#allocation1 + $0x338] sm:$0x8]   ;;  %v868_v46 = vsel %vm648_vm1, %v866_v38, %v864_v41  ;;  %v3543_v55 = vld [vmem:[%s5019_s0 + $0xec] sm:$0xf]  ;;  %808 = vrot.lane.b32.xlu0 %v807_v51, %s3632_s8  ;;  %69 = vst [vmem:[#allocation1 + $0x398] sm:$0xf] %v3487_v53 }
  0x19   :  { %v874_v42 = vld [vmem:[#allocation1 + $0x157] sm:$0x10]   ;;  %v872_v52 = vsel %vm652_vm2, %v870_v39, %v868_v46  ;;  %329 = vst [vmem:[#allocation1 + $0x1f8] sm:$0xf] %v3539_v54  ;;  %349 = vst [vmem:[#allocation1 + $0x1d8] sm:$0xf] %v3543_v55 }
  0x1a   :  { %v878_v43 = vld [vmem:[#allocation1 + $0x356] sm:$0x20]   ;;  %v876_v56 = vsel %vm656_vm3, %v874_v42, %v872_v52  ;;  %v3547_v58 = vld [vmem:[%s5019_s0 + $0xdc] sm:$0xf]  ;;  %v3551_v59 = vld [vmem:[%s5019_s0 + $0xcc] sm:$0xf] }
  0x1b   :  { %v882_v44 = vld [vmem:[#allocation1 + $0x175] sm:$0x40]   ;;  %v880_v60 = vsel %vm660_vm4, %v878_v43, %v876_v56  ;;  %369 = vst [vmem:[#allocation1 + $0x1b8] sm:$0xf] %v3547_v58  ;;  %389 = vst [vmem:[#allocation1 + $0x198] sm:$0xf] %v3551_v59 }
  0x1c   :  { %v886_v47 = vld [vmem:[#allocation1 + $0x374] sm:$0x80]   ;;  %v884_v0 = vsel %vm664_vm5, %v882_v44, %v880_v60  ;;  %v942_v3 = vld [vmem:[#allocation1 + $0x1a] sm:$0x1]   ;;  %s3635_s15 = smov 96   ;;  %s3636_s17 = smov 88  }
  0x1d   :  { %v821_v57 = vld [vmem:[#allocation1 + $0x29a] sm:$0x2]   ;;  %v944_v4 = vld [vmem:[#allocation1 + $0x219] sm:$0x2]   ;;  %v888_v5 = vsel %vm668_vm6, %v886_v47, %v884_v0  ;;  %s3637_s23 = smov 80   ;;  %s3638_s24 = smov 72  }
  0x1e   :  { %v825_v61 = vld [vmem:[#allocation1 + $0xb9] sm:$0x4]   ;;  %v946_v7 = vsel %vm644_vm0, %v944_v4, %v942_v3  ;;  %v948_v8 = vld [vmem:[#allocation1 + $0x38] sm:$0x4]   ;;  %889 = vrot.lane.b32.xlu1 %v888_v5, %s3632_s8  ;;  %s3639_s25 = smov 64   ;;  %s3640_s27 = smov 56  }
  0x1f   :  { %v829_v62 = vld [vmem:[#allocation1 + $0x2b8] sm:$0x8]   ;;  %v952_v9 = vld [vmem:[#allocation1 + $0x237] sm:$0x8]   ;;  %v950_v13 = vsel %vm648_vm1, %v948_v8, %v946_v7  ;;  %s3641_s4 = smov 48   ;;  %s3642_s5 = smov 40  }
  0x20   :  { %v833_v63 = vld [vmem:[#allocation1 + $0xd7] sm:$0x10]   ;;  %v956_v10 = vld [vmem:[#allocation1 + $0x56] sm:$0x10]   ;;  %v954_v17 = vsel %vm652_vm2, %v952_v9, %v950_v13  ;;  %s3643_s6 = smov 32   ;;  %vm670_vm7 = vcmask 64512  }
  0x21   :  { %v819_v1 = vld [vmem:[#allocation1 + $0x9b] sm:$0x1]   ;;  %v960_v14 = vld [vmem:[#allocation1 + $0x255] sm:$0x20]   ;;  %v958_v23 = vsel %vm656_vm3, %v956_v10, %v954_v17  ;;  %vm810_vm8 = vcmask 1048512   ;;  %vm973_vm9 = vcmask 982912  }
  0x22   :  { %v837_v2 = vld [vmem:[#allocation1 + $0x2d6] sm:$0x20]   ;;  %v823_v6 = vsel %vm644_vm0, %v821_v57, %v819_v1  ;;  %v964_v15 = vld [vmem:[#allocation1 + $0x74] sm:$0x40]   ;;  %v962_v30 = vsel %vm660_vm4, %v960_v14, %v958_v23  ;;  %vm1136_vm10 = vcmask 917312   ;;  %vm1299_vm11 = vcmask 851712  }
  0x23   :  { %v827_v11 = vsel %vm648_vm1, %v825_v61, %v823_v6  ;;  %v841_v12 = vld [vmem:[#allocation1 + $0xf5] sm:$0x40]   ;;  %v982_v18 = vld [vmem:[#allocation1 + $0x9a] sm:$0x1]   ;;  %v966_v36 = vsel %vm664_vm5, %v964_v15, %v962_v30  ;;  %v1105_v15 = vld [vmem:[#allocation1 + $0x19] sm:$0x1]  }
  0x24   :  { %v831_v16 = vsel %vm652_vm2, %v829_v62, %v827_v11  ;;  %v984_v19 = vld [vmem:[#allocation1 + $0x299] sm:$0x2]   ;;  %v845_v22 = vld [vmem:[#allocation1 + $0x2f4] sm:$0x80]   ;;  %vm1462_vm12 = vcmask 786112   ;;  %vm1625_vm13 = vcmask 720512  }
  0x25   :  { %v988_v20 = vld [vmem:[#allocation1 + $0xb8] sm:$0x4]   ;;  %v835_v21 = vsel %vm656_vm3, %v833_v63, %v831_v16  ;;  %v986_v25 = vsel %vm644_vm0, %v984_v19, %v982_v18  ;;  %v903_v27 = vld [vmem:[#allocation1 + $0x39a] sm:$0x2]   ;;  %v1107_v19 = vld [vmem:[#allocation1 + $0x218] sm:$0x2]  }
  0x26   :  { %v968_v24 = vld [vmem:[#allocation1 + $0x273] sm:$0x80]   ;;  %v839_v26 = vsel %vm660_vm4, %v837_v2, %v835_v21  ;;  %v911_v28 = vld [vmem:[#allocation1 + $0x3b8] sm:$0x8]   ;;  %v990_v31 = vsel %vm648_vm1, %v988_v20, %v986_v25  ;;  %v1111_v20 = vld [vmem:[#allocation1 + $0x37] sm:$0x4]   ;;  %v1109_v25 = vsel %vm644_vm0, %v1107_v19, %v1105_v15 }
  0x27   :  { %v915_v29 = vld [vmem:[#allocation1 + $0x1d7] sm:$0x10]   ;;  %v843_v32 = vsel %vm664_vm5, %v841_v12, %v839_v26  ;;  %v992_v37 = vld [vmem:[#allocation1 + $0x2b7] sm:$0x8]   ;;  %v970_v51 = vsel %vm668_vm6, %v968_v24, %v966_v36  ;;  %v1115_v21 = vld [vmem:[#allocation1 + $0x236] sm:$0x8]   ;;  %v1113_v30 = vsel %vm648_vm1, %v1111_v20, %v1109_v25 }
  0x28   :  { %v901_v33 = vld [vmem:[#allocation1 + $0x19b] sm:$0x1]   ;;  %v847_v38 = vsel %vm668_vm6, %v845_v22, %v843_v32  ;;  %v994_v41 = vsel %vm652_vm2, %v992_v37, %v990_v31  ;;  %v996_v42 = vld [vmem:[#allocation1 + $0xd6] sm:$0x10]   ;;  %v1119_v26 = vld [vmem:[#allocation1 + $0x55] sm:$0x10]  }
  0x29   :  { %v907_v34 = vld [vmem:[#allocation1 + $0x1b9] sm:$0x4]   ;;  %v905_v39 = vsel %vm644_vm0, %v903_v27, %v901_v33  ;;  %v1000_v43 = vld [vmem:[#allocation1 + $0x2d5] sm:$0x20]   ;;  %848 = vrot.lane.b32.xlu0 %v847_v38, %s3632_s8  ;;  %v998_v46 = vsel %vm656_vm3, %v996_v42, %v994_v41  ;;  %v1123_v27 = vld [vmem:[#allocation1 + $0x254] sm:$0x20]  }
  0x2a   :  { %v919_v35 = vld [vmem:[#allocation1 + $0x3d6] sm:$0x20]   ;;  %v909_v44 = vsel %vm648_vm1, %v907_v34, %v905_v39  ;;  %v1004_v47 = vld [vmem:[#allocation1 + $0xf4] sm:$0x40]   ;;  %v1002_v52 = vsel %vm660_vm4, %v1000_v43, %v998_v46  ;;  %v1131_v31 = vld [vmem:[#allocation1 + $0x272] sm:$0x80]  }
  0x2b   :  { %v923_v40 = vld [vmem:[#allocation1 + $0x1f5] sm:$0x40]   ;;  %v1023_v48 = vld [vmem:[#allocation1 + $0x11a] sm:$0x1]   ;;  %v913_v50 = vsel %vm652_vm2, %v911_v28, %v909_v44  ;;  %v1006_v4 = vsel %vm664_vm5, %v1004_v47, %v1002_v52  ;;  %v1127_v28 = vld [vmem:[#allocation1 + $0x73] sm:$0x40]  }
  0x2c   :  { %v927_v45 = vld [vmem:[#allocation1 + $0x3f4] sm:$0x80]   ;;  %v1025_v49 = vld [vmem:[#allocation1 + $0x319] sm:$0x2]   ;;  %v917_v57 = vsel %vm656_vm3, %v915_v29, %v913_v50  ;;  %v1145_v32 = vld [vmem:[#allocation1 + $0x99] sm:$0x1]  }
  0x2d   :  { %v1027_v53 = vsel %vm644_vm0, %v1025_v49, %v1023_v48  ;;  %v1029_v54 = vld [vmem:[#allocation1 + $0x138] sm:$0x4]   ;;  %v921_v62 = vsel %vm660_vm4, %v919_v35, %v917_v57  ;;  %971 = vrot.lane.b32.xlu0 %v970_v51, %s3633_s13  ;;  %v1147_v33 = vld [vmem:[#allocation1 + $0x298] sm:$0x2]   ;;  %v1117_v35 = vsel %vm652_vm2, %v1115_v21, %v1113_v30  ;;  %v1278_v19 = vld [vmem:[#allocation1 + $0x235] sm:$0x8]  }
  0x2e   :  { %v1033_v55 = vld [vmem:[#allocation1 + $0x337] sm:$0x8]   ;;  %v1031_v59 = vsel %vm648_vm1, %v1029_v54, %v1027_v53  ;;  %v925_v3 = vsel %vm664_vm5, %v923_v40, %v921_v62  ;;  %v1149_v36 = vsel %vm644_vm0, %v1147_v33, %v1145_v32  ;;  %v1151_v37 = vld [vmem:[#allocation1 + $0xb7] sm:$0x4]   ;;  %v1121_v40 = vsel %vm656_vm3, %v1119_v26, %v1117_v35  ;;  %v1282_v20 = vld [vmem:[#allocation1 + $0x54] sm:$0x10]  }
  0x2f   :  { %v1037_v56 = vld [vmem:[#allocation1 + $0x156] sm:$0x10]   ;;  %v1035_v63 = vsel %vm652_vm2, %v1033_v55, %v1031_v59  ;;  %v929_v10 = vsel %vm668_vm6, %v927_v45, %v925_v3  ;;  %v1155_v38 = vld [vmem:[#allocation1 + $0x2b6] sm:$0x8]   ;;  %v1153_v41 = vsel %vm648_vm1, %v1151_v37, %v1149_v36  ;;  %v1125_v46 = vsel %vm660_vm4, %v1123_v27, %v1121_v40  ;;  %v1290_v25 = vld [vmem:[#allocation1 + $0x72] sm:$0x40]  }
  0x30   :  { %v1008_v58 = vld [vmem:[#allocation1 + $0x2f3] sm:$0x80]   ;;  %v1039_v5 = vsel %vm656_vm3, %v1037_v56, %v1035_v63  ;;  %930 = vrot.lane.b32.xlu1 %v929_v10, %s3632_s8  ;;  %v1159_v39 = vld [vmem:[#allocation1 + $0xd5] sm:$0x10]   ;;  %v1157_v47 = vsel %vm652_vm2, %v1155_v38, %v1153_v41  ;;  %v1129_v51 = vsel %vm664_vm5, %v1127_v28, %v1125_v46  ;;  %v1294_v26 = vld [vmem:[#allocation1 + $0x271] sm:$0x80]  }
  0x31   :  { %v1041_v60 = vld [vmem:[#allocation1 + $0x355] sm:$0x20]   ;;  %v1010_v22 = vsel %vm668_vm6, %v1008_v58, %v1006_v4  ;;  %v1163_v42 = vld [vmem:[#allocation1 + $0x2d4] sm:$0x20]   ;;  %v1161_v52 = vsel %vm656_vm3, %v1159_v39, %v1157_v47  ;;  %v1133_v57 = vsel %vm668_vm6, %v1131_v31, %v1129_v51  ;;  %v1310_v30 = vld [vmem:[#allocation1 + $0x297] sm:$0x2]  }
  0x32   :  { %v1045_v61 = vld [vmem:[#allocation1 + $0x174] sm:$0x40]   ;;  %v1043_v11 = vsel %vm660_vm4, %v1041_v60, %v1039_v5  ;;  %v1167_v43 = vld [vmem:[#allocation1 + $0xf3] sm:$0x40]   ;;  %v1165_v58 = vsel %vm660_vm4, %v1163_v42, %v1161_v52  ;;  %v1318_v35 = vld [vmem:[#allocation1 + $0x2b5] sm:$0x8]  }
  0x33   :  { %v1064_v0 = vld [vmem:[#allocation1 + $0x19a] sm:$0x1]   ;;  %v1047_v16 = vsel %vm664_vm5, %v1045_v61, %v1043_v11  ;;  %v1171_v44 = vld [vmem:[#allocation1 + $0x2f2] sm:$0x80]   ;;  %v1169_v63 = vsel %vm664_vm5, %v1167_v43, %v1165_v58  ;;  %v1322_v36 = vld [vmem:[#allocation1 + $0xd4] sm:$0x10]  }
  0x34   :  { %v1066_v1 = vld [vmem:[#allocation1 + $0x399] sm:$0x2]   ;;  %1011 = vrot.lane.b32.xlu1 %v1010_v22, %s3633_s13  ;;  %v1186_v48 = vld [vmem:[#allocation1 + $0x119] sm:$0x1]   ;;  %v1173_v4 = vsel %vm668_vm6, %v1171_v44, %v1169_v63  ;;  %v1326_v40 = vld [vmem:[#allocation1 + $0x2d3] sm:$0x20]  }
  0x35   :  { %v1070_v2 = vld [vmem:[#allocation1 + $0x1b8] sm:$0x4]   ;;  %v1068_v7 = vsel %vm644_vm0, %v1066_v1, %v1064_v0  ;;  %v1188_v49 = vld [vmem:[#allocation1 + $0x318] sm:$0x2]   ;;  %v1330_v41 = vld [vmem:[#allocation1 + $0xf2] sm:$0x40]  }
  0x36   :  { %v1049_v6 = vld [vmem:[#allocation1 + $0x373] sm:$0x80]   ;;  %v1072_v12 = vsel %vm648_vm1, %v1070_v2, %v1068_v7  ;;  %v1192_v50 = vld [vmem:[#allocation1 + $0x137] sm:$0x4]   ;;  %v1190_v53 = vsel %vm644_vm0, %v1188_v49, %v1186_v48  ;;  %v1334_v42 = vld [vmem:[#allocation1 + $0x2f1] sm:$0x80]  }
  0x37   :  { %v1074_v8 = vld [vmem:[#allocation1 + $0x3b7] sm:$0x8]   ;;  %v1051_v23 = vsel %vm668_vm6, %v1049_v6, %v1047_v16  ;;  %v1196_v54 = vld [vmem:[#allocation1 + $0x336] sm:$0x8]   ;;  %v1194_v59 = vsel %vm648_vm1, %v1192_v50, %v1190_v53  ;;  %v1351_v46 = vld [vmem:[#allocation1 + $0x317] sm:$0x2]  }
  0x38   :  { %v1078_v9 = vld [vmem:[#allocation1 + $0x1d6] sm:$0x10]   ;;  %v1076_v17 = vsel %vm652_vm2, %v1074_v8, %v1072_v12  ;;  %1052 = vrot.lane.b32.xlu0 %v1051_v23, %s3633_s13  ;;  %v1200_v55 = vld [vmem:[#allocation1 + $0x155] sm:$0x10]   ;;  %v1198_v0 = vsel %vm652_vm2, %v1196_v54, %v1194_v59  ;;  %v1355_v47 = vld [vmem:[#allocation1 + $0x136] sm:$0x4]  }
  0x39   :  { %v1082_v13 = vld [vmem:[#allocation1 + $0x3d5] sm:$0x20]   ;;  %v1080_v24 = vsel %vm656_vm3, %v1078_v9, %v1076_v17  ;;  %v1204_v56 = vld [vmem:[#allocation1 + $0x354] sm:$0x20]   ;;  %v1202_v5 = vsel %vm656_vm3, %v1200_v55, %v1198_v0  ;;  %v1359_v51 = vld [vmem:[#allocation1 + $0x335] sm:$0x8]  }
  0x3a   :  { %v1086_v14 = vld [vmem:[#allocation1 + $0x1f4] sm:$0x40]   ;;  %v1084_v29 = vsel %vm660_vm4, %v1082_v13, %v1080_v24  ;;  %v1208_v60 = vld [vmem:[#allocation1 + $0x173] sm:$0x40]   ;;  %v1206_v10 = vsel %vm660_vm4, %v1204_v56, %v1202_v5  ;;  %v1268_v13 = vld [vmem:[#allocation1 + $0x18] sm:$0x1]  }
  0x3b   :  { %v1090_v18 = vld [vmem:[#allocation1 + $0x3f3] sm:$0x80]   ;;  %v1088_v34 = vsel %vm664_vm5, %v1086_v14, %v1084_v29  ;;  %v1212_v61 = vld [vmem:[#allocation1 + $0x372] sm:$0x80]   ;;  %v1270_v14 = vld [vmem:[#allocation1 + $0x217] sm:$0x2]   ;;  %v1210_v15 = vsel %vm664_vm5, %v1208_v60, %v1206_v10 }
  0x3c   :  { %v1092_v45 = vsel %vm668_vm6, %v1090_v18, %v1088_v34  ;;  %v1227_v62 = vld [vmem:[#allocation1 + $0x199] sm:$0x1]   ;;  %1134 = vrot.lane.b32.xlu0 %v1133_v57, %s3634_s14  ;;  %v1272_v17 = vsel %vm644_vm0, %v1270_v14, %v1268_v13  ;;  %v1274_v18 = vld [vmem:[#allocation1 + $0x36] sm:$0x4]   ;;  %v1214_v21 = vsel %vm668_vm6, %v1212_v61, %v1210_v15  ;;  %v3528_v10 = vld [vmem:[%s5019_s0 + $0x128] sm:$0xf] }
  0x3d   :  { %1093 = vrot.lane.b32.xlu1 %v1092_v45, %s3633_s13  ;;  %v1229_v1 = vld [vmem:[#allocation1 + $0x398] sm:$0x2]   ;;  %v1276_v23 = vsel %vm648_vm1, %v1274_v18, %v1272_v17  ;;  %v1286_v24 = vld [vmem:[#allocation1 + $0x253] sm:$0x20]   ;;  %274 = vst [vmem:[#allocation1 + $0x250] sm:$0xf] %v3528_v10 }
  0x3e   :  { %v1233_v2 = vld [vmem:[#allocation1 + $0x1b7] sm:$0x4]   ;;  %v1231_v6 = vsel %vm644_vm0, %v1229_v1, %v1227_v62  ;;  %v1280_v28 = vsel %vm652_vm2, %v1278_v19, %v1276_v23  ;;  %v1308_v29 = vld [vmem:[#allocation1 + $0x98] sm:$0x1]   ;;  %v3536_v14 = vld [vmem:[%s5019_s0 + $0x108] sm:$0xf] }
  0x3f   :  { %v1237_v3 = vld [vmem:[#allocation1 + $0x3b6] sm:$0x8]   ;;  %v1235_v11 = vsel %vm648_vm1, %v1233_v2, %v1231_v6  ;;  %v1284_v32 = vsel %vm656_vm3, %v1282_v20, %v1280_v28  ;;  %v1312_v33 = vsel %vm644_vm0, %v1310_v30, %v1308_v29  ;;  %v1314_v34 = vld [vmem:[#allocation1 + $0xb6] sm:$0x4]   ;;  %314 = vst [vmem:[#allocation1 + $0x210] sm:$0xf] %v3536_v14 }
  0x40   :  { %v1241_v7 = vld [vmem:[#allocation1 + $0x1d5] sm:$0x10]   ;;  %v1239_v16 = vsel %vm652_vm2, %v1237_v3, %v1235_v11  ;;  %1215 = vrot.lane.b32.xlu0 %v1214_v21, %s3634_s14  ;;  %v1288_v38 = vsel %vm660_vm4, %v1286_v24, %v1284_v32  ;;  %v1316_v39 = vsel %vm648_vm1, %v1314_v34, %v1312_v33  ;;  %v1349_v45 = vld [vmem:[#allocation1 + $0x118] sm:$0x1]   ;;  %v3592_v18 = vld [vmem:[%s5019_s0 + $0x28] sm:$0xf] }
  0x41   :  { %v1245_v8 = vld [vmem:[#allocation1 + $0x3d4] sm:$0x20]   ;;  %1174 = vrot.lane.b32.xlu1 %v1173_v4, %s3634_s14  ;;  %v1243_v22 = vsel %vm656_vm3, %v1241_v7, %v1239_v16  ;;  %v1292_v43 = vsel %vm664_vm5, %v1290_v25, %v1288_v38  ;;  %v1320_v44 = vsel %vm652_vm2, %v1318_v35, %v1316_v39  ;;  %v1353_v50 = vsel %vm644_vm0, %v1351_v46, %v1349_v45  ;;  %v1363_v52 = vld [vmem:[#allocation1 + $0x154] sm:$0x10]   ;;  %v3600_v20 = vld [vmem:[%s5019_s0 + $0x8] sm:$0xf] }
  0x42   :  { %v1249_v9 = vld [vmem:[#allocation1 + $0x1f3] sm:$0x40]   ;;  %v1247_v27 = vsel %vm660_vm4, %v1245_v8, %v1243_v22  ;;  %v1296_v48 = vsel %vm668_vm6, %v1294_v26, %v1292_v43  ;;  %v1324_v49 = vsel %vm656_vm3, %v1322_v36, %v1320_v44  ;;  %v1367_v53 = vld [vmem:[#allocation1 + $0x353] sm:$0x20]   ;;  %v1357_v55 = vsel %vm648_vm1, %v1355_v47, %v1353_v50  ;;  %594 = vst [vmem:[#allocation1 + $0x50] sm:$0xf] %v3592_v18 }
  0x43   :  { %v1253_v12 = vld [vmem:[#allocation1 + $0x3f2] sm:$0x80]   ;;  %v1251_v31 = vsel %vm664_vm5, %v1249_v9, %v1247_v27  ;;  %v1328_v54 = vsel %vm660_vm4, %v1326_v40, %v1324_v49  ;;  %v1371_v56 = vld [vmem:[#allocation1 + $0x172] sm:$0x40]   ;;  %v1361_v60 = vsel %vm652_vm2, %v1359_v51, %v1357_v55  ;;  %634 = vst [vmem:[#allocation1 + $0x10] sm:$0xf] %v3600_v20 }
  0x44   :  { %v1255_v37 = vsel %vm668_vm6, %v1253_v12, %v1251_v31  ;;  %1297 = vrot.lane.b32.xlu0 %v1296_v48, %s3635_s15  ;;  %v1375_v57 = vld [vmem:[#allocation1 + $0x371] sm:$0x80]   ;;  %v1332_v59 = vsel %vm664_vm5, %v1330_v41, %v1328_v54  ;;  %v1365_v1 = vsel %vm656_vm3, %v1363_v52, %v1361_v60  ;;  %v3512_v23 = vld [vmem:[%s5019_s0 + $0x168] sm:$0xf]  ;;  %v1449_v46 = vld [vmem:[#allocation1 + $0x24e] sm:$0x20]  }
  0x45   :  { %1256 = vrot.lane.b32.xlu1 %v1255_v37, %s3634_s14  ;;  %v1390_v58 = vld [vmem:[#allocation1 + $0x198] sm:$0x1]   ;;  %v1336_v0 = vsel %vm668_vm6, %v1334_v42, %v1332_v59  ;;  %v1369_v6 = vsel %vm660_vm4, %v1367_v53, %v1365_v1  ;;  %194 = vst [vmem:[#allocation1 + $0x2d0] sm:$0xf] %v3512_v23  ;;  %v3520_v26 = vld [vmem:[%s5019_s0 + $0x148] sm:$0xf] }
  0x46   :  { %v1392_v61 = vld [vmem:[#allocation1 + $0x397] sm:$0x2]   ;;  %v1373_v11 = vsel %vm664_vm5, %v1371_v56, %v1369_v6  ;;  %v3576_v28 = vld [vmem:[%s5019_s0 + $0x68] sm:$0xf]  ;;  %234 = vst [vmem:[#allocation1 + $0x290] sm:$0xf] %v3520_v26 }
  0x47   :  { %v1396_v62 = vld [vmem:[#allocation1 + $0x1b6] sm:$0x4]   ;;  %v1394_v2 = vsel %vm644_vm0, %v1392_v61, %v1390_v58  ;;  %v1377_v16 = vsel %vm668_vm6, %v1375_v57, %v1373_v11  ;;  %514 = vst [vmem:[#allocation1 + $0xd0] sm:$0xf] %v3576_v28  ;;  %v3584_v31 = vld [vmem:[%s5019_s0 + $0x48] sm:$0xf] }
  0x48   :  { %v1400_v63 = vld [vmem:[#allocation1 + $0x3b5] sm:$0x8]   ;;  %v1398_v7 = vsel %vm648_vm1, %v1396_v62, %v1394_v2  ;;  %1378 = vrot.lane.b32.xlu0 %v1377_v16, %s3635_s15  ;;  %554 = vst [vmem:[#allocation1 + $0x90] sm:$0xf] %v3584_v31  ;;  %v3496_v33 = vld [vmem:[%s5019_s0 + $0x1a8] sm:$0xf] }
  0x49   :  { %v1404_v3 = vld [vmem:[#allocation1 + $0x1d4] sm:$0x10]   ;;  %1337 = vrot.lane.b32.xlu1 %v1336_v0, %s3635_s15  ;;  %v1402_v12 = vsel %vm652_vm2, %v1400_v63, %v1398_v7  ;;  %v3504_v35 = vld [vmem:[%s5019_s0 + $0x188] sm:$0xf]  ;;  %114 = vst [vmem:[#allocation1 + $0x350] sm:$0xf] %v3496_v33 }
  0x4a   :  { %v1408_v4 = vld [vmem:[#allocation1 + $0x3d3] sm:$0x20]   ;;  %v1406_v17 = vsel %vm656_vm3, %v1404_v3, %v1402_v12  ;;  %154 = vst [vmem:[#allocation1 + $0x310] sm:$0xf] %v3504_v35  ;;  %v3560_v37 = vld [vmem:[%s5019_s0 + $0xa8] sm:$0xf] }
  0x4b   :  { %v1412_v5 = vld [vmem:[#allocation1 + $0x1f2] sm:$0x40]   ;;  %v1410_v21 = vsel %vm660_vm4, %v1408_v4, %v1406_v17  ;;  %434 = vst [vmem:[#allocation1 + $0x150] sm:$0xf] %v3560_v37  ;;  %v3568_v39 = vld [vmem:[%s5019_s0 + $0x88] sm:$0xf] }
  0x4c   :  { %v1416_v8 = vld [vmem:[#allocation1 + $0x3f1] sm:$0x80]   ;;  %v1414_v25 = vsel %vm664_vm5, %v1412_v5, %v1410_v21  ;;  %v1433_v40 = vld [vmem:[#allocation1 + $0x212] sm:$0x2]   ;;  %474 = vst [vmem:[#allocation1 + $0x110] sm:$0xf] %v3568_v39 }
  0x4d   :  { %v3524_v9 = vld [vmem:[%s5019_s0 + $0x138] sm:$0xf]  ;;  %v1418_v29 = vsel %vm668_vm6, %v1416_v8, %v1414_v25  ;;  %v1431_v41 = vld [vmem:[#allocation1 + $0x13] sm:$0x1]   ;;  %v3480_v8 = vld [vmem:[%s5019_s0 + $0x1e8] sm:$0xf] }
  0x4e   :  { %254 = vst [vmem:[#allocation1 + $0x270] sm:$0xf] %v3524_v9  ;;  %v3532_v13 = vld [vmem:[%s5019_s0 + $0x118] sm:$0xf]  ;;  %1419 = vrot.lane.b32.xlu1 %v1418_v29, %s3635_s15  ;;  %v1435_v44 = vsel %vm644_vm0, %v1433_v40, %v1431_v41  ;;  %v1445_v45 = vld [vmem:[#allocation1 + $0x4f] sm:$0x10]  }
  0x4f   :  { %v3588_v15 = vld [vmem:[%s5019_s0 + $0x38] sm:$0xf]  ;;  %294 = vst [vmem:[#allocation1 + $0x230] sm:$0xf] %v3532_v13  ;;  %v1473_v50 = vld [vmem:[#allocation1 + $0x292] sm:$0x2]  }
  0x50   :  { %574 = vst [vmem:[#allocation1 + $0x70] sm:$0xf] %v3588_v15  ;;  %v3596_v19 = vld [vmem:[%s5019_s0 + $0x18] sm:$0xf]  ;;  %v1471_v53 = vld [vmem:[#allocation1 + $0x93] sm:$0x1]  }
  0x51   :  { %614 = vst [vmem:[#allocation1 + $0x30] sm:$0xf] %v3596_v19  ;;  %v3508_v22 = vld [vmem:[%s5019_s0 + $0x178] sm:$0xf]  ;;  %v1489_v55 = vld [vmem:[#allocation1 + $0x2ce] sm:$0x20]   ;;  %v1475_v57 = vsel %vm644_vm0, %v1473_v50, %v1471_v53 }
  0x52   :  { %v3516_v24 = vld [vmem:[%s5019_s0 + $0x158] sm:$0xf]  ;;  %174 = vst [vmem:[#allocation1 + $0x2f0] sm:$0xf] %v3508_v22  ;;  %v1485_v58 = vld [vmem:[#allocation1 + $0xcf] sm:$0x10]  }
  0x53   :  { %214 = vst [vmem:[#allocation1 + $0x2b0] sm:$0xf] %v3516_v24  ;;  %v3572_v27 = vld [vmem:[%s5019_s0 + $0x78] sm:$0xf]  ;;  %v1514_v60 = vld [vmem:[#allocation1 + $0x312] sm:$0x2]  }
  0x54   :  { %494 = vst [vmem:[#allocation1 + $0xf0] sm:$0xf] %v3572_v27  ;;  %v3580_v30 = vld [vmem:[%s5019_s0 + $0x58] sm:$0xf]  ;;  %v1526_v2 = vld [vmem:[#allocation1 + $0x14f] sm:$0x10]  }
  0x55   :  { %v3492_v32 = vld [vmem:[%s5019_s0 + $0x1b8] sm:$0xf]  ;;  %534 = vst [vmem:[#allocation1 + $0xb0] sm:$0xf] %v3580_v30  ;;  %v1457_v49 = vld [vmem:[#allocation1 + $0x26c] sm:$0x80]  }
  0x56   :  { %94 = vst [vmem:[#allocation1 + $0x370] sm:$0xf] %v3492_v32  ;;  %v3500_v34 = vld [vmem:[%s5019_s0 + $0x198] sm:$0xf]  ;;  %v1441_v43 = vld [vmem:[#allocation1 + $0x230] sm:$0x8]  }
  0x57   :  { %134 = vst [vmem:[#allocation1 + $0x330] sm:$0xf] %v3500_v34  ;;  %v3556_v36 = vld [vmem:[%s5019_s0 + $0xb8] sm:$0xf]  ;;  %v1453_v48 = vld [vmem:[#allocation1 + $0x6d] sm:$0x40]  }
  0x58   :  { %v3564_v38 = vld [vmem:[%s5019_s0 + $0x98] sm:$0xf]  ;;  %414 = vst [vmem:[#allocation1 + $0x170] sm:$0xf] %v3556_v36  ;;  %v1437_v42 = vld [vmem:[#allocation1 + $0x31] sm:$0x4]  }
  0x59   :  { %454 = vst [vmem:[#allocation1 + $0x130] sm:$0xf] %v3564_v38  ;;  %v1439_v47 = vsel %vm648_vm1, %v1437_v42, %v1435_v44  ;;  %v1497_v63 = vld [vmem:[#allocation1 + $0x2ec] sm:$0x80]   ;;  %v3476_v7 = vld [vmem:[%s5019_s0 + $0x1f8] sm:$0xf] }
  0x5a   :  { %v1481_v51 = vld [vmem:[#allocation1 + $0x2b0] sm:$0x8]   ;;  %v1443_v52 = vsel %vm652_vm2, %v1441_v43, %v1439_v47  ;;  %14 = vst [vmem:[#allocation1 + $0x3f0] sm:$0xf] %v3476_v7  ;;  %34 = vst [vmem:[#allocation1 + $0x3d0] sm:$0xf] %v3480_v8 }
  0x5b   :  { %v1447_v56 = vsel %vm656_vm3, %v1445_v45, %v1443_v52  ;;  %v1493_v59 = vld [vmem:[#allocation1 + $0xed] sm:$0x40]   ;;  %v3484_v13 = vld [vmem:[%s5019_s0 + $0x1d8] sm:$0xf]  ;;  %v3488_v14 = vld [vmem:[%s5019_s0 + $0x1c8] sm:$0xf] }
  0x5c   :  { %v1477_v54 = vld [vmem:[#allocation1 + $0xb1] sm:$0x4]   ;;  %v1451_v61 = vsel %vm660_vm4, %v1449_v46, %v1447_v56  ;;  %v3540_v15 = vld [vmem:[%s5019_s0 + $0xf8] sm:$0xf]  ;;  %54 = vst [vmem:[#allocation1 + $0x3b0] sm:$0xf] %v3484_v13 }
  0x5d   :  { %v1479_v62 = vsel %vm648_vm1, %v1477_v54, %v1475_v57  ;;  %v1455_v3 = vsel %vm664_vm5, %v1453_v48, %v1451_v61  ;;  %v1512_v5 = vld [vmem:[#allocation1 + $0x113] sm:$0x1]   ;;  %74 = vst [vmem:[#allocation1 + $0x390] sm:$0xf] %v3488_v14  ;;  %334 = vst [vmem:[#allocation1 + $0x1f0] sm:$0xf] %v3540_v15 }
  0x5e   :  { %v1522_v1 = vld [vmem:[#allocation1 + $0x330] sm:$0x8]   ;;  %v1483_v4 = vsel %vm652_vm2, %v1481_v51, %v1479_v62  ;;  %v1459_v9 = vsel %vm668_vm6, %v1457_v49, %v1455_v3  ;;  %v1516_v11 = vsel %vm644_vm0, %v1514_v60, %v1512_v5  ;;  %v3544_v18 = vld [vmem:[%s5019_s0 + $0xe8] sm:$0xf]  ;;  %v3548_v19 = vld [vmem:[%s5019_s0 + $0xd8] sm:$0xf] }
  0x5f   :  { %v1530_v6 = vld [vmem:[#allocation1 + $0x34e] sm:$0x20]   ;;  %v1487_v10 = vsel %vm656_vm3, %v1485_v58, %v1483_v4  ;;  %1460 = vrot.lane.b32.xlu0 %v1459_v9, %s3636_s17  ;;  %v3552_v20 = vld [vmem:[%s5019_s0 + $0xc8] sm:$0xf]  ;;  %354 = vst [vmem:[#allocation1 + $0x1d0] sm:$0xf] %v3544_v18 }
  0x60   :  { %v1518_v0 = vld [vmem:[#allocation1 + $0x131] sm:$0x4]   ;;  %v1491_v16 = vsel %vm660_vm4, %v1489_v55, %v1487_v10  ;;  %374 = vst [vmem:[#allocation1 + $0x1b0] sm:$0xf] %v3548_v19  ;;  %394 = vst [vmem:[#allocation1 + $0x190] sm:$0xf] %v3552_v20 }
  0x61   :  { %v1534_v12 = vld [vmem:[#allocation1 + $0x16d] sm:$0x40]   ;;  %v1520_v17 = vsel %vm648_vm1, %v1518_v0, %v1516_v11  ;;  %v1495_v21 = vsel %vm664_vm5, %v1493_v59, %v1491_v16  ;;  %v1594_v23 = vld [vmem:[#allocation1 + $0x12] sm:$0x1]   ;;  %s3644_s8 = smov 24   ;;  %s3646_s14 = smov 8  }
  0x62   :  { %v1524_v22 = vsel %vm652_vm2, %v1522_v1, %v1520_v17  ;;  %v1596_v24 = vld [vmem:[#allocation1 + $0x211] sm:$0x2]   ;;  %v1499_v26 = vsel %vm668_vm6, %v1497_v63, %v1495_v21  ;;  %v1538_v28 = vld [vmem:[#allocation1 + $0x36c] sm:$0x80]   ;;  %vm1788_vm14 = vcmask 654912   ;;  %vm1951_vm15 = vcmask 589312  }
  0x63   :  { %v1600_v25 = vld [vmem:[#allocation1 + $0x30] sm:$0x4]   ;;  %v1528_v27 = vsel %vm656_vm3, %v1526_v2, %v1524_v22  ;;  %v1598_v29 = vsel %vm644_vm0, %v1596_v24, %v1594_v23  ;;  %1500 = vrot.lane.b32.xlu1 %v1499_v26, %s3636_s17  ;;  %v1563_v55 = vld [vmem:[#allocation1 + $0x3b0] sm:$0x8]  }
  0x64   :  { %v1604_v30 = vld [vmem:[#allocation1 + $0x22f] sm:$0x8]   ;;  %v1532_v32 = vsel %vm660_vm4, %v1530_v6, %v1528_v27  ;;  %v1602_v33 = vsel %vm648_vm1, %v1600_v25, %v1598_v29  ;;  %v1555_v49 = vld [vmem:[#allocation1 + $0x392] sm:$0x2]  }
  0x65   :  { %v1608_v31 = vld [vmem:[#allocation1 + $0x4e] sm:$0x10]   ;;  %v1536_v36 = vsel %vm664_vm5, %v1534_v12, %v1532_v32  ;;  %v1606_v37 = vsel %vm652_vm2, %v1604_v30, %v1602_v33  ;;  %v1571_v56 = vld [vmem:[#allocation1 + $0x3ce] sm:$0x20]   ;;  %v1757_v30 = vld [vmem:[#allocation1 + $0x11] sm:$0x1]  }
  0x66   :  { %v1612_v34 = vld [vmem:[#allocation1 + $0x24d] sm:$0x20]   ;;  %v1540_v41 = vsel %vm668_vm6, %v1538_v28, %v1536_v36  ;;  %v1610_v42 = vsel %vm656_vm3, %v1608_v31, %v1606_v37  ;;  %v1567_v60 = vld [vmem:[#allocation1 + $0x1cf] sm:$0x10]   ;;  %v1767_v36 = vld [vmem:[#allocation1 + $0x22e] sm:$0x8]  }
  0x67   :  { %v1616_v35 = vld [vmem:[#allocation1 + $0x6c] sm:$0x40]   ;;  %1541 = vrot.lane.b32.xlu0 %v1540_v41, %s3636_s17  ;;  %v1614_v47 = vsel %vm660_vm4, %v1612_v34, %v1610_v42  ;;  %v1553_v53 = vld [vmem:[#allocation1 + $0x193] sm:$0x1]   ;;  %v1759_v34 = vld [vmem:[#allocation1 + $0x210] sm:$0x2]  }
  0x68   :  { %v1634_v38 = vld [vmem:[#allocation1 + $0x92] sm:$0x1]   ;;  %v1618_v50 = vsel %vm664_vm5, %v1616_v35, %v1614_v47  ;;  %v1559_v54 = vld [vmem:[#allocation1 + $0x1b1] sm:$0x4]   ;;  %v1557_v59 = vsel %vm644_vm0, %v1555_v49, %v1553_v53  ;;  %v1763_v35 = vld [vmem:[#allocation1 + $0x2f] sm:$0x4]  }
  0x69   :  { %v1636_v39 = vld [vmem:[#allocation1 + $0x291] sm:$0x2]   ;;  %v1561_v0 = vsel %vm648_vm1, %v1559_v54, %v1557_v59  ;;  %v1579_v1 = vld [vmem:[#allocation1 + $0x3ec] sm:$0x80]   ;;  %v1771_v41 = vld [vmem:[#allocation1 + $0x4d] sm:$0x10]  }
  0x6a   :  { %v1640_v40 = vld [vmem:[#allocation1 + $0xb0] sm:$0x4]   ;;  %v1638_v44 = vsel %vm644_vm0, %v1636_v39, %v1634_v38  ;;  %v1565_v6 = vsel %vm652_vm2, %v1563_v55, %v1561_v0  ;;  %v1575_v7 = vld [vmem:[#allocation1 + $0x1ed] sm:$0x40]   ;;  %v1775_v42 = vld [vmem:[#allocation1 + $0x24c] sm:$0x20]  }
  0x6b   :  { %v1620_v43 = vld [vmem:[#allocation1 + $0x26b] sm:$0x80]   ;;  %v1642_v48 = vsel %vm648_vm1, %v1640_v40, %v1638_v44  ;;  %v1569_v12 = vsel %vm656_vm3, %v1567_v60, %v1565_v6  ;;  %v1761_v40 = vsel %vm644_vm0, %v1759_v34, %v1757_v30  ;;  %v1797_v47 = vld [vmem:[#allocation1 + $0x91] sm:$0x1]   ;;  %v1922_v30 = vld [vmem:[#allocation1 + $0x20f] sm:$0x2]  }
  0x6c   :  { %v1644_v45 = vld [vmem:[#allocation1 + $0x2af] sm:$0x8]   ;;  %v1622_v57 = vsel %vm668_vm6, %v1620_v43, %v1618_v50  ;;  %v1573_v18 = vsel %vm660_vm4, %v1571_v56, %v1569_v12  ;;  %v1807_v53 = vld [vmem:[#allocation1 + $0x2ae] sm:$0x8]   ;;  %v1926_v34 = vld [vmem:[#allocation1 + $0x2e] sm:$0x4]  }
  0x6d   :  { %v1648_v46 = vld [vmem:[#allocation1 + $0xce] sm:$0x10]   ;;  %v1646_v51 = vsel %vm652_vm2, %v1644_v45, %v1642_v48  ;;  %1623 = vrot.lane.b32.xlu0 %v1622_v57, %s3637_s23  ;;  %v1577_v24 = vsel %vm664_vm5, %v1575_v7, %v1573_v18  ;;  %v1765_v45 = vsel %vm648_vm1, %v1763_v35, %v1761_v40  ;;  %v1799_v48 = vld [vmem:[#allocation1 + $0x290] sm:$0x2]   ;;  %v1930_v35 = vld [vmem:[#allocation1 + $0x22d] sm:$0x8]  }
  0x6e   :  { %v1652_v52 = vld [vmem:[#allocation1 + $0x2cd] sm:$0x20]   ;;  %v1650_v58 = vsel %vm656_vm3, %v1648_v46, %v1646_v51  ;;  %v1581_v31 = vsel %vm668_vm6, %v1579_v1, %v1577_v24  ;;  %v1779_v46 = vld [vmem:[#allocation1 + $0x6b] sm:$0x40]   ;;  %v1769_v50 = vsel %vm652_vm2, %v1767_v36, %v1765_v45  ;;  %v1801_v51 = vsel %vm644_vm0, %v1799_v48, %v1797_v47  ;;  %v1934_v36 = vld [vmem:[#allocation1 + $0x4c] sm:$0x10]  }
  0x6f   :  { %v1656_v61 = vld [vmem:[#allocation1 + $0xec] sm:$0x40]   ;;  %v1654_v8 = vsel %vm660_vm4, %v1652_v52, %v1650_v58  ;;  %1582 = vrot.lane.b32.xlu1 %v1581_v31, %s3636_s17  ;;  %v1803_v52 = vld [vmem:[#allocation1 + $0xaf] sm:$0x4]   ;;  %v1773_v55 = vsel %vm656_vm3, %v1771_v41, %v1769_v50  ;;  %v1938_v40 = vld [vmem:[#allocation1 + $0x24b] sm:$0x20]  }
  0x70   :  { %v1675_v62 = vld [vmem:[#allocation1 + $0x112] sm:$0x1]   ;;  %v1658_v25 = vsel %vm664_vm5, %v1656_v61, %v1654_v8  ;;  %v1811_v54 = vld [vmem:[#allocation1 + $0xcd] sm:$0x10]   ;;  %v1805_v57 = vsel %vm648_vm1, %v1803_v52, %v1801_v51  ;;  %v1777_v60 = vsel %vm660_vm4, %v1775_v42, %v1773_v55  ;;  %v1942_v41 = vld [vmem:[#allocation1 + $0x6a] sm:$0x40]  }
  0x71   :  { %v1677_v63 = vld [vmem:[#allocation1 + $0x311] sm:$0x2]   ;;  %v1783_v56 = vld [vmem:[#allocation1 + $0x26a] sm:$0x80]   ;;  %v1809_v61 = vsel %vm652_vm2, %v1807_v53, %v1805_v57  ;;  %v1946_v42 = vld [vmem:[#allocation1 + $0x269] sm:$0x80]  }
  0x72   :  { %v1679_v2 = vsel %vm644_vm0, %v1677_v63, %v1675_v62  ;;  %v1681_v3 = vld [vmem:[#allocation1 + $0x130] sm:$0x4]   ;;  %v1815_v58 = vld [vmem:[#allocation1 + $0x2cc] sm:$0x20]   ;;  %v1960_v45 = vld [vmem:[#allocation1 + $0x90] sm:$0x1]  }
  0x73   :  { %v1685_v4 = vld [vmem:[#allocation1 + $0x32f] sm:$0x8]   ;;  %v1683_v9 = vsel %vm648_vm1, %v1681_v3, %v1679_v2  ;;  %v1819_v59 = vld [vmem:[#allocation1 + $0xeb] sm:$0x40]   ;;  %v1781_v3 = vsel %vm664_vm5, %v1779_v46, %v1777_v60  ;;  %v1962_v46 = vld [vmem:[#allocation1 + $0x28f] sm:$0x2]  }
  0x74   :  { %v1689_v5 = vld [vmem:[#allocation1 + $0x14e] sm:$0x10]   ;;  %v1687_v14 = vsel %vm652_vm2, %v1685_v4, %v1683_v9  ;;  %v1823_v62 = vld [vmem:[#allocation1 + $0x2ea] sm:$0x80]   ;;  %v1813_v4 = vsel %vm656_vm3, %v1811_v54, %v1809_v61  ;;  %v1785_v9 = vsel %vm668_vm6, %v1783_v56, %v1781_v3  ;;  %v1966_v50 = vld [vmem:[#allocation1 + $0xae] sm:$0x4]  }
  0x75   :  { %v1693_v10 = vld [vmem:[#allocation1 + $0x34d] sm:$0x20]   ;;  %v1691_v19 = vsel %vm656_vm3, %v1689_v5, %v1687_v14  ;;  %v1838_v63 = vld [vmem:[#allocation1 + $0x111] sm:$0x1]   ;;  %v1970_v51 = vld [vmem:[#allocation1 + $0x2ad] sm:$0x8]  }
  0x76   :  { %v1697_v11 = vld [vmem:[#allocation1 + $0x16c] sm:$0x40]   ;;  %v1695_v26 = vsel %vm660_vm4, %v1693_v10, %v1691_v19  ;;  %v1840_v0 = vld [vmem:[#allocation1 + $0x310] sm:$0x2]   ;;  %v1817_v10 = vsel %vm660_vm4, %v1815_v58, %v1813_v4  ;;  %v1974_v52 = vld [vmem:[#allocation1 + $0xcc] sm:$0x10]  }
  0x77   :  { %v1660_v13 = vld [vmem:[#allocation1 + $0x2eb] sm:$0x80]   ;;  %v1699_v32 = vsel %vm664_vm5, %v1697_v11, %v1695_v26  ;;  %v1844_v1 = vld [vmem:[#allocation1 + $0x12f] sm:$0x4]   ;;  %v1842_v5 = vsel %vm644_vm0, %v1840_v0, %v1838_v63  ;;  %v1978_v56 = vld [vmem:[#allocation1 + $0x2cb] sm:$0x20]  }
  0x78   :  { %v1716_v15 = vld [vmem:[#allocation1 + $0x192] sm:$0x1]   ;;  %v1662_v43 = vsel %vm668_vm6, %v1660_v13, %v1658_v25  ;;  %v1848_v6 = vld [vmem:[#allocation1 + $0x32e] sm:$0x8]   ;;  %v1846_v11 = vsel %vm648_vm1, %v1844_v1, %v1842_v5  ;;  %v1982_v57 = vld [vmem:[#allocation1 + $0xea] sm:$0x40]  }
  0x79   :  { %v1718_v16 = vld [vmem:[#allocation1 + $0x391] sm:$0x2]   ;;  %1663 = vrot.lane.b32.xlu1 %v1662_v43, %s3637_s23  ;;  %v1852_v7 = vld [vmem:[#allocation1 + $0x14d] sm:$0x10]   ;;  %v1986_v58 = vld [vmem:[#allocation1 + $0x2e9] sm:$0x80]  }
  0x7a   :  { %v1722_v17 = vld [vmem:[#allocation1 + $0x1b0] sm:$0x4]   ;;  %v1720_v21 = vsel %vm644_vm0, %v1718_v16, %v1716_v15  ;;  %v1856_v8 = vld [vmem:[#allocation1 + $0x34c] sm:$0x20]   ;;  %v1821_v15 = vsel %vm664_vm5, %v1819_v59, %v1817_v10  ;;  %v1850_v16 = vsel %vm652_vm2, %v1848_v6, %v1846_v11  ;;  %v2001_v61 = vld [vmem:[#allocation1 + $0x110] sm:$0x1]  }
  0x7b   :  { %v1701_v20 = vld [vmem:[#allocation1 + $0x36b] sm:$0x80]   ;;  %v1724_v27 = vsel %vm648_vm1, %v1722_v17, %v1720_v21  ;;  %v1860_v12 = vld [vmem:[#allocation1 + $0x16b] sm:$0x40]   ;;  %v1825_v25 = vsel %vm668_vm6, %v1823_v62, %v1821_v15  ;;  %v2003_v62 = vld [vmem:[#allocation1 + $0x30f] sm:$0x2]  }
  0x7c   :  { %v1726_v22 = vld [vmem:[#allocation1 + $0x3af] sm:$0x8]   ;;  %v1703_v37 = vsel %vm668_vm6, %v1701_v20, %v1699_v32  ;;  %v1864_v13 = vld [vmem:[#allocation1 + $0x36a] sm:$0x80]   ;;  %v1854_v20 = vsel %vm656_vm3, %v1852_v7, %v1850_v16  ;;  %v2007_v63 = vld [vmem:[#allocation1 + $0x12e] sm:$0x4]  }
  0x7d   :  { %v1730_v23 = vld [vmem:[#allocation1 + $0x1ce] sm:$0x10]   ;;  %v1728_v33 = vsel %vm652_vm2, %v1726_v22, %v1724_v27  ;;  %1704 = vrot.lane.b32.xlu0 %v1703_v37, %s3637_s23  ;;  %v1879_v14 = vld [vmem:[#allocation1 + $0x191] sm:$0x1]   ;;  %v1858_v26 = vsel %vm660_vm4, %v1856_v8, %v1854_v20  ;;  %v2011_v3 = vld [vmem:[#allocation1 + $0x32d] sm:$0x8]  }
  0x7e   :  { %v1734_v28 = vld [vmem:[#allocation1 + $0x3cd] sm:$0x20]   ;;  %v1732_v38 = vsel %vm656_vm3, %v1730_v23, %v1728_v33  ;;  %v1881_v17 = vld [vmem:[#allocation1 + $0x390] sm:$0x2]   ;;  %v1862_v31 = vsel %vm664_vm5, %v1860_v12, %v1858_v26  ;;  %v2015_v4 = vld [vmem:[#allocation1 + $0x14c] sm:$0x10]  }
  0x7f   :  { %v1738_v29 = vld [vmem:[#allocation1 + $0x1ec] sm:$0x40]   ;;  %v1736_v44 = vsel %vm660_vm4, %v1734_v28, %v1732_v38  ;;  %v1885_v18 = vld [vmem:[#allocation1 + $0x1af] sm:$0x4]   ;;  %v1883_v21 = vsel %vm644_vm0, %v1881_v17, %v1879_v14  ;;  %v1866_v37 = vsel %vm668_vm6, %v1864_v13, %v1862_v31  ;;  %v2019_v5 = vld [vmem:[#allocation1 + $0x34b] sm:$0x20]  }
  0x80   :  { %v1742_v39 = vld [vmem:[#allocation1 + $0x3eb] sm:$0x80]   ;;  %v1740_v49 = vsel %vm664_vm5, %v1738_v29, %v1736_v44  ;;  %v1889_v19 = vld [vmem:[#allocation1 + $0x3ae] sm:$0x8]   ;;  %v1887_v27 = vsel %vm648_vm1, %v1885_v18, %v1883_v21  ;;  %v1920_v29 = vld [vmem:[#allocation1 + $0x10] sm:$0x1]  }
  0x81   :  { %v1744_v2 = vsel %vm668_vm6, %v1742_v39, %v1740_v49  ;;  %1786 = vrot.lane.b32.xlu0 %v1785_v9, %s3638_s24  ;;  %v1893_v22 = vld [vmem:[#allocation1 + $0x1cd] sm:$0x10]   ;;  %v1891_v32 = vsel %vm652_vm2, %v1889_v19, %v1887_v27  ;;  %v1924_v33 = vsel %vm644_vm0, %v1922_v30, %v1920_v29  ;;  %v1964_v49 = vsel %vm644_vm0, %v1962_v46, %v1960_v45  ;;  %v2023_v8 = vld [vmem:[#allocation1 + $0x16a] sm:$0x40]   ;;  %v3529_v26 = vld [vmem:[%s5019_s0 + $0x124] sm:$0xf] }
  0x82   :  { %1745 = vrot.lane.b32.xlu1 %v1744_v2, %s3637_s23  ;;  %v1897_v23 = vld [vmem:[#allocation1 + $0x3cc] sm:$0x20]   ;;  %v1895_v38 = vsel %vm656_vm3, %v1893_v22, %v1891_v32  ;;  %v1928_v39 = vsel %vm648_vm1, %v1926_v34, %v1924_v33  ;;  %v1968_v55 = vsel %vm648_vm1, %v1966_v50, %v1964_v49  ;;  %v2005_v2 = vsel %vm644_vm0, %v2003_v62, %v2001_v61  ;;  %v2027_v9 = vld [vmem:[#allocation1 + $0x369] sm:$0x80]   ;;  %v3533_v29 = vld [vmem:[%s5019_s0 + $0x114] sm:$0xf] }
  0x83   :  { %v1901_v24 = vld [vmem:[#allocation1 + $0x1eb] sm:$0x40]   ;;  %v1899_v43 = vsel %vm660_vm4, %v1897_v23, %v1895_v38  ;;  %v1932_v44 = vsel %vm652_vm2, %v1930_v35, %v1928_v39  ;;  %v1972_v60 = vsel %vm652_vm2, %v1970_v51, %v1968_v55  ;;  %v2009_v7 = vsel %vm648_vm1, %v2007_v63, %v2005_v2  ;;  %v2042_v10 = vld [vmem:[#allocation1 + $0x190] sm:$0x1]   ;;  %279 = vst [vmem:[#allocation1 + $0x248] sm:$0xf] %v3529_v26 }
  0x84   :  { %v1905_v28 = vld [vmem:[#allocation1 + $0x3ea] sm:$0x80]   ;;  %v1903_v47 = vsel %vm664_vm5, %v1901_v24, %v1899_v43  ;;  %v1936_v48 = vsel %vm656_vm3, %v1934_v36, %v1932_v44  ;;  %v1976_v1 = vsel %vm656_vm3, %v1974_v52, %v1972_v60  ;;  %v2013_v12 = vsel %vm652_vm2, %v2011_v3, %v2009_v7  ;;  %v2044_v13 = vld [vmem:[#allocation1 + $0x38f] sm:$0x2]   ;;  %v3537_v30 = vld [vmem:[%s5019_s0 + $0x104] sm:$0xf] }
  0x85   :  { %1867 = vrot.lane.b32.xlu0 %v1866_v37, %s3638_s24  ;;  %v1907_v53 = vsel %vm668_vm6, %v1905_v28, %v1903_v47  ;;  %v1940_v54 = vsel %vm660_vm4, %v1938_v40, %v1936_v48  ;;  %v1980_v6 = vsel %vm660_vm4, %v1978_v56, %v1976_v1  ;;  %v2048_v14 = vld [vmem:[#allocation1 + $0x1ae] sm:$0x4]   ;;  %v2017_v17 = vsel %vm656_vm3, %v2015_v4, %v2013_v12  ;;  %v3589_v31 = vld [vmem:[%s5019_s0 + $0x34] sm:$0xf]  ;;  %v3593_v34 = vld [vmem:[%s5019_s0 + $0x24] sm:$0xf] }
  0x86   :  { %1826 = vrot.lane.b32.xlu1 %v1825_v25, %s3638_s24  ;;  %v1944_v59 = vsel %vm664_vm5, %v1942_v41, %v1940_v54  ;;  %v1984_v11 = vsel %vm664_vm5, %v1982_v57, %v1980_v6  ;;  %v2052_v15 = vld [vmem:[#allocation1 + $0x3ad] sm:$0x8]   ;;  %v2046_v18 = vsel %vm644_vm0, %v2044_v13, %v2042_v10  ;;  %v2021_v22 = vsel %vm660_vm4, %v2019_v5, %v2017_v17  ;;  %v3525_v25 = vld [vmem:[%s5019_s0 + $0x134] sm:$0xf]  ;;  %v3601_v36 = vld [vmem:[%s5019_s0 + $0x4] sm:$0xf] }
  0x87   :  { %v1948_v0 = vsel %vm668_vm6, %v1946_v42, %v1944_v59  ;;  %v1988_v16 = vsel %vm668_vm6, %v1986_v58, %v1984_v11  ;;  %v2056_v19 = vld [vmem:[#allocation1 + $0x1cc] sm:$0x10]   ;;  %v2050_v23 = vsel %vm648_vm1, %v2048_v14, %v2046_v18  ;;  %v2025_v27 = vsel %vm664_vm5, %v2023_v8, %v2021_v22  ;;  %259 = vst [vmem:[#allocation1 + $0x268] sm:$0xf] %v3525_v25  ;;  %v3597_v35 = vld [vmem:[%s5019_s0 + $0x14] sm:$0xf] }
  0x88   :  { %v2060_v20 = vld [vmem:[#allocation1 + $0x3cb] sm:$0x20]   ;;  %v2054_v28 = vsel %vm652_vm2, %v2052_v15, %v2050_v23  ;;  %v2029_v32 = vsel %vm668_vm6, %v2027_v9, %v2025_v27  ;;  %299 = vst [vmem:[#allocation1 + $0x228] sm:$0xf] %v3533_v29  ;;  %319 = vst [vmem:[#allocation1 + $0x208] sm:$0xf] %v3537_v30 }
  0x89   :  { %1949 = vrot.lane.b32.xlu0 %v1948_v0, %s3639_s25  ;;  %v2064_v21 = vld [vmem:[#allocation1 + $0x1ea] sm:$0x40]   ;;  %v2058_v33 = vsel %vm656_vm3, %v2056_v19, %v2054_v28  ;;  %579 = vst [vmem:[#allocation1 + $0x68] sm:$0xf] %v3589_v31  ;;  %599 = vst [vmem:[#allocation1 + $0x48] sm:$0xf] %v3593_v34 }
  0x8a   :  { %1908 = vrot.lane.b32.xlu1 %v1907_v53, %s3638_s24  ;;  %v2068_v24 = vld [vmem:[#allocation1 + $0x3e9] sm:$0x80]   ;;  %v2062_v37 = vsel %vm660_vm4, %v2060_v20, %v2058_v33  ;;  %619 = vst [vmem:[#allocation1 + $0x28] sm:$0xf] %v3597_v35  ;;  %638 = vst [vmem:[#allocation1 + $0x8] sm:$0xf] %v3601_v36 }
  0x8b   :  { %v3509_v38 = vld [vmem:[%s5019_s0 + $0x174] sm:$0xf]  ;;  %v3513_v39 = vld [vmem:[%s5019_s0 + $0x164] sm:$0xf]  ;;  %v2066_v41 = vsel %vm664_vm5, %v2064_v21, %v2062_v37  ;;  %v2101_v62 = vld [vmem:[#allocation1 + $0x246] sm:$0x20]  }
  0x8c   :  { %v3517_v40 = vld [vmem:[%s5019_s0 + $0x154] sm:$0xf]  ;;  %179 = vst [vmem:[#allocation1 + $0x2e8] sm:$0xf] %v3509_v38  ;;  %199 = vst [vmem:[#allocation1 + $0x2c8] sm:$0xf] %v3513_v39  ;;  %v2070_v45 = vsel %vm668_vm6, %v2068_v24, %v2066_v41 }
  0x8d   :  { %2030 = vrot.lane.b32.xlu0 %v2029_v32, %s3639_s25  ;;  %219 = vst [vmem:[#allocation1 + $0x2a8] sm:$0xf] %v3517_v40  ;;  %v3521_v42 = vld [vmem:[%s5019_s0 + $0x144] sm:$0xf]  ;;  %v3573_v43 = vld [vmem:[%s5019_s0 + $0x74] sm:$0xf] }
  0x8e   :  { %1989 = vrot.lane.b32.xlu1 %v1988_v16, %s3639_s25  ;;  %v3577_v44 = vld [vmem:[%s5019_s0 + $0x64] sm:$0xf]  ;;  %239 = vst [vmem:[#allocation1 + $0x288] sm:$0xf] %v3521_v42  ;;  %499 = vst [vmem:[#allocation1 + $0xe8] sm:$0xf] %v3573_v43 }
  0x8f   :  { %519 = vst [vmem:[#allocation1 + $0xc8] sm:$0xf] %v3577_v44  ;;  %v3581_v46 = vld [vmem:[%s5019_s0 + $0x54] sm:$0xf]  ;;  %v3585_v47 = vld [vmem:[%s5019_s0 + $0x44] sm:$0xf] }
  0x90   :  { %v3493_v48 = vld [vmem:[%s5019_s0 + $0x1b4] sm:$0xf]  ;;  %539 = vst [vmem:[#allocation1 + $0xa8] sm:$0xf] %v3581_v46  ;;  %559 = vst [vmem:[#allocation1 + $0x88] sm:$0xf] %v3585_v47 }
  0x91   :  { %99 = vst [vmem:[#allocation1 + $0x368] sm:$0xf] %v3493_v48  ;;  %v3497_v49 = vld [vmem:[%s5019_s0 + $0x1a4] sm:$0xf]  ;;  %v3501_v50 = vld [vmem:[%s5019_s0 + $0x194] sm:$0xf] }
  0x92   :  { %2071 = vrot.lane.b32.xlu1 %v2070_v45, %s3639_s25  ;;  %v3505_v51 = vld [vmem:[%s5019_s0 + $0x184] sm:$0xf]  ;;  %119 = vst [vmem:[#allocation1 + $0x348] sm:$0xf] %v3497_v49  ;;  %139 = vst [vmem:[#allocation1 + $0x328] sm:$0xf] %v3501_v50 }
  0x93   :  { %159 = vst [vmem:[#allocation1 + $0x308] sm:$0xf] %v3505_v51  ;;  %v3557_v52 = vld [vmem:[%s5019_s0 + $0xb4] sm:$0xf]  ;;  %v3561_v53 = vld [vmem:[%s5019_s0 + $0xa4] sm:$0xf] }
  0x94   :  { %v3565_v54 = vld [vmem:[%s5019_s0 + $0x94] sm:$0xf]  ;;  %419 = vst [vmem:[#allocation1 + $0x168] sm:$0xf] %v3557_v52  ;;  %439 = vst [vmem:[#allocation1 + $0x148] sm:$0xf] %v3561_v53 }
  0x95   :  { %459 = vst [vmem:[#allocation1 + $0x128] sm:$0xf] %v3565_v54  ;;  %v3569_v55 = vld [vmem:[%s5019_s0 + $0x84] sm:$0xf]  ;;  %v2085_v56 = vld [vmem:[#allocation1 + $0x20a] sm:$0x2]  }
  0x96   :  { %479 = vst [vmem:[#allocation1 + $0x108] sm:$0xf] %v3569_v55  ;;  %v2083_v57 = vld [vmem:[#allocation1 + $0xb] sm:$0x1]   ;;  %v3477_v23 = vld [vmem:[%s5019_s0 + $0x1f4] sm:$0xf] }
  0x97   :  { %v2089_v58 = vld [vmem:[#allocation1 + $0x29] sm:$0x4]   ;;  %v2087_v60 = vsel %vm644_vm0, %v2085_v56, %v2083_v57  ;;  %v3481_v24 = vld [vmem:[%s5019_s0 + $0x1e4] sm:$0xf]  ;;  %19 = vst [vmem:[#allocation1 + $0x3e8] sm:$0xf] %v3477_v23 }
  0x98   :  { %v2093_v59 = vld [vmem:[#allocation1 + $0x228] sm:$0x8]   ;;  %v2091_v63 = vsel %vm648_vm1, %v2089_v58, %v2087_v60  ;;  %39 = vst [vmem:[#allocation1 + $0x3c8] sm:$0xf] %v3481_v24  ;;  %v3485_v29 = vld [vmem:[%s5019_s0 + $0x1d4] sm:$0xf] }
  0x99   :  { %v2097_v61 = vld [vmem:[#allocation1 + $0x47] sm:$0x10]   ;;  %v2095_v4 = vsel %vm652_vm2, %v2093_v59, %v2091_v63  ;;  %v3489_v30 = vld [vmem:[%s5019_s0 + $0x1c4] sm:$0xf]  ;;  %v3541_v31 = vld [vmem:[%s5019_s0 + $0xf4] sm:$0xf]  ;;  %v4229_v63 = vpop.permute.xlu0 %808  }
  0x9a   :  { %v2105_v0 = vld [vmem:[#allocation1 + $0x65] sm:$0x40]   ;;  %v2099_v8 = vsel %vm656_vm3, %v2097_v61, %v2095_v4  ;;  %59 = vst [vmem:[#allocation1 + $0x3a8] sm:$0xf] %v3485_v29  ;;  %79 = vst [vmem:[#allocation1 + $0x388] sm:$0xf] %v3489_v30 }
  0x9b   :  { %v2109_v1 = vld [vmem:[#allocation1 + $0x264] sm:$0x80]   ;;  %v2103_v13 = vsel %vm660_vm4, %v2101_v62, %v2099_v8  ;;  %339 = vst [vmem:[#allocation1 + $0x1e8] sm:$0xf] %v3541_v31  ;;  %v3545_v34 = vld [vmem:[%s5019_s0 + $0xe4] sm:$0xf] }
  0x9c   :  { %v2125_v2 = vld [vmem:[#allocation1 + $0x28a] sm:$0x2]   ;;  %v2107_v19 = vsel %vm664_vm5, %v2105_v0, %v2103_v13  ;;  %v3549_v35 = vld [vmem:[%s5019_s0 + $0xd4] sm:$0xf]  ;;  %v3553_v36 = vld [vmem:[%s5019_s0 + $0xc4] sm:$0xf] }
  0x9d   :  { %v2133_v3 = vld [vmem:[#allocation1 + $0x2a8] sm:$0x8]   ;;  %v2111_v25 = vsel %vm668_vm6, %v2109_v1, %v2107_v19  ;;  %359 = vst [vmem:[#allocation1 + $0x1c8] sm:$0xf] %v3545_v34  ;;  %379 = vst [vmem:[#allocation1 + $0x1a8] sm:$0xf] %v3549_v35 }
  0x9e   :  { %v2123_v5 = vld [vmem:[#allocation1 + $0x8b] sm:$0x1]   ;;  %2112 = vrot.lane.b32.xlu0 %v2111_v25, %s3640_s27  ;;  %399 = vst [vmem:[#allocation1 + $0x188] sm:$0xf] %v3553_v36  ;;  %v2246_v39 = vld [vmem:[#allocation1 + $0xa] sm:$0x1]  }
  0x9f   :  { %v2129_v6 = vld [vmem:[#allocation1 + $0xa9] sm:$0x4]   ;;  %v2127_v9 = vsel %vm644_vm0, %v2125_v2, %v2123_v5  ;;  %v2248_v40 = vld [vmem:[#allocation1 + $0x209] sm:$0x2]  }
  0xa0   :  { %v2141_v7 = vld [vmem:[#allocation1 + $0x2c6] sm:$0x20]   ;;  %v2131_v14 = vsel %vm648_vm1, %v2129_v6, %v2127_v9  ;;  %v2252_v41 = vld [vmem:[#allocation1 + $0x28] sm:$0x4]   ;;  %v2250_v45 = vsel %vm644_vm0, %v2248_v40, %v2246_v39 }
  0xa1   :  { %v2137_v10 = vld [vmem:[#allocation1 + $0xc7] sm:$0x10]   ;;  %v2135_v20 = vsel %vm652_vm2, %v2133_v3, %v2131_v14  ;;  %v2256_v46 = vld [vmem:[#allocation1 + $0x227] sm:$0x8]   ;;  %v2254_v49 = vsel %vm648_vm1, %v2252_v41, %v2250_v45 }
  0xa2   :  { %v2145_v11 = vld [vmem:[#allocation1 + $0xe5] sm:$0x40]   ;;  %v2139_v26 = vsel %vm656_vm3, %v2137_v10, %v2135_v20  ;;  %v2260_v47 = vld [vmem:[#allocation1 + $0x46] sm:$0x10]   ;;  %v2258_v53 = vsel %vm652_vm2, %v2256_v46, %v2254_v49 }
  0xa3   :  { %v2166_v12 = vld [vmem:[#allocation1 + $0x30a] sm:$0x2]   ;;  %v2143_v32 = vsel %vm660_vm4, %v2141_v7, %v2139_v26  ;;  %v2264_v50 = vld [vmem:[#allocation1 + $0x245] sm:$0x20]   ;;  %v2262_v58 = vsel %vm656_vm3, %v2260_v47, %v2258_v53  ;;  %v2415_v53 = vld [vmem:[#allocation1 + $0x27] sm:$0x4]  }
  0xa4   :  { %v2149_v15 = vld [vmem:[#allocation1 + $0x2e4] sm:$0x80]   ;;  %v2147_v37 = vsel %vm664_vm5, %v2145_v11, %v2143_v32  ;;  %v2268_v51 = vld [vmem:[#allocation1 + $0x64] sm:$0x40]   ;;  %v2266_v0 = vsel %vm660_vm4, %v2264_v50, %v2262_v58 }
  0xa5   :  { %v2170_v16 = vld [vmem:[#allocation1 + $0x129] sm:$0x4]   ;;  %v2151_v42 = vsel %vm668_vm6, %v2149_v15, %v2147_v37  ;;  %v2286_v54 = vld [vmem:[#allocation1 + $0x8a] sm:$0x1]   ;;  %v2270_v3 = vsel %vm664_vm5, %v2268_v51, %v2266_v0 }
  0xa6   :  { %v2174_v17 = vld [vmem:[#allocation1 + $0x328] sm:$0x8]   ;;  %2152 = vrot.lane.b32.xlu1 %v2151_v42, %s3640_s27  ;;  %v2288_v55 = vld [vmem:[#allocation1 + $0x289] sm:$0x2]  }
  0xa7   :  { %v2178_v18 = vld [vmem:[#allocation1 + $0x147] sm:$0x10]   ;;  %v2292_v56 = vld [vmem:[#allocation1 + $0xa8] sm:$0x4]   ;;  %v2290_v60 = vsel %vm644_vm0, %v2288_v55, %v2286_v54  ;;  %v2419_v54 = vld [vmem:[#allocation1 + $0x226] sm:$0x8]   ;;  %v4259_v55 = vpop.permute.xlu0 %848  }
  0xa8   :  { %v2164_v21 = vld [vmem:[#allocation1 + $0x10b] sm:$0x1]   ;;  %v2272_v59 = vld [vmem:[#allocation1 + $0x263] sm:$0x80]   ;;  %v2294_v1 = vsel %vm648_vm1, %v2292_v56, %v2290_v60  ;;  %v2423_v60 = vld [vmem:[#allocation1 + $0x45] sm:$0x10]  }
  0xa9   :  { %v2182_v22 = vld [vmem:[#allocation1 + $0x346] sm:$0x20]   ;;  %v2168_v27 = vsel %vm644_vm0, %v2166_v12, %v2164_v21  ;;  %v2296_v61 = vld [vmem:[#allocation1 + $0x2a7] sm:$0x8]   ;;  %v2274_v10 = vsel %vm668_vm6, %v2272_v59, %v2270_v3  ;;  %v2449_v3 = vld [vmem:[#allocation1 + $0x89] sm:$0x1]  }
  0xaa   :  { %v2186_v28 = vld [vmem:[#allocation1 + $0x165] sm:$0x40]   ;;  %v2172_v33 = vsel %vm648_vm1, %v2170_v16, %v2168_v27  ;;  %v2300_v62 = vld [vmem:[#allocation1 + $0xc6] sm:$0x10]   ;;  %v2298_v4 = vsel %vm652_vm2, %v2296_v61, %v2294_v1  ;;  %v2427_v61 = vld [vmem:[#allocation1 + $0x244] sm:$0x20]  }
  0xab   :  { %v2176_v38 = vsel %vm652_vm2, %v2174_v17, %v2172_v33  ;;  %v2190_v44 = vld [vmem:[#allocation1 + $0x364] sm:$0x80]   ;;  %v2304_v5 = vld [vmem:[#allocation1 + $0x2c5] sm:$0x20]   ;;  %v2302_v11 = vsel %vm656_vm3, %v2300_v62, %v2298_v4  ;;  %v4239_v17 = vpop.permute.xlu1 %889   ;;  %v2451_v4 = vld [vmem:[#allocation1 + $0x288] sm:$0x2]  }
  0xac   :  { %v2180_v43 = vsel %vm656_vm3, %v2178_v18, %v2176_v38  ;;  %v2207_v2 = vld [vmem:[#allocation1 + $0x38a] sm:$0x2]   ;;  %v2308_v14 = vld [vmem:[#allocation1 + $0xe4] sm:$0x40]   ;;  %v2306_v26 = vsel %vm660_vm4, %v2304_v5, %v2302_v11 }
  0xad   :  { %v2184_v48 = vsel %vm660_vm4, %v2182_v22, %v2180_v43  ;;  %v2205_v6 = vld [vmem:[#allocation1 + $0x18b] sm:$0x1]   ;;  %v2327_v15 = vld [vmem:[#allocation1 + $0x10a] sm:$0x1]   ;;  %v2310_v43 = vsel %vm664_vm5, %v2308_v14, %v2306_v26  ;;  %v2467_v14 = vld [vmem:[#allocation1 + $0x2c4] sm:$0x20]  }
  0xae   :  { %v2188_v52 = vsel %vm664_vm5, %v2186_v28, %v2184_v48  ;;  %v2211_v7 = vld [vmem:[#allocation1 + $0x1a9] sm:$0x4]   ;;  %v2209_v12 = vsel %vm644_vm0, %v2207_v2, %v2205_v6  ;;  %v2329_v16 = vld [vmem:[#allocation1 + $0x309] sm:$0x2]   ;;  %v2409_v48 = vld [vmem:[#allocation1 + $0x9] sm:$0x1]  }
  0xaf   :  { %v2192_v57 = vsel %vm668_vm6, %v2190_v44, %v2188_v52  ;;  %v2215_v8 = vld [vmem:[#allocation1 + $0x3a8] sm:$0x8]   ;;  %v2213_v18 = vsel %vm648_vm1, %v2211_v7, %v2209_v12  ;;  %v2331_v20 = vsel %vm644_vm0, %v2329_v16, %v2327_v15  ;;  %v2333_v21 = vld [vmem:[#allocation1 + $0x128] sm:$0x4]   ;;  %v2411_v52 = vld [vmem:[#allocation1 + $0x208] sm:$0x2]   ;;  %v2453_v7 = vsel %vm644_vm0, %v2451_v4, %v2449_v3  ;;  %v4274_v16 = vpop.permute.xlu0 %971  }
  0xb0   :  { %2193 = vrot.lane.b32.xlu0 %v2192_v57, %s3640_s27  ;;  %v2223_v9 = vld [vmem:[#allocation1 + $0x3c6] sm:$0x20]   ;;  %v2337_v22 = vld [vmem:[#allocation1 + $0x327] sm:$0x8]   ;;  %v2217_v24 = vsel %vm652_vm2, %v2215_v8, %v2213_v18  ;;  %v2335_v27 = vsel %vm648_vm1, %v2333_v21, %v2331_v20  ;;  %v2413_v59 = vsel %vm644_vm0, %v2411_v52, %v2409_v48  ;;  %v2431_v2 = vld [vmem:[#allocation1 + $0x63] sm:$0x40]  }
  0xb1   :  { %v2219_v13 = vld [vmem:[#allocation1 + $0x1c7] sm:$0x10]   ;;  %v2341_v23 = vld [vmem:[#allocation1 + $0x146] sm:$0x10]   ;;  %v2339_v32 = vsel %vm652_vm2, %v2337_v22, %v2335_v27  ;;  %v2417_v1 = vsel %vm648_vm1, %v2415_v53, %v2413_v59  ;;  %v2455_v8 = vld [vmem:[#allocation1 + $0xa7] sm:$0x4]  }
  0xb2   :  { %v2231_v19 = vld [vmem:[#allocation1 + $0x3e4] sm:$0x80]   ;;  %v2345_v28 = vld [vmem:[#allocation1 + $0x345] sm:$0x20]   ;;  %v2221_v30 = vsel %vm656_vm3, %v2219_v13, %v2217_v24  ;;  %v2343_v37 = vsel %vm656_vm3, %v2341_v23, %v2339_v32  ;;  %v2421_v6 = vsel %vm652_vm2, %v2419_v54, %v2417_v1  ;;  %v2435_v12 = vld [vmem:[#allocation1 + $0x262] sm:$0x80]   ;;  %v2457_v13 = vsel %vm648_vm1, %v2455_v8, %v2453_v7 }
  0xb3   :  { %v2227_v25 = vld [vmem:[#allocation1 + $0x1e5] sm:$0x40]   ;;  %v2349_v29 = vld [vmem:[#allocation1 + $0x164] sm:$0x40]   ;;  %v2225_v36 = vsel %vm660_vm4, %v2223_v9, %v2221_v30  ;;  %v2347_v44 = vsel %vm660_vm4, %v2345_v28, %v2343_v37  ;;  %v2459_v9 = vld [vmem:[#allocation1 + $0x2a6] sm:$0x8]   ;;  %v2425_v11 = vsel %vm656_vm3, %v2423_v60, %v2421_v6 }
  0xb4   :  { %2275 = vrot.lane.b32.xlu0 %v2274_v10, %s3641_s4  ;;  %v2312_v31 = vld [vmem:[#allocation1 + $0x2e3] sm:$0x80]   ;;  %v2229_v42 = vsel %vm664_vm5, %v2227_v25, %v2225_v36  ;;  %v2351_v50 = vsel %vm664_vm5, %v2349_v29, %v2347_v44  ;;  %v2463_v10 = vld [vmem:[#allocation1 + $0xc5] sm:$0x10]   ;;  %v2429_v18 = vsel %vm660_vm4, %v2427_v61, %v2425_v11  ;;  %v2572_v53 = vld [vmem:[#allocation1 + $0x8] sm:$0x1]  }
  0xb5   :  { %v2368_v33 = vld [vmem:[#allocation1 + $0x18a] sm:$0x1]   ;;  %v2233_v49 = vsel %vm668_vm6, %v2231_v19, %v2229_v42  ;;  %v2314_v62 = vsel %vm668_vm6, %v2312_v31, %v2310_v43  ;;  %v2471_v15 = vld [vmem:[#allocation1 + $0xe3] sm:$0x40]   ;;  %v2461_v19 = vsel %vm652_vm2, %v2459_v9, %v2457_v13  ;;  %v2433_v25 = vsel %vm664_vm5, %v2431_v2, %v2429_v18  ;;  %v4283_v31 = vpop.permute.xlu1 %930   ;;  %v4291_v43 = vpop.permute.xlu0 %1052   ;;  %v2574_v54 = vld [vmem:[#allocation1 + $0x207] sm:$0x2]  }
  0xb6   :  { %v2370_v34 = vld [vmem:[#allocation1 + $0x389] sm:$0x2]   ;;  %2234 = vrot.lane.b32.xlu1 %v2233_v49, %s3640_s27  ;;  %v2475_v20 = vld [vmem:[#allocation1 + $0x2e2] sm:$0x80]   ;;  %v2465_v26 = vsel %vm656_vm3, %v2463_v10, %v2461_v19  ;;  %v2437_v32 = vsel %vm668_vm6, %v2435_v12, %v2433_v25  ;;  %v2576_v59 = vsel %vm644_vm0, %v2574_v54, %v2572_v53  ;;  %v2578_v60 = vld [vmem:[#allocation1 + $0x26] sm:$0x4]  }
  0xb7   :  { %v2374_v35 = vld [vmem:[#allocation1 + $0x1a8] sm:$0x4]   ;;  %v2372_v39 = vsel %vm644_vm0, %v2370_v34, %v2368_v33  ;;  %v2490_v21 = vld [vmem:[#allocation1 + $0x109] sm:$0x1]   ;;  %v2469_v33 = vsel %vm660_vm4, %v2467_v14, %v2465_v26  ;;  %v2582_v61 = vld [vmem:[#allocation1 + $0x225] sm:$0x8]   ;;  %v2580_v2 = vsel %vm648_vm1, %v2578_v60, %v2576_v59 }
  0xb8   :  { %v2353_v38 = vld [vmem:[#allocation1 + $0x363] sm:$0x80]   ;;  %v2376_v45 = vsel %vm648_vm1, %v2374_v35, %v2372_v39  ;;  %v2492_v22 = vld [vmem:[#allocation1 + $0x308] sm:$0x2]   ;;  %v2590_v3 = vld [vmem:[#allocation1 + $0x243] sm:$0x20]   ;;  %v2584_v7 = vsel %vm652_vm2, %v2582_v61, %v2580_v2 }
  0xb9   :  { %v2378_v40 = vld [vmem:[#allocation1 + $0x3a7] sm:$0x8]   ;;  %v2355_v56 = vsel %vm668_vm6, %v2353_v38, %v2351_v50  ;;  %v2496_v23 = vld [vmem:[#allocation1 + $0x127] sm:$0x4]   ;;  %v2494_v27 = vsel %vm644_vm0, %v2492_v22, %v2490_v21  ;;  %v2473_v38 = vsel %vm664_vm5, %v2471_v15, %v2469_v33  ;;  %v2594_v4 = vld [vmem:[#allocation1 + $0x62] sm:$0x40]   ;;  %v4316_v19 = vpop.permute.xlu0 %1134  }
  0xba   :  { %v2382_v41 = vld [vmem:[#allocation1 + $0x1c6] sm:$0x10]   ;;  %v2380_v51 = vsel %vm652_vm2, %v2378_v40, %v2376_v45  ;;  %2356 = vrot.lane.b32.xlu0 %v2355_v56, %s3641_s4  ;;  %2315 = vrot.lane.b32.xlu1 %v2314_v62, %s3641_s4  ;;  %v2500_v28 = vld [vmem:[#allocation1 + $0x326] sm:$0x8]   ;;  %v2498_v34 = vsel %vm648_vm1, %v2496_v23, %v2494_v27  ;;  %v2477_v49 = vsel %vm668_vm6, %v2475_v20, %v2473_v38  ;;  %v4299_v56 = vpop.permute.xlu1 %1011   ;;  %v2586_v62 = vld [vmem:[#allocation1 + $0x44] sm:$0x10]  }
  0xbb   :  { %v2386_v46 = vld [vmem:[#allocation1 + $0x3c5] sm:$0x20]   ;;  %v2384_v57 = vsel %vm656_vm3, %v2382_v41, %v2380_v51  ;;  %v2504_v29 = vld [vmem:[#allocation1 + $0x145] sm:$0x10]   ;;  %v2502_v39 = vsel %vm652_vm2, %v2500_v28, %v2498_v34  ;;  %v2612_v8 = vld [vmem:[#allocation1 + $0x88] sm:$0x1]   ;;  %v2588_v11 = vsel %vm656_vm3, %v2586_v62, %v2584_v7 }
  0xbc   :  { %v2390_v47 = vld [vmem:[#allocation1 + $0x1e4] sm:$0x40]   ;;  %v2388_v0 = vsel %vm660_vm4, %v2386_v46, %v2384_v57  ;;  %v2508_v30 = vld [vmem:[#allocation1 + $0x344] sm:$0x20]   ;;  %v2506_v44 = vsel %vm656_vm3, %v2504_v29, %v2502_v39  ;;  %v2614_v9 = vld [vmem:[#allocation1 + $0x287] sm:$0x2]   ;;  %v2592_v21 = vsel %vm660_vm4, %v2590_v3, %v2588_v11 }
  0xbd   :  { %v2394_v58 = vld [vmem:[#allocation1 + $0x3e3] sm:$0x80]   ;;  %v2392_v5 = vsel %vm664_vm5, %v2390_v47, %v2388_v0  ;;  %v2512_v35 = vld [vmem:[#allocation1 + $0x163] sm:$0x40]   ;;  %v2510_v50 = vsel %vm660_vm4, %v2508_v30, %v2506_v44  ;;  %v2616_v12 = vsel %vm644_vm0, %v2614_v9, %v2612_v8  ;;  %v2618_v13 = vld [vmem:[#allocation1 + $0xa6] sm:$0x4]   ;;  %v2596_v26 = vsel %vm664_vm5, %v2594_v4, %v2592_v21 }
  0xbe   :  { %v2396_v24 = vsel %vm668_vm6, %v2394_v58, %v2392_v5  ;;  %v2516_v36 = vld [vmem:[#allocation1 + $0x362] sm:$0x80]   ;;  %2438 = vrot.lane.b32.xlu0 %v2437_v32, %s3642_s5  ;;  %v2514_v57 = vsel %vm664_vm5, %v2512_v35, %v2510_v50  ;;  %v2598_v5 = vld [vmem:[#allocation1 + $0x261] sm:$0x80]   ;;  %v4314_v18 = vpop.permute.xlu1 %1093   ;;  %v2620_v22 = vsel %vm648_vm1, %v2618_v13, %v2616_v12  ;;  %v4334_v50 = vpop.permute.xlu0 %1215   ;;  %v3526_v62 = vld [vmem:[%s5019_s0 + $0x130] sm:$0xf] }
  0xbf   :  { %v2531_v37 = vld [vmem:[#allocation1 + $0x189] sm:$0x1]   ;;  %2397 = vrot.lane.b32.xlu1 %v2396_v24, %s3641_s4  ;;  %v2518_v0 = vsel %vm668_vm6, %v2516_v36, %v2514_v57  ;;  %v2622_v14 = vld [vmem:[#allocation1 + $0x2a5] sm:$0x8]   ;;  %v2600_v32 = vsel %vm668_vm6, %v2598_v5, %v2596_v26  ;;  %264 = vst [vmem:[#allocation1 + $0x260] sm:$0xf] %v3526_v62 }
  0xc0   :  { %v2533_v40 = vld [vmem:[#allocation1 + $0x388] sm:$0x2]   ;;  %v2626_v15 = vld [vmem:[#allocation1 + $0xc4] sm:$0x10]   ;;  %v2624_v27 = vsel %vm652_vm2, %v2622_v14, %v2620_v22  ;;  %v3534_v3 = vld [vmem:[%s5019_s0 + $0x110] sm:$0xf] }
  0xc1   :  { %v2537_v41 = vld [vmem:[#allocation1 + $0x1a7] sm:$0x4]   ;;  %v2535_v45 = vsel %vm644_vm0, %v2533_v40, %v2531_v37  ;;  %v2630_v23 = vld [vmem:[#allocation1 + $0x2c3] sm:$0x20]   ;;  %v2628_v33 = vsel %vm656_vm3, %v2626_v15, %v2624_v27  ;;  %v3538_v4 = vld [vmem:[%s5019_s0 + $0x100] sm:$0xf] }
  0xc2   :  { %v2541_v42 = vld [vmem:[#allocation1 + $0x3a6] sm:$0x8]   ;;  %v2539_v51 = vsel %vm648_vm1, %v2537_v41, %v2535_v45  ;;  %2519 = vrot.lane.b32.xlu0 %v2518_v0, %s3642_s5  ;;  %v2634_v24 = vld [vmem:[#allocation1 + $0xe2] sm:$0x40]   ;;  %v2632_v38 = vsel %vm660_vm4, %v2630_v23, %v2628_v33  ;;  %v4330_v44 = vpop.permute.xlu1 %1174   ;;  %v3530_v0 = vld [vmem:[%s5019_s0 + $0x120] sm:$0xf] }
  0xc3   :  { %v2545_v46 = vld [vmem:[#allocation1 + $0x1c5] sm:$0x10]   ;;  %v2543_v58 = vsel %vm652_vm2, %v2541_v42, %v2539_v51  ;;  %2478 = vrot.lane.b32.xlu1 %v2477_v49, %s3642_s5  ;;  %v2638_v25 = vld [vmem:[#allocation1 + $0x2e1] sm:$0x80]   ;;  %v2636_v45 = vsel %vm664_vm5, %v2634_v24, %v2632_v38  ;;  %284 = vst [vmem:[#allocation1 + $0x240] sm:$0xf] %v3530_v0 }
  0xc4   :  { %v2549_v47 = vld [vmem:[#allocation1 + $0x3c4] sm:$0x20]   ;;  %v2547_v1 = vsel %vm656_vm3, %v2545_v46, %v2543_v58  ;;  %v2653_v28 = vld [vmem:[#allocation1 + $0x108] sm:$0x1]   ;;  %v2640_v51 = vsel %vm668_vm6, %v2638_v25, %v2636_v45  ;;  %v3590_v5 = vld [vmem:[%s5019_s0 + $0x30] sm:$0xf] }
  0xc5   :  { %v2553_v48 = vld [vmem:[#allocation1 + $0x1e3] sm:$0x40]   ;;  %v2551_v6 = vsel %vm660_vm4, %v2549_v47, %v2547_v1  ;;  %v2655_v29 = vld [vmem:[#allocation1 + $0x307] sm:$0x2]   ;;  %304 = vst [vmem:[#allocation1 + $0x220] sm:$0xf] %v3534_v3 }
  0xc6   :  { %v2557_v52 = vld [vmem:[#allocation1 + $0x3e2] sm:$0x80]   ;;  %v2555_v10 = vsel %vm664_vm5, %v2553_v48, %v2551_v6  ;;  %v2659_v30 = vld [vmem:[#allocation1 + $0x126] sm:$0x4]   ;;  %v2657_v34 = vsel %vm644_vm0, %v2655_v29, %v2653_v28  ;;  %2601 = vrot.lane.b32.xlu0 %v2600_v32, %s3643_s6  ;;  %v4359_v6 = vpop.permute.xlu1 %1256   ;;  %324 = vst [vmem:[#allocation1 + $0x200] sm:$0xf] %v3538_v4 }
  0xc7   :  { %v2559_v20 = vsel %vm668_vm6, %v2557_v52, %v2555_v10  ;;  %v2663_v35 = vld [vmem:[#allocation1 + $0x325] sm:$0x8]   ;;  %v2661_v39 = vsel %vm648_vm1, %v2659_v30, %v2657_v34  ;;  %584 = vst [vmem:[#allocation1 + $0x60] sm:$0xf] %v3590_v5  ;;  %v3594_v9 = vld [vmem:[%s5019_s0 + $0x20] sm:$0xf] }
  0xc8   :  { %2560 = vrot.lane.b32.xlu1 %v2559_v20, %s3642_s5  ;;  %v2667_v36 = vld [vmem:[#allocation1 + $0x144] sm:$0x10]   ;;  %v2665_v46 = vsel %vm652_vm2, %v2663_v35, %v2661_v39  ;;  %v3598_v10 = vld [vmem:[%s5019_s0 + $0x10] sm:$0xf]  ;;  %v639_v11 = vld [vmem:[%s5019_s0] sm:$0xf]  ;;  %v4383_v20 = vpop.permute.xlu0 %1297  }
  0xc9   :  { %v2671_v37 = vld [vmem:[#allocation1 + $0x343] sm:$0x20]   ;;  %v2669_v52 = vsel %vm656_vm3, %v2667_v36, %v2665_v46  ;;  %604 = vst [vmem:[#allocation1 + $0x40] sm:$0xf] %v3594_v9  ;;  %624 = vst [vmem:[#allocation1 + $0x20] sm:$0xf] %v3598_v10 }
  0xca   :  { %v2675_v40 = vld [vmem:[#allocation1 + $0x162] sm:$0x40]   ;;  %v2673_v59 = vsel %vm660_vm4, %v2671_v37, %v2669_v52  ;;  %640 = vst [vmem:[#allocation1] sm:$0xf] %v639_v11  ;;  %v3510_v13 = vld [vmem:[%s5019_s0 + $0x170] sm:$0xf]  ;;  %v4415_v33 = vpop.permute.xlu1 %1337  }
  0xcb   :  { %v2679_v41 = vld [vmem:[#allocation1 + $0x361] sm:$0x80]   ;;  %v2677_v1 = vsel %vm664_vm5, %v2675_v40, %v2673_v59  ;;  %v3514_v14 = vld [vmem:[%s5019_s0 + $0x160] sm:$0xf]  ;;  %v3518_v15 = vld [vmem:[%s5019_s0 + $0x150] sm:$0xf] }
  0xcc   :  { %v2694_v42 = vld [vmem:[#allocation1 + $0x188] sm:$0x1]   ;;  %2641 = vrot.lane.b32.xlu1 %v2640_v51, %s3643_s6  ;;  %v2681_v7 = vsel %vm668_vm6, %v2679_v41, %v2677_v1  ;;  %184 = vst [vmem:[#allocation1 + $0x2e0] sm:$0xf] %v3510_v13  ;;  %204 = vst [vmem:[#allocation1 + $0x2c0] sm:$0xf] %v3514_v14  ;;  %v4429_v39 = vpop.permute.xlu0 %1378  }
  0xcd   :  { %v2696_v47 = vld [vmem:[#allocation1 + $0x387] sm:$0x2]   ;;  %2682 = vrot.lane.b32.xlu0 %v2681_v7, %s3643_s6  ;;  %224 = vst [vmem:[#allocation1 + $0x2a0] sm:$0xf] %v3518_v15  ;;  %v3522_v22 = vld [vmem:[%s5019_s0 + $0x140] sm:$0xf] }
  0xce   :  { %v2700_v48 = vld [vmem:[#allocation1 + $0x1a6] sm:$0x4]   ;;  %v2698_v53 = vsel %vm644_vm0, %v2696_v47, %v2694_v42  ;;  %v3574_v23 = vld [vmem:[%s5019_s0 + $0x70] sm:$0xf]  ;;  %v3578_v24 = vld [vmem:[%s5019_s0 + $0x60] sm:$0xf] }
  0xcf   :  { %v2704_v49 = vld [vmem:[#allocation1 + $0x3a5] sm:$0x8]   ;;  %v2702_v60 = vsel %vm648_vm1, %v2700_v48, %v2698_v53  ;;  %244 = vst [vmem:[#allocation1 + $0x280] sm:$0xf] %v3522_v22  ;;  %504 = vst [vmem:[#allocation1 + $0xe0] sm:$0xf] %v3574_v23 }
  0xd0   :  { %v2708_v54 = vld [vmem:[#allocation1 + $0x1c4] sm:$0x10]   ;;  %v2706_v2 = vsel %vm652_vm2, %v2704_v49, %v2702_v60  ;;  %524 = vst [vmem:[#allocation1 + $0xc0] sm:$0xf] %v3578_v24  ;;  %v3582_v26 = vld [vmem:[%s5019_s0 + $0x50] sm:$0xf] }
  0xd1   :  { %v2712_v57 = vld [vmem:[#allocation1 + $0x3c3] sm:$0x20]   ;;  %v2710_v8 = vsel %vm656_vm3, %v2708_v54, %v2706_v2  ;;  %v3586_v27 = vld [vmem:[%s5019_s0 + $0x40] sm:$0xf]  ;;  %v3494_v28 = vld [vmem:[%s5019_s0 + $0x1b0] sm:$0xf]  ;;  %v4433_v54 = vpop.permute.xlu1 %1419  }
  0xd2   :  { %v2716_v58 = vld [vmem:[#allocation1 + $0x1e2] sm:$0x40]   ;;  %v2714_v12 = vsel %vm660_vm4, %v2712_v57, %v2710_v8  ;;  %544 = vst [vmem:[#allocation1 + $0xa0] sm:$0xf] %v3582_v26  ;;  %564 = vst [vmem:[#allocation1 + $0x80] sm:$0xf] %v3586_v27 }
  0xd3   :  { %v2720_v61 = vld [vmem:[#allocation1 + $0x3e1] sm:$0x80]   ;;  %v2718_v21 = vsel %vm664_vm5, %v2716_v58, %v2714_v12  ;;  %104 = vst [vmem:[#allocation1 + $0x360] sm:$0xf] %v3494_v28  ;;  %v3498_v29 = vld [vmem:[%s5019_s0 + $0x1a0] sm:$0xf] }
  0xd4   :  { %v2722_v25 = vsel %vm668_vm6, %v2720_v61, %v2718_v21  ;;  %v3502_v30 = vld [vmem:[%s5019_s0 + $0x190] sm:$0xf]  ;;  %v3506_v32 = vld [vmem:[%s5019_s0 + $0x180] sm:$0xf]  ;;  %124 = vst [vmem:[#allocation1 + $0x340] sm:$0xf] %v3498_v29 }
  0xd5   :  { %2723 = vrot.lane.b32.xlu1 %v2722_v25, %s3643_s6  ;;  %144 = vst [vmem:[#allocation1 + $0x320] sm:$0xf] %v3502_v30  ;;  %164 = vst [vmem:[#allocation1 + $0x300] sm:$0xf] %v3506_v32  ;;  %v3558_v34 = vld [vmem:[%s5019_s0 + $0xb0] sm:$0xf] }
  0xd6   :  { %v3562_v35 = vld [vmem:[%s5019_s0 + $0xa0] sm:$0xf]  ;;  %v3566_v36 = vld [vmem:[%s5019_s0 + $0x90] sm:$0xf]  ;;  %424 = vst [vmem:[#allocation1 + $0x160] sm:$0xf] %v3558_v34 }
  0xd7   :  { %444 = vst [vmem:[#allocation1 + $0x140] sm:$0xf] %v3562_v35  ;;  %464 = vst [vmem:[#allocation1 + $0x120] sm:$0xf] %v3566_v36  ;;  %v3570_v37 = vld [vmem:[%s5019_s0 + $0x80] sm:$0xf] }
  0xd8   :  { %v2737_v38 = vld [vmem:[#allocation1 + $0x202] sm:$0x2]   ;;  %484 = vst [vmem:[#allocation1 + $0x100] sm:$0xf] %v3570_v37  ;;  %v3478_v14 = vld [vmem:[%s5019_s0 + $0x1f0] sm:$0xf] }
  0xd9   :  { %v2735_v40 = vld [vmem:[#allocation1 + $0x3] sm:$0x1]   ;;  %24 = vst [vmem:[#allocation1 + $0x3e0] sm:$0xf] %v3478_v14  ;;  %v3486_v25 = vld [vmem:[%s5019_s0 + $0x1d0] sm:$0xf] }
  0xda   :  { %v2741_v41 = vld [vmem:[#allocation1 + $0x21] sm:$0x4]   ;;  %v2739_v45 = vsel %vm644_vm0, %v2737_v38, %v2735_v40  ;;  %v3542_v27 = vld [vmem:[%s5019_s0 + $0xf0] sm:$0xf]  ;;  %64 = vst [vmem:[#allocation1 + $0x3a0] sm:$0xf] %v3486_v25 }
  0xdb   :  { %v2745_v42 = vld [vmem:[#allocation1 + $0x220] sm:$0x8]   ;;  %v2743_v48 = vsel %vm648_vm1, %v2741_v41, %v2739_v45  ;;  %344 = vst [vmem:[#allocation1 + $0x1e0] sm:$0xf] %v3542_v27  ;;  %v3550_v32 = vld [vmem:[%s5019_s0 + $0xd0] sm:$0xf] }
  0xdc   :  { %v2749_v46 = vld [vmem:[#allocation1 + $0x3f] sm:$0x10]   ;;  %v2747_v57 = vsel %vm652_vm2, %v2745_v42, %v2743_v48  ;;  %384 = vst [vmem:[#allocation1 + $0x1a0] sm:$0xf] %v3550_v32  ;;  %v2898_v37 = vld [vmem:[#allocation1 + $0x2] sm:$0x1]  }
  0xdd   :  { %v2753_v47 = vld [vmem:[#allocation1 + $0x23e] sm:$0x20]   ;;  %v2751_v61 = vsel %vm656_vm3, %v2749_v46, %v2747_v57  ;;  %v2900_v38 = vld [vmem:[#allocation1 + $0x201] sm:$0x2]  }
  0xde   :  { %v2757_v49 = vld [vmem:[#allocation1 + $0x5d] sm:$0x40]   ;;  %v2755_v3 = vsel %vm660_vm4, %v2753_v47, %v2751_v61  ;;  %v2904_v40 = vld [vmem:[#allocation1 + $0x20] sm:$0x4]   ;;  %v2902_v46 = vsel %vm644_vm0, %v2900_v38, %v2898_v37 }
  0xdf   :  { %v2761_v51 = vld [vmem:[#allocation1 + $0x25c] sm:$0x80]   ;;  %v2759_v10 = vsel %vm664_vm5, %v2757_v49, %v2755_v3  ;;  %v2908_v47 = vld [vmem:[#allocation1 + $0x21f] sm:$0x8]  }
  0xe0   :  { %v2777_v52 = vld [vmem:[#allocation1 + $0x282] sm:$0x2]   ;;  %v2763_v21 = vsel %vm668_vm6, %v2761_v51, %v2759_v10  ;;  %v2912_v48 = vld [vmem:[#allocation1 + $0x3e] sm:$0x10]   ;;  %v2906_v51 = vsel %vm648_vm1, %v2904_v40, %v2902_v46 }
  0xe1   :  { %v2785_v53 = vld [vmem:[#allocation1 + $0x2a0] sm:$0x8]   ;;  %2764 = vrot.lane.b32.xlu0 %v2763_v21, %s3644_s8  ;;  %v2944_v61 = vld [vmem:[#allocation1 + $0xa0] sm:$0x4]  }
  0xe2   :  { %v2775_v58 = vld [vmem:[#allocation1 + $0x83] sm:$0x1]   ;;  %v2948_v3 = vld [vmem:[#allocation1 + $0x29f] sm:$0x8]  }
  0xe3   :  { %v2781_v59 = vld [vmem:[#allocation1 + $0xa1] sm:$0x4]   ;;  %v2779_v62 = vsel %vm644_vm0, %v2777_v52, %v2775_v58  ;;  %v2916_v52 = vld [vmem:[#allocation1 + $0x23d] sm:$0x20]   ;;  %v2910_v58 = vsel %vm652_vm2, %v2908_v47, %v2906_v51 }
  0xe4   :  { %v2793_v60 = vld [vmem:[#allocation1 + $0x2be] sm:$0x20]   ;;  %v2783_v4 = vsel %vm648_vm1, %v2781_v59, %v2779_v62  ;;  %v2938_v59 = vld [vmem:[#allocation1 + $0x82] sm:$0x1]  }
  0xe5   :  { %v2789_v0 = vld [vmem:[#allocation1 + $0xbf] sm:$0x10]   ;;  %v2787_v11 = vsel %vm652_vm2, %v2785_v53, %v2783_v4  ;;  %v2920_v53 = vld [vmem:[#allocation1 + $0x5c] sm:$0x40]  }
  0xe6   :  { %v2797_v1 = vld [vmem:[#allocation1 + $0xdd] sm:$0x40]   ;;  %v2791_v22 = vsel %vm656_vm3, %v2789_v0, %v2787_v11  ;;  %v2914_v0 = vsel %vm656_vm3, %v2912_v48, %v2910_v58  ;;  %v2952_v4 = vld [vmem:[#allocation1 + $0xbe] sm:$0x10]  }
  0xe7   :  { %v2818_v2 = vld [vmem:[#allocation1 + $0x302] sm:$0x2]   ;;  %v2795_v28 = vsel %vm660_vm4, %v2793_v60, %v2791_v22  ;;  %v2940_v60 = vld [vmem:[#allocation1 + $0x281] sm:$0x2]  }
  0xe8   :  { %v2801_v5 = vld [vmem:[#allocation1 + $0x2dc] sm:$0x80]   ;;  %v2799_v35 = vsel %vm664_vm5, %v2797_v1, %v2795_v28  ;;  %v2924_v1 = vld [vmem:[#allocation1 + $0x25b] sm:$0x80]  }
  0xe9   :  { %v2822_v7 = vld [vmem:[#allocation1 + $0x121] sm:$0x4]   ;;  %v2803_v41 = vsel %vm668_vm6, %v2801_v5, %v2799_v35  ;;  %v2918_v5 = vsel %vm660_vm4, %v2916_v52, %v2914_v0  ;;  %v2979_v27 = vld [vmem:[#allocation1 + $0x102] sm:$0x1]  }
  0xea   :  { %v2826_v8 = vld [vmem:[#allocation1 + $0x320] sm:$0x8]   ;;  %2804 = vrot.lane.b32.xlu1 %v2803_v41, %s3644_s8  ;;  %v2922_v10 = vsel %vm664_vm5, %v2920_v53, %v2918_v5  ;;  %v2981_v28 = vld [vmem:[#allocation1 + $0x301] sm:$0x2]  }
  0xeb   :  { %v2830_v9 = vld [vmem:[#allocation1 + $0x13f] sm:$0x10]   ;;  %v2926_v22 = vsel %vm668_vm6, %v2924_v1, %v2922_v10  ;;  %v2985_v35 = vld [vmem:[#allocation1 + $0x120] sm:$0x4]  }
  0xec   :  { %v2816_v12 = vld [vmem:[#allocation1 + $0x103] sm:$0x1]   ;;  %v2993_v37 = vld [vmem:[#allocation1 + $0x13e] sm:$0x10]  }
  0xed   :  { %v2834_v13 = vld [vmem:[#allocation1 + $0x33e] sm:$0x20]   ;;  %v2820_v23 = vsel %vm644_vm0, %v2818_v2, %v2816_v12  ;;  %v2942_v2 = vsel %vm644_vm0, %v2940_v60, %v2938_v59  ;;  %v2956_v12 = vld [vmem:[#allocation1 + $0x2bd] sm:$0x20]  }
  0xee   :  { %v3482_v15 = vld [vmem:[%s5019_s0 + $0x1e0] sm:$0xf]  ;;  %v2824_v29 = vsel %vm648_vm1, %v2822_v7, %v2820_v23  ;;  %v2946_v7 = vsel %vm648_vm1, %v2944_v61, %v2942_v2 }
  0xef   :  { %v2838_v24 = vld [vmem:[#allocation1 + $0x15d] sm:$0x40]   ;;  %44 = vst [vmem:[#allocation1 + $0x3c0] sm:$0xf] %v3482_v15  ;;  %v2828_v36 = vsel %vm652_vm2, %v2826_v8, %v2824_v29  ;;  %v4488_v8 = vpop.permute.xlu0 %1460   ;;  %v2950_v11 = vsel %vm652_vm2, %v2948_v3, %v2946_v7  ;;  %v4495_v29 = vpop.permute.xlu1 %1500   ;;  %v3001_v46 = vld [vmem:[#allocation1 + $0x15c] sm:$0x40]  }
  0xf0   :  { %v3490_v26 = vld [vmem:[%s5019_s0 + $0x1c0] sm:$0xf]  ;;  %v2832_v42 = vsel %vm656_vm3, %v2830_v9, %v2828_v36  ;;  %v2954_v23 = vsel %vm656_vm3, %v2952_v4, %v2950_v11 }
  0xf1   :  { %84 = vst [vmem:[#allocation1 + $0x380] sm:$0xf] %v3490_v26  ;;  %v3546_v30 = vld [vmem:[%s5019_s0 + $0xe0] sm:$0xf]  ;;  %v2836_v49 = vsel %vm660_vm4, %v2834_v13, %v2832_v42  ;;  %v2958_v41 = vsel %vm660_vm4, %v2956_v12, %v2954_v23 }
  0xf2   :  { %v3554_v34 = vld [vmem:[%s5019_s0 + $0xc0] sm:$0xf]  ;;  %364 = vst [vmem:[#allocation1 + $0x1c0] sm:$0xf] %v3546_v30  ;;  %v2840_v57 = vsel %vm664_vm5, %v2838_v24, %v2836_v49  ;;  %s3645_s0 = smov 16  }
  0xf3   :  { %404 = vst [vmem:[#allocation1 + $0x180] sm:$0xf] %v3554_v34  ;;  %v2842_v45 = vld [vmem:[#allocation1 + $0x35c] sm:$0x80]   ;;  %v2960_v26 = vld [vmem:[#allocation1 + $0xdc] sm:$0x40]   ;;  %v2983_v34 = vsel %vm644_vm0, %v2981_v28, %v2979_v27 }
  0xf4   :  { %v2844_v62 = vsel %vm668_vm6, %v2842_v45, %v2840_v57  ;;  %v2863_v14 = vld [vmem:[#allocation1 + $0x1a1] sm:$0x4]   ;;  %v2989_v36 = vld [vmem:[#allocation1 + $0x31f] sm:$0x8]   ;;  %v2987_v42 = vsel %vm648_vm1, %v2985_v35, %v2983_v34  ;;  %v4505_v57 = vpop.permute.xlu0 %1541   ;;  %v2962_v2 = vsel %vm664_vm5, %v2960_v26, %v2958_v41  ;;  %v3079_v26 = vld [vmem:[#allocation1 + $0x23c] sm:$0x20]  }
  0xf5   :  { %2845 = vrot.lane.b32.xlu0 %v2844_v62, %s3644_s8  ;;  %v2867_v15 = vld [vmem:[#allocation1 + $0x3a0] sm:$0x8]   ;;  %v2997_v45 = vld [vmem:[#allocation1 + $0x33d] sm:$0x20]   ;;  %v2991_v49 = vsel %vm652_vm2, %v2989_v36, %v2987_v42  ;;  %v3083_v34 = vld [vmem:[#allocation1 + $0x5b] sm:$0x40]  }
  0xf6   :  { %v2875_v21 = vld [vmem:[#allocation1 + $0x3be] sm:$0x20]   ;;  %v2964_v48 = vld [vmem:[#allocation1 + $0x2db] sm:$0x80]   ;;  %v2995_v59 = vsel %vm656_vm3, %v2993_v37, %v2991_v49  ;;  %v3101_v35 = vld [vmem:[#allocation1 + $0x81] sm:$0x1]  }
  0xf7   :  { %v2883_v32 = vld [vmem:[#allocation1 + $0x3dc] sm:$0x80]   ;;  %v3026_v53 = vld [vmem:[#allocation1 + $0x1a0] sm:$0x4]   ;;  %v2999_v3 = vsel %vm660_vm4, %v2997_v45, %v2995_v59  ;;  %v2966_v28 = vsel %vm668_vm6, %v2964_v48, %v2962_v2  ;;  %v3103_v36 = vld [vmem:[#allocation1 + $0x280] sm:$0x2]  }
  0xf8   :  { %v2859_v9 = vld [vmem:[#allocation1 + $0x382] sm:$0x2]   ;;  %v3022_v52 = vld [vmem:[#allocation1 + $0x381] sm:$0x2]   ;;  %v3003_v11 = vsel %vm664_vm5, %v3001_v46, %v2999_v3  ;;  %v4521_v27 = vpop.permute.xlu0 %1623   ;;  %v3107_v41 = vld [vmem:[#allocation1 + $0x9f] sm:$0x4]  }
  0xf9   :  { %v2871_v25 = vld [vmem:[#allocation1 + $0x1bf] sm:$0x10]   ;;  %2927 = vrot.lane.b32.xlu0 %v2926_v22, %s3645_s0  ;;  %v3005_v60 = vld [vmem:[#allocation1 + $0x35b] sm:$0x80]   ;;  %v3111_v42 = vld [vmem:[#allocation1 + $0x29e] sm:$0x8]  }
  0xfa   :  { %v2857_v13 = vld [vmem:[#allocation1 + $0x183] sm:$0x1]   ;;  %v3020_v51 = vld [vmem:[#allocation1 + $0x182] sm:$0x1]   ;;  %v3115_v45 = vld [vmem:[#allocation1 + $0xbd] sm:$0x10]  }
  0xfb   :  { %v2861_v24 = vsel %vm644_vm0, %v2859_v9, %v2857_v13  ;;  %v2879_v40 = vld [vmem:[#allocation1 + $0x1dd] sm:$0x40]   ;;  %v3024_v61 = vsel %vm644_vm0, %v3022_v52, %v3020_v51  ;;  %v3030_v62 = vld [vmem:[#allocation1 + $0x39f] sm:$0x8]   ;;  %v3061_v9 = vld [vmem:[#allocation1 + $0x1] sm:$0x1]  }
  0xfc   :  { %v2865_v30 = vsel %vm648_vm1, %v2863_v14, %v2861_v24  ;;  %v3034_v0 = vld [vmem:[#allocation1 + $0x1be] sm:$0x10]   ;;  %v3028_v4 = vsel %vm648_vm1, %v3026_v53, %v3024_v61  ;;  %v3063_v13 = vld [vmem:[#allocation1 + $0x200] sm:$0x2]   ;;  %v643_v59 = vld [vmem:[#allocation1 + $0x1f] sm:$0x2]  }
  0xfd   :  { %v2869_v38 = vsel %vm652_vm2, %v2867_v15, %v2865_v30  ;;  %v3038_v5 = vld [vmem:[#allocation1 + $0x3bd] sm:$0x20]   ;;  %v3032_v12 = vsel %vm652_vm2, %v3030_v62, %v3028_v4  ;;  %v3067_v14 = vld [vmem:[#allocation1 + $0x1f] sm:$0x4]   ;;  %v3065_v24 = vsel %vm644_vm0, %v3063_v13, %v3061_v9  ;;  %v651_v3 = vld [vmem:[#allocation1 + $0x5d] sm:$0x8]   ;;  %v4542_v13 = vpop.permute.xlu1 %1582  }
  0xfe   :  { %v2873_v47 = vsel %vm656_vm3, %v2871_v25, %v2869_v38  ;;  %v3042_v7 = vld [vmem:[#allocation1 + $0x1dc] sm:$0x40]   ;;  %v3071_v15 = vld [vmem:[#allocation1 + $0x21e] sm:$0x8]   ;;  %v3036_v22 = vsel %vm656_vm3, %v3034_v0, %v3032_v12  ;;  %v655_v4 = vld [vmem:[#allocation1 + $0x7c] sm:$0x10]  }
  0xff   :  { %v2877_v58 = vsel %vm660_vm4, %v2875_v21, %v2873_v47  ;;  %v3007_v21 = vsel %vm668_vm6, %v3005_v60, %v3003_v11  ;;  %v3046_v23 = vld [vmem:[#allocation1 + $0x3db] sm:$0x80]   ;;  %v3075_v25 = vld [vmem:[#allocation1 + $0x3d] sm:$0x10]   ;;  %v3040_v30 = vsel %vm660_vm4, %v3038_v5, %v3036_v22  ;;  %v647_v60 = vld [vmem:[#allocation1 + $0x3e] sm:$0x4]  }
 0x100   :  { %v2881_v1 = vsel %vm664_vm5, %v2879_v40, %v2877_v58  ;;  %3008 = vrot.lane.b32.xlu0 %v3007_v21, %s3645_s0  ;;  %v3044_v37 = vsel %vm664_vm5, %v3042_v7, %v3040_v30  ;;  %v3105_v40 = vsel %vm644_vm0, %v3103_v36, %v3101_v35  ;;  %v3087_v47 = vld [vmem:[#allocation1 + $0x25a] sm:$0x80]   ;;  %v641_v58 = vld [vmem:[#allocation1] sm:$0x1]  }
 0x101   :  { %v2885_v10 = vsel %vm668_vm6, %v2883_v32, %v2881_v1  ;;  %v3069_v32 = vsel %vm648_vm1, %v3067_v14, %v3065_v24  ;;  %v3109_v48 = vsel %vm648_vm1, %v3107_v41, %v3105_v40  ;;  %v3119_v49 = vld [vmem:[#allocation1 + $0x2bc] sm:$0x20]   ;;  %v3048_v61 = vsel %vm668_vm6, %v3046_v23, %v3044_v37  ;;  %v663_v11 = vld [vmem:[#allocation1 + $0xba] sm:$0x40]   ;;  %v4547_v24 = vpop.permute.xlu0 %1704  }
 0x102   :  { %2886 = vrot.lane.b32.xlu1 %v2885_v10, %s3644_s8  ;;  %v3073_v38 = vsel %vm652_vm2, %v3071_v15, %v3069_v32  ;;  %v3123_v51 = vld [vmem:[#allocation1 + $0xdb] sm:$0x40]   ;;  %v3113_v53 = vsel %vm652_vm2, %v3111_v42, %v3109_v48  ;;  %v645_v2 = vsel %vm644_vm0, %v643_v59, %v641_v58  ;;  %v659_v10 = vld [vmem:[#allocation1 + $0x9b] sm:$0x20]  }
 0x103   :  { %v3077_v46 = vsel %vm656_vm3, %v3075_v25, %v3073_v38  ;;  %v3117_v0 = vsel %vm656_vm3, %v3115_v45, %v3113_v53  ;;  %v3127_v1 = vld [vmem:[#allocation1 + $0x2da] sm:$0x80]   ;;  %v649_v9 = vsel %vm648_vm1, %v647_v60, %v645_v2  ;;  %v667_v12 = vld [vmem:[#allocation1 + $0xd9] sm:$0x80]  }
 0x104   :  { %v3081_v52 = vsel %vm660_vm4, %v3079_v26, %v3077_v46  ;;  %v3121_v7 = vsel %vm660_vm4, %v3119_v49, %v3117_v0  ;;  %v653_v15 = vsel %vm652_vm2, %v651_v3, %v649_v9  ;;  %v709_v21 = vld [vmem:[#allocation1 + $0x200] sm:$0x1]   ;;  %v4557_v46 = vpop.permute.xlu1 %1663  }
 0x105   :  { %v3085_v62 = vsel %vm664_vm5, %v3083_v34, %v3081_v52  ;;  %v3125_v14 = vsel %vm664_vm5, %v3123_v51, %v3121_v7  ;;  %v711_v22 = vld [vmem:[#allocation1 + $0x21f] sm:$0x2]   ;;  %v657_v25 = vsel %vm656_vm3, %v655_v4, %v653_v15 }
 0x106   :  { %2967 = vrot.lane.b32.xlu1 %v2966_v28, %s3645_s0  ;;  %v3089_v5 = vsel %vm668_vm6, %v3087_v47, %v3085_v62  ;;  %v715_v23 = vld [vmem:[#allocation1 + $0x23e] sm:$0x4]   ;;  %v713_v26 = vsel %vm644_vm0, %v711_v22, %v709_v21  ;;  %v3129_v32 = vsel %vm668_vm6, %v3127_v1, %v3125_v14  ;;  %v661_v34 = vsel %vm660_vm4, %v659_v10, %v657_v25  ;;  %v3142_v25 = vld [vmem:[#allocation1 + $0x101] sm:$0x1]  }
 0x107   :  { %3090 = vrot.lane.b32.xlu0 %v3089_v5, %s3646_s14  ;;  %v719_v28 = vld [vmem:[#allocation1 + $0x25d] sm:$0x8]   ;;  %v717_v35 = vsel %vm648_vm1, %v715_v23, %v713_v26  ;;  %v665_v38 = vsel %vm664_vm5, %v663_v11, %v661_v34  ;;  %v4569_v5 = vpop.permute.xlu0 %1786   ;;  %v3144_v26 = vld [vmem:[#allocation1 + $0x300] sm:$0x2]  }
 0x108   :  { %v723_v30 = vld [vmem:[#allocation1 + $0x27c] sm:$0x10]   ;;  %v721_v40 = vsel %vm652_vm2, %v719_v28, %v717_v35  ;;  %v669_v47 = vsel %vm668_vm6, %v667_v12, %v665_v38  ;;  %v4574_v15 = vpop.permute.xlu1 %1745   ;;  %v3152_v34 = vld [vmem:[#allocation1 + $0x31e] sm:$0x8]  }
 0x109   :  { %v727_v36 = vld [vmem:[#allocation1 + $0x29b] sm:$0x20]   ;;  %v725_v48 = vsel %vm656_vm3, %v723_v30, %v721_v40  ;;  %671 = vst.msk [vmem:[#allocation0] ss:$8 sm:$0xf] %vm670_vm7, %v669_v47   ;;  %v3146_v30 = vsel %vm644_vm0, %v3144_v26, %v3142_v25 }
 0x10a   :  { %3049 = vrot.lane.b32.xlu1 %v3048_v61, %s3645_s0  ;;  %v731_v37 = vld [vmem:[#allocation1 + $0x2ba] sm:$0x40]   ;;  %v729_v58 = vsel %vm660_vm4, %v727_v36, %v725_v48  ;;  %672 = vst.msk [vmem:[#allocation0] ss:$8 sm:$0xf0] %vm670_vm7, %v669_v47  }
 0x10b   :  { %v674_v41 = vld [vmem:[#allocation1 + $0x100] sm:$0x1]   ;;  %v733_v0 = vsel %vm664_vm5, %v731_v37, %v729_v58  ;;  %v3156_v35 = vld [vmem:[#allocation1 + $0x13d] sm:$0x10]  }
 0x10c   :  { %v676_v42 = vld [vmem:[#allocation1 + $0x11f] sm:$0x2]   ;;  %v3160_v40 = vld [vmem:[#allocation1 + $0x33c] sm:$0x20]  }
 0x10d   :  { %v680_v45 = vld [vmem:[#allocation1 + $0x13e] sm:$0x4]   ;;  %v678_v51 = vsel %vm644_vm0, %v676_v42, %v674_v41  ;;  %v3164_v41 = vld [vmem:[#allocation1 + $0x15b] sm:$0x40]  }
 0x10e   :  { %v735_v49 = vld [vmem:[#allocation1 + $0x2d9] sm:$0x80]   ;;  %3130 = vrot.lane.b32.xlu1 %v3129_v32, %s3646_s14  ;;  %v682_v59 = vsel %vm648_vm1, %v680_v45, %v678_v51  ;;  %v3148_v32 = vld [vmem:[#allocation1 + $0x11f] sm:$0x4]   ;;  %v4606_v51 = vpop.permute.xlu1 %1826  }
 0x10f   :  { %v684_v52 = vld [vmem:[#allocation1 + $0x15d] sm:$0x8]   ;;  %v737_v7 = vsel %vm668_vm6, %v735_v49, %v733_v0  ;;  %v3150_v38 = vsel %vm648_vm1, %v3148_v32, %v3146_v30  ;;  %v3183_v47 = vld [vmem:[#allocation1 + $0x181] sm:$0x1]  }
 0x110   :  { %v688_v53 = vld [vmem:[#allocation1 + $0x17c] sm:$0x10]   ;;  %v686_v1 = vsel %vm652_vm2, %v684_v52, %v682_v59  ;;  %740 = vst.msk [vmem:[#allocation0 + $0x1] ss:$8 sm:$0xf] %vm670_vm7, %v737_v7   ;;  %v3154_v45 = vsel %vm652_vm2, %v3152_v34, %v3150_v38  ;;  %v4608_v52 = vpop.permute.xlu0 %1867  }
 0x111   :  { %v692_v60 = vld [vmem:[#allocation1 + $0x19b] sm:$0x20]   ;;  %v690_v9 = vsel %vm656_vm3, %v688_v53, %v686_v1  ;;  %742 = vst.msk [vmem:[#allocation0 + $0x1] ss:$8 sm:$0xf0] %vm670_vm7, %v737_v7   ;;  %v3158_v58 = vsel %vm656_vm3, %v3156_v35, %v3154_v45 }
 0x112   :  { %v696_v61 = vld [vmem:[#allocation1 + $0x1ba] sm:$0x40]   ;;  %v694_v21 = vsel %vm660_vm4, %v692_v60, %v690_v9  ;;  %811 = vst.msk [vmem:[#allocation0] sm:$0x3] %vm810_vm8, %v4229_v63   ;;  %813 = vst.msk [vmem:[#allocation0 + $0x6] sm:$0xc] %vm810_vm8, %v4229_v63   ;;  %v3162_v1 = vsel %vm660_vm4, %v3160_v40, %v3158_v58 }
 0x113   :  { %v744_v62 = vld [vmem:[#allocation1 + $0x300] sm:$0x1]   ;;  %815 = vst.msk [vmem:[#allocation0 + $0xc] sm:$0x30] %vm810_vm8, %v4229_v63   ;;  %817 = vst.msk [vmem:[#allocation0 + $0x12] sm:$0xc0] %vm810_vm8, %v4229_v63   ;;  %v698_v63 = vsel %vm664_vm5, %v696_v61, %v694_v21 }
 0x114   :  { %v746_v2 = vld [vmem:[#allocation1 + $0x31f] sm:$0x2]   ;;  %852 = vst.msk [vmem:[#allocation0 + $0x20] sm:$0x3] %vm810_vm8, %v4259_v55   ;;  %854 = vst.msk [vmem:[#allocation0 + $0x26] sm:$0xc] %vm810_vm8, %v4259_v55  }
 0x115   :  { %v750_v3 = vld [vmem:[#allocation1 + $0x33e] sm:$0x4]   ;;  %v748_v11 = vsel %vm644_vm0, %v746_v2, %v744_v62  ;;  %856 = vst.msk [vmem:[#allocation0 + $0x2c] sm:$0x30] %vm810_vm8, %v4259_v55   ;;  %858 = vst.msk [vmem:[#allocation0 + $0x32] sm:$0xc0] %vm810_vm8, %v4259_v55  }
 0x116   :  { %v754_v4 = vld [vmem:[#allocation1 + $0x35d] sm:$0x8]   ;;  %v752_v22 = vsel %vm648_vm1, %v750_v3, %v748_v11  ;;  %v3185_v48 = vld [vmem:[#allocation1 + $0x380] sm:$0x2]   ;;  %974 = vst.msk [vmem:[#allocation0] sm:$0x3] %vm973_vm9, %v4274_v16  }
 0x117   :  { %v700_v10 = vld [vmem:[#allocation1 + $0x1d9] sm:$0x80]   ;;  %v756_v28 = vsel %vm652_vm2, %v754_v4, %v752_v22  ;;  %v3189_v49 = vld [vmem:[#allocation1 + $0x19f] sm:$0x4]   ;;  %v3187_v60 = vsel %vm644_vm0, %v3185_v48, %v3183_v47  ;;  %v3166_v4 = vsel %vm664_vm5, %v3164_v41, %v3162_v1  ;;  %976 = vst.msk [vmem:[#allocation0 + $0x6] sm:$0xc] %vm973_vm9, %v4274_v16  }
 0x118   :  { %v758_v12 = vld [vmem:[#allocation1 + $0x37c] sm:$0x10]   ;;  %v702_v55 = vsel %vm668_vm6, %v700_v10, %v698_v63  ;;  %v3168_v59 = vld [vmem:[#allocation1 + $0x35a] sm:$0x80]   ;;  %v3191_v2 = vsel %vm648_vm1, %v3189_v49, %v3187_v60  ;;  %978 = vst.msk [vmem:[#allocation0 + $0xc] sm:$0x30] %vm973_vm9, %v4274_v16  }
 0x119   :  { %v762_v14 = vld [vmem:[#allocation1 + $0x39b] sm:$0x20]   ;;  %v760_v36 = vsel %vm656_vm3, %v758_v12, %v756_v28  ;;  %705 = vst.msk [vmem:[#allocation0 + $0x40] ss:$8 sm:$0xf] %vm670_vm7, %v702_v55   ;;  %vm2114_vm0 = vcmask 523712  }
 0x11a   :  { %v766_v23 = vld [vmem:[#allocation1 + $0x3ba] sm:$0x40]   ;;  %v764_v42 = vsel %vm660_vm4, %v762_v14, %v760_v36  ;;  %707 = vst.msk [vmem:[#allocation0 + $0x40] ss:$8 sm:$0xf0] %vm670_vm7, %v702_v55   ;;  %vm2277_vm1 = vcmask 458112  }
 0x11b   :  { %v770_v37 = vld [vmem:[#allocation1 + $0x3d9] sm:$0x80]   ;;  %v768_v53 = vsel %vm664_vm5, %v766_v23, %v764_v42  ;;  %v3193_v61 = vld [vmem:[#allocation1 + $0x39e] sm:$0x8]   ;;  %980 = vst.msk [vmem:[#allocation0 + $0x12] sm:$0xc0] %vm973_vm9, %v4274_v16  }
 0x11c   :  { %v3197_v62 = vld [vmem:[#allocation1 + $0x1bd] sm:$0x10]   ;;  %v772_v0 = vsel %vm668_vm6, %v770_v37, %v768_v53  ;;  %v3195_v7 = vsel %vm652_vm2, %v3193_v61, %v3191_v2  ;;  %1015 = vst.msk [vmem:[#allocation0 + $0x20] sm:$0x3] %vm973_vm9, %v4299_v56   ;;  %1017 = vst.msk [vmem:[#allocation0 + $0x26] sm:$0xc] %vm973_vm9, %v4299_v56  }
 0x11d   :  { %v3201_v3 = vld [vmem:[#allocation1 + $0x3bc] sm:$0x20]   ;;  %775 = vst.msk [vmem:[#allocation0 + $0x41] ss:$8 sm:$0xf] %vm670_vm7, %v772_v0   ;;  %v3199_v16 = vsel %vm656_vm3, %v3197_v62, %v3195_v7  ;;  %vm2440_vm2 = vcmask 392512  }
 0x11e   :  { %777 = vst.msk [vmem:[#allocation0 + $0x41] ss:$8 sm:$0xf0] %vm670_vm7, %v772_v0   ;;  %v3205_v9 = vld [vmem:[#allocation1 + $0x1db] sm:$0x40]   ;;  %vm2603_vm3 = vcmask 326912  }
 0x11f   :  { %1019 = vst.msk [vmem:[#allocation0 + $0x2c] sm:$0x30] %vm973_vm9, %v4299_v56   ;;  %1021 = vst.msk [vmem:[#allocation0 + $0x32] sm:$0xc0] %vm973_vm9, %v4299_v56   ;;  %v3209_v56 = vld [vmem:[#allocation1 + $0x3da] sm:$0x80]  }
 0x120   :  { %893 = vst.msk [vmem:[#allocation0 + $0x40] sm:$0x3] %vm810_vm8, %v4239_v17   ;;  %895 = vst.msk [vmem:[#allocation0 + $0x46] sm:$0xc] %vm810_vm8, %v4239_v17  }
 0x121   :  { %897 = vst.msk [vmem:[#allocation0 + $0x4c] sm:$0x30] %vm810_vm8, %v4239_v17   ;;  %899 = vst.msk [vmem:[#allocation0 + $0x52] sm:$0xc0] %vm810_vm8, %v4239_v17   ;;  %v3170_v17 = vsel %vm668_vm6, %v3168_v59, %v3166_v4 }
 0x122   :  { %934 = vst.msk [vmem:[#allocation0 + $0x60] sm:$0x3] %vm810_vm8, %v4283_v31   ;;  %936 = vst.msk [vmem:[#allocation0 + $0x66] sm:$0xc] %vm810_vm8, %v4283_v31   ;;  %3171 = vrot.lane.b32.xlu0 %v3170_v17, %s3646_s14 }
 0x123   :  { %938 = vst.msk [vmem:[#allocation0 + $0x6c] sm:$0x30] %vm810_vm8, %v4283_v31   ;;  %940 = vst.msk [vmem:[#allocation0 + $0x72] sm:$0xc0] %vm810_vm8, %v4283_v31   ;;  %v4670_v31 = vpop.permute.xlu1 %1908  }
 0x124   :  { %1137 = vst.msk [vmem:[#allocation0] sm:$0x3] %vm1136_vm10, %v4316_v19   ;;  %1139 = vst.msk [vmem:[#allocation0 + $0x6] sm:$0xc] %vm1136_vm10, %v4316_v19  }
 0x125   :  { %1141 = vst.msk [vmem:[#allocation0 + $0xc] sm:$0x30] %vm1136_vm10, %v4316_v19   ;;  %1143 = vst.msk [vmem:[#allocation0 + $0x12] sm:$0xc0] %vm1136_vm10, %v4316_v19   ;;  %v3203_v19 = vsel %vm660_vm4, %v3201_v3, %v3199_v16  ;;  %vm2766_vm4 = vcmask 261312  }
 0x126   :  { %1178 = vst.msk [vmem:[#allocation0 + $0x20] sm:$0x3] %vm1136_vm10, %v4330_v44   ;;  %1180 = vst.msk [vmem:[#allocation0 + $0x26] sm:$0xc] %vm1136_vm10, %v4330_v44  }
 0x127   :  { %1182 = vst.msk [vmem:[#allocation0 + $0x2c] sm:$0x30] %vm1136_vm10, %v4330_v44   ;;  %1184 = vst.msk [vmem:[#allocation0 + $0x32] sm:$0xc0] %vm1136_vm10, %v4330_v44  }
 0x128   :  { %1056 = vst.msk [vmem:[#allocation0 + $0x40] sm:$0x3] %vm973_vm9, %v4291_v43   ;;  %1058 = vst.msk [vmem:[#allocation0 + $0x46] sm:$0xc] %vm973_vm9, %v4291_v43  }
 0x129   :  { %1060 = vst.msk [vmem:[#allocation0 + $0x4c] sm:$0x30] %vm973_vm9, %v4291_v43   ;;  %1062 = vst.msk [vmem:[#allocation0 + $0x52] sm:$0xc0] %vm973_vm9, %v4291_v43   ;;  %v4706_v43 = vpop.permute.xlu0 %1949  }
 0x12a   :  { %1097 = vst.msk [vmem:[#allocation0 + $0x60] sm:$0x3] %vm973_vm9, %v4314_v18   ;;  %1099 = vst.msk [vmem:[#allocation0 + $0x66] sm:$0xc] %vm973_vm9, %v4314_v18  }
 0x12b   :  { %1101 = vst.msk [vmem:[#allocation0 + $0x6c] sm:$0x30] %vm973_vm9, %v4314_v18   ;;  %1103 = vst.msk [vmem:[#allocation0 + $0x72] sm:$0xc0] %vm973_vm9, %v4314_v18   ;;  %v3207_v18 = vsel %vm664_vm5, %v3205_v9, %v3203_v19  ;;  %vm2929_vm5 = vcmask 195712  }
 0x12c   :  { %1300 = vst.msk [vmem:[#allocation0] sm:$0x3] %vm1299_vm11, %v4383_v20   ;;  %1302 = vst.msk [vmem:[#allocation0 + $0x6] sm:$0xc] %vm1299_vm11, %v4383_v20   ;;  %v3211_v44 = vsel %vm668_vm6, %v3209_v56, %v3207_v18  ;;  %vm3092_vm6 = vcmask 130112  }
 0x12d   :  { %1304 = vst.msk [vmem:[#allocation0 + $0xc] sm:$0x30] %vm1299_vm11, %v4383_v20   ;;  %1306 = vst.msk [vmem:[#allocation0 + $0x12] sm:$0xc0] %vm1299_vm11, %v4383_v20   ;;  %3212 = vrot.lane.b32.xlu1 %v3211_v44, %s3646_s14 }
 0x12e   :  { %1341 = vst.msk [vmem:[#allocation0 + $0x20] sm:$0x3] %vm1299_vm11, %v4415_v33   ;;  %1343 = vst.msk [vmem:[#allocation0 + $0x26] sm:$0xc] %vm1299_vm11, %v4415_v33  }
 0x12f   :  { %1345 = vst.msk [vmem:[#allocation0 + $0x2c] sm:$0x30] %vm1299_vm11, %v4415_v33   ;;  %1347 = vst.msk [vmem:[#allocation0 + $0x32] sm:$0xc0] %vm1299_vm11, %v4415_v33  }
 0x130   :  { %1219 = vst.msk [vmem:[#allocation0 + $0x40] sm:$0x3] %vm1136_vm10, %v4334_v50   ;;  %1221 = vst.msk [vmem:[#allocation0 + $0x46] sm:$0xc] %vm1136_vm10, %v4334_v50  }
 0x131   :  { %1223 = vst.msk [vmem:[#allocation0 + $0x4c] sm:$0x30] %vm1136_vm10, %v4334_v50   ;;  %1225 = vst.msk [vmem:[#allocation0 + $0x52] sm:$0xc0] %vm1136_vm10, %v4334_v50   ;;  %v1990_v50 = vpop.permute.xlu1 %1989  }
 0x132   :  { %1260 = vst.msk [vmem:[#allocation0 + $0x60] sm:$0x3] %vm1136_vm10, %v4359_v6   ;;  %1262 = vst.msk [vmem:[#allocation0 + $0x66] sm:$0xc] %vm1136_vm10, %v4359_v6  }
 0x133   :  { %1264 = vst.msk [vmem:[#allocation0 + $0x6c] sm:$0x30] %vm1136_vm10, %v4359_v6   ;;  %1266 = vst.msk [vmem:[#allocation0 + $0x72] sm:$0xc0] %vm1136_vm10, %v4359_v6   ;;  %v2031_v6 = vpop.permute.xlu0 %2030  }
 0x134   :  { %1463 = vst.msk [vmem:[#allocation0] sm:$0x3] %vm1462_vm12, %v4488_v8   ;;  %1465 = vst.msk [vmem:[#allocation0 + $0x6] sm:$0xc] %vm1462_vm12, %v4488_v8  }
 0x135   :  { %1467 = vst.msk [vmem:[#allocation0 + $0xc] sm:$0x30] %vm1462_vm12, %v4488_v8   ;;  %1469 = vst.msk [vmem:[#allocation0 + $0x12] sm:$0xc0] %vm1462_vm12, %v4488_v8   ;;  %v2072_v20 = vpop.permute.xlu1 %2071  }
 0x136   :  { %1504 = vst.msk [vmem:[#allocation0 + $0x20] sm:$0x3] %vm1462_vm12, %v4495_v29   ;;  %1506 = vst.msk [vmem:[#allocation0 + $0x26] sm:$0xc] %vm1462_vm12, %v4495_v29  }
 0x137   :  { %1508 = vst.msk [vmem:[#allocation0 + $0x2c] sm:$0x30] %vm1462_vm12, %v4495_v29   ;;  %1510 = vst.msk [vmem:[#allocation0 + $0x32] sm:$0xc0] %vm1462_vm12, %v4495_v29   ;;  %v2113_v33 = vpop.permute.xlu0 %2112  }
 0x138   :  { %1382 = vst.msk [vmem:[#allocation0 + $0x40] sm:$0x3] %vm1299_vm11, %v4429_v39   ;;  %1384 = vst.msk [vmem:[#allocation0 + $0x46] sm:$0xc] %vm1299_vm11, %v4429_v39  }
 0x139   :  { %1386 = vst.msk [vmem:[#allocation0 + $0x4c] sm:$0x30] %vm1299_vm11, %v4429_v39   ;;  %1388 = vst.msk [vmem:[#allocation0 + $0x52] sm:$0xc0] %vm1299_vm11, %v4429_v39   ;;  %v2153_v39 = vpop.permute.xlu1 %2152  }
 0x13a   :  { %1423 = vst.msk [vmem:[#allocation0 + $0x60] sm:$0x3] %vm1299_vm11, %v4433_v54   ;;  %1425 = vst.msk [vmem:[#allocation0 + $0x66] sm:$0xc] %vm1299_vm11, %v4433_v54  }
 0x13b   :  { %1427 = vst.msk [vmem:[#allocation0 + $0x6c] sm:$0x30] %vm1299_vm11, %v4433_v54   ;;  %1429 = vst.msk [vmem:[#allocation0 + $0x72] sm:$0xc0] %vm1299_vm11, %v4433_v54   ;;  %v2194_v54 = vpop.permute.xlu0 %2193  }
 0x13c   :  { %1626 = vst.msk [vmem:[#allocation0] sm:$0x3] %vm1625_vm13, %v4521_v27   ;;  %1628 = vst.msk [vmem:[#allocation0 + $0x6] sm:$0xc] %vm1625_vm13, %v4521_v27  }
 0x13d   :  { %1630 = vst.msk [vmem:[#allocation0 + $0xc] sm:$0x30] %vm1625_vm13, %v4521_v27   ;;  %1632 = vst.msk [vmem:[#allocation0 + $0x12] sm:$0xc0] %vm1625_vm13, %v4521_v27   ;;  %v2235_v29 = vpop.permute.xlu1 %2234  }
 0x13e   :  { %1667 = vst.msk [vmem:[#allocation0 + $0x20] sm:$0x3] %vm1625_vm13, %v4557_v46   ;;  %1669 = vst.msk [vmem:[#allocation0 + $0x26] sm:$0xc] %vm1625_vm13, %v4557_v46  }
 0x13f   :  { %1671 = vst.msk [vmem:[#allocation0 + $0x2c] sm:$0x30] %vm1625_vm13, %v4557_v46   ;;  %1673 = vst.msk [vmem:[#allocation0 + $0x32] sm:$0xc0] %vm1625_vm13, %v4557_v46   ;;  %v2276_v8 = vpop.permute.xlu0 %2275  }
 0x140   :  { %1545 = vst.msk [vmem:[#allocation0 + $0x40] sm:$0x3] %vm1462_vm12, %v4505_v57   ;;  %1547 = vst.msk [vmem:[#allocation0 + $0x46] sm:$0xc] %vm1462_vm12, %v4505_v57  }
 0x141   :  { %1549 = vst.msk [vmem:[#allocation0 + $0x4c] sm:$0x30] %vm1462_vm12, %v4505_v57   ;;  %1551 = vst.msk [vmem:[#allocation0 + $0x52] sm:$0xc0] %vm1462_vm12, %v4505_v57   ;;  %v2316_v27 = vpop.permute.xlu1 %2315  }
 0x142   :  { %1586 = vst.msk [vmem:[#allocation0 + $0x60] sm:$0x3] %vm1462_vm12, %v4542_v13   ;;  %1588 = vst.msk [vmem:[#allocation0 + $0x66] sm:$0xc] %vm1462_vm12, %v4542_v13  }
 0x143   :  { %1590 = vst.msk [vmem:[#allocation0 + $0x6c] sm:$0x30] %vm1462_vm12, %v4542_v13   ;;  %1592 = vst.msk [vmem:[#allocation0 + $0x72] sm:$0xc0] %vm1462_vm12, %v4542_v13   ;;  %v2357_v57 = vpop.permute.xlu0 %2356  }
 0x144   :  { %1789 = vst.msk [vmem:[#allocation0] sm:$0x3] %vm1788_vm14, %v4569_v5   ;;  %1791 = vst.msk [vmem:[#allocation0 + $0x6] sm:$0xc] %vm1788_vm14, %v4569_v5  }
 0x145   :  { %1793 = vst.msk [vmem:[#allocation0 + $0xc] sm:$0x30] %vm1788_vm14, %v4569_v5   ;;  %1795 = vst.msk [vmem:[#allocation0 + $0x12] sm:$0xc0] %vm1788_vm14, %v4569_v5  }
 0x146   :  { %1830 = vst.msk [vmem:[#allocation0 + $0x20] sm:$0x3] %vm1788_vm14, %v4606_v51   ;;  %1832 = vst.msk [vmem:[#allocation0 + $0x26] sm:$0xc] %vm1788_vm14, %v4606_v51  }
 0x147   :  { %1834 = vst.msk [vmem:[#allocation0 + $0x2c] sm:$0x30] %vm1788_vm14, %v4606_v51   ;;  %1836 = vst.msk [vmem:[#allocation0 + $0x32] sm:$0xc0] %vm1788_vm14, %v4606_v51   ;;  %v2439_v13 = vpop.permute.xlu0 %2438  }
 0x148   :  { %1708 = vst.msk [vmem:[#allocation0 + $0x40] sm:$0x3] %vm1625_vm13, %v4547_v24   ;;  %1710 = vst.msk [vmem:[#allocation0 + $0x46] sm:$0xc] %vm1625_vm13, %v4547_v24  }
 0x149   :  { %1712 = vst.msk [vmem:[#allocation0 + $0x4c] sm:$0x30] %vm1625_vm13, %v4547_v24   ;;  %1714 = vst.msk [vmem:[#allocation0 + $0x52] sm:$0xc0] %vm1625_vm13, %v4547_v24   ;;  %v2398_v24 = vpop.permute.xlu1 %2397  }
 0x14a   :  { %1749 = vst.msk [vmem:[#allocation0 + $0x60] sm:$0x3] %vm1625_vm13, %v4574_v15   ;;  %1751 = vst.msk [vmem:[#allocation0 + $0x66] sm:$0xc] %vm1625_vm13, %v4574_v15  }
 0x14b   :  { %1753 = vst.msk [vmem:[#allocation0 + $0x6c] sm:$0x30] %vm1625_vm13, %v4574_v15   ;;  %1755 = vst.msk [vmem:[#allocation0 + $0x72] sm:$0xc0] %vm1625_vm13, %v4574_v15   ;;  %v2520_v5 = vpop.permute.xlu0 %2519  }
 0x14c   :  { %1952 = vst.msk [vmem:[#allocation0] sm:$0x3] %vm1951_vm15, %v4706_v43   ;;  %1954 = vst.msk [vmem:[#allocation0 + $0x6] sm:$0xc] %vm1951_vm15, %v4706_v43  }
 0x14d   :  { %1956 = vst.msk [vmem:[#allocation0 + $0xc] sm:$0x30] %vm1951_vm15, %v4706_v43   ;;  %1958 = vst.msk [vmem:[#allocation0 + $0x12] sm:$0xc0] %vm1951_vm15, %v4706_v43   ;;  %v2479_v46 = vpop.permute.xlu1 %2478  }
 0x14e   :  { %1993 = vst.msk [vmem:[#allocation0 + $0x20] sm:$0x3] %vm1951_vm15, %v1990_v50   ;;  %1995 = vst.msk [vmem:[#allocation0 + $0x26] sm:$0xc] %vm1951_vm15, %v1990_v50  }
 0x14f   :  { %1997 = vst.msk [vmem:[#allocation0 + $0x2c] sm:$0x30] %vm1951_vm15, %v1990_v50   ;;  %1999 = vst.msk [vmem:[#allocation0 + $0x32] sm:$0xc0] %vm1951_vm15, %v1990_v50   ;;  %v2602_v11 = vpop.permute.xlu0 %2601  }
 0x150   :  { %1871 = vst.msk [vmem:[#allocation0 + $0x40] sm:$0x3] %vm1788_vm14, %v4608_v52   ;;  %1873 = vst.msk [vmem:[#allocation0 + $0x46] sm:$0xc] %vm1788_vm14, %v4608_v52  }
 0x151   :  { %1875 = vst.msk [vmem:[#allocation0 + $0x4c] sm:$0x30] %vm1788_vm14, %v4608_v52   ;;  %1877 = vst.msk [vmem:[#allocation0 + $0x52] sm:$0xc0] %vm1788_vm14, %v4608_v52   ;;  %v2561_v10 = vpop.permute.xlu1 %2560  }
 0x152   :  { %1912 = vst.msk [vmem:[#allocation0 + $0x60] sm:$0x3] %vm1788_vm14, %v4670_v31   ;;  %1914 = vst.msk [vmem:[#allocation0 + $0x66] sm:$0xc] %vm1788_vm14, %v4670_v31  }
 0x153   :  { %1916 = vst.msk [vmem:[#allocation0 + $0x6c] sm:$0x30] %vm1788_vm14, %v4670_v31   ;;  %1918 = vst.msk [vmem:[#allocation0 + $0x72] sm:$0xc0] %vm1788_vm14, %v4670_v31   ;;  %v2683_v14 = vpop.permute.xlu0 %2682  }
 0x154   :  { %2034 = vst.msk [vmem:[#allocation0 + $0x40] sm:$0x3] %vm1951_vm15, %v2031_v6   ;;  %2036 = vst.msk [vmem:[#allocation0 + $0x46] sm:$0xc] %vm1951_vm15, %v2031_v6  }
 0x155   :  { %2038 = vst.msk [vmem:[#allocation0 + $0x4c] sm:$0x30] %vm1951_vm15, %v2031_v6   ;;  %2040 = vst.msk [vmem:[#allocation0 + $0x52] sm:$0xc0] %vm1951_vm15, %v2031_v6   ;;  %v2642_v12 = vpop.permute.xlu1 %2641  }
 0x156   :  { %2075 = vst.msk [vmem:[#allocation0 + $0x60] sm:$0x3] %vm1951_vm15, %v2072_v20   ;;  %2077 = vst.msk [vmem:[#allocation0 + $0x66] sm:$0xc] %vm1951_vm15, %v2072_v20  }
 0x157   :  { %2079 = vst.msk [vmem:[#allocation0 + $0x6c] sm:$0x30] %vm1951_vm15, %v2072_v20   ;;  %2081 = vst.msk [vmem:[#allocation0 + $0x72] sm:$0xc0] %vm1951_vm15, %v2072_v20   ;;  %v2765_v21 = vpop.permute.xlu0 %2764  }
 0x158   :  { %2115 = vst.msk [vmem:[#allocation0] sm:$0x3] %vm2114_vm0, %v2113_v33   ;;  %2117 = vst.msk [vmem:[#allocation0 + $0x6] sm:$0xc] %vm2114_vm0, %v2113_v33  }
 0x159   :  { %2119 = vst.msk [vmem:[#allocation0 + $0xc] sm:$0x30] %vm2114_vm0, %v2113_v33   ;;  %2121 = vst.msk [vmem:[#allocation0 + $0x12] sm:$0xc0] %vm2114_vm0, %v2113_v33   ;;  %v2724_v15 = vpop.permute.xlu1 %2723  }
 0x15a   :  { %2156 = vst.msk [vmem:[#allocation0 + $0x20] sm:$0x3] %vm2114_vm0, %v2153_v39   ;;  %2158 = vst.msk [vmem:[#allocation0 + $0x26] sm:$0xc] %vm2114_vm0, %v2153_v39  }
 0x15b   :  { %2160 = vst.msk [vmem:[#allocation0 + $0x2c] sm:$0x30] %vm2114_vm0, %v2153_v39   ;;  %2162 = vst.msk [vmem:[#allocation0 + $0x32] sm:$0xc0] %vm2114_vm0, %v2153_v39  }
 0x15c   :  { %2197 = vst.msk [vmem:[#allocation0 + $0x40] sm:$0x3] %vm2114_vm0, %v2194_v54   ;;  %2199 = vst.msk [vmem:[#allocation0 + $0x46] sm:$0xc] %vm2114_vm0, %v2194_v54  }
 0x15d   :  { %2201 = vst.msk [vmem:[#allocation0 + $0x4c] sm:$0x30] %vm2114_vm0, %v2194_v54   ;;  %2203 = vst.msk [vmem:[#allocation0 + $0x52] sm:$0xc0] %vm2114_vm0, %v2194_v54   ;;  %v2805_v22 = vpop.permute.xlu1 %2804  }
 0x15e   :  { %2278 = vst.msk [vmem:[#allocation0] sm:$0x3] %vm2277_vm1, %v2276_v8   ;;  %2280 = vst.msk [vmem:[#allocation0 + $0x6] sm:$0xc] %vm2277_vm1, %v2276_v8  }
 0x15f   :  { %2282 = vst.msk [vmem:[#allocation0 + $0xc] sm:$0x30] %vm2277_vm1, %v2276_v8   ;;  %2284 = vst.msk [vmem:[#allocation0 + $0x12] sm:$0xc0] %vm2277_vm1, %v2276_v8  }
 0x160   :  { %2238 = vst.msk [vmem:[#allocation0 + $0x60] sm:$0x3] %vm2114_vm0, %v2235_v29   ;;  %2240 = vst.msk [vmem:[#allocation0 + $0x66] sm:$0xc] %vm2114_vm0, %v2235_v29  }
 0x161   :  { %2242 = vst.msk [vmem:[#allocation0 + $0x6c] sm:$0x30] %vm2114_vm0, %v2235_v29   ;;  %2244 = vst.msk [vmem:[#allocation0 + $0x72] sm:$0xc0] %vm2114_vm0, %v2235_v29  }
 0x162   :  { %2360 = vst.msk [vmem:[#allocation0 + $0x40] sm:$0x3] %vm2277_vm1, %v2357_v57   ;;  %2362 = vst.msk [vmem:[#allocation0 + $0x46] sm:$0xc] %vm2277_vm1, %v2357_v57  }
 0x163   :  { %2364 = vst.msk [vmem:[#allocation0 + $0x4c] sm:$0x30] %vm2277_vm1, %v2357_v57   ;;  %2366 = vst.msk [vmem:[#allocation0 + $0x52] sm:$0xc0] %vm2277_vm1, %v2357_v57  }
 0x164   :  { %2319 = vst.msk [vmem:[#allocation0 + $0x20] sm:$0x3] %vm2277_vm1, %v2316_v27   ;;  %2321 = vst.msk [vmem:[#allocation0 + $0x26] sm:$0xc] %vm2277_vm1, %v2316_v27  }
 0x165   :  { %2323 = vst.msk [vmem:[#allocation0 + $0x2c] sm:$0x30] %vm2277_vm1, %v2316_v27   ;;  %2325 = vst.msk [vmem:[#allocation0 + $0x32] sm:$0xc0] %vm2277_vm1, %v2316_v27  }
 0x166   :  { %2441 = vst.msk [vmem:[#allocation0] sm:$0x3] %vm2440_vm2, %v2439_v13   ;;  %2443 = vst.msk [vmem:[#allocation0 + $0x6] sm:$0xc] %vm2440_vm2, %v2439_v13  }
 0x167   :  { %2445 = vst.msk [vmem:[#allocation0 + $0xc] sm:$0x30] %vm2440_vm2, %v2439_v13   ;;  %2447 = vst.msk [vmem:[#allocation0 + $0x12] sm:$0xc0] %vm2440_vm2, %v2439_v13   ;;  %v2846_v23 = vpop.permute.xlu0 %2845  }
 0x168   :  { %2401 = vst.msk [vmem:[#allocation0 + $0x60] sm:$0x3] %vm2277_vm1, %v2398_v24   ;;  %2403 = vst.msk [vmem:[#allocation0 + $0x66] sm:$0xc] %vm2277_vm1, %v2398_v24  }
 0x169   :  { %2405 = vst.msk [vmem:[#allocation0 + $0x6c] sm:$0x30] %vm2277_vm1, %v2398_v24   ;;  %2407 = vst.msk [vmem:[#allocation0 + $0x72] sm:$0xc0] %vm2277_vm1, %v2398_v24  }
 0x16a   :  { %2482 = vst.msk [vmem:[#allocation0 + $0x20] sm:$0x3] %vm2440_vm2, %v2479_v46   ;;  %2484 = vst.msk [vmem:[#allocation0 + $0x26] sm:$0xc] %vm2440_vm2, %v2479_v46  }
 0x16b   :  { %2486 = vst.msk [vmem:[#allocation0 + $0x2c] sm:$0x30] %vm2440_vm2, %v2479_v46   ;;  %2488 = vst.msk [vmem:[#allocation0 + $0x32] sm:$0xc0] %vm2440_vm2, %v2479_v46   ;;  %v2928_v25 = vpop.permute.xlu0 %2927  }
 0x16c   :  { %2523 = vst.msk [vmem:[#allocation0 + $0x40] sm:$0x3] %vm2440_vm2, %v2520_v5   ;;  %2525 = vst.msk [vmem:[#allocation0 + $0x46] sm:$0xc] %vm2440_vm2, %v2520_v5  }
 0x16d   :  { %2527 = vst.msk [vmem:[#allocation0 + $0x4c] sm:$0x30] %vm2440_vm2, %v2520_v5   ;;  %2529 = vst.msk [vmem:[#allocation0 + $0x52] sm:$0xc0] %vm2440_vm2, %v2520_v5  }
 0x16e   :  { %2564 = vst.msk [vmem:[#allocation0 + $0x60] sm:$0x3] %vm2440_vm2, %v2561_v10   ;;  %2566 = vst.msk [vmem:[#allocation0 + $0x66] sm:$0xc] %vm2440_vm2, %v2561_v10  }
 0x16f   :  { %2568 = vst.msk [vmem:[#allocation0 + $0x6c] sm:$0x30] %vm2440_vm2, %v2561_v10   ;;  %2570 = vst.msk [vmem:[#allocation0 + $0x72] sm:$0xc0] %vm2440_vm2, %v2561_v10  }
 0x170   :  { %2604 = vst.msk [vmem:[#allocation0] sm:$0x3] %vm2603_vm3, %v2602_v11   ;;  %2606 = vst.msk [vmem:[#allocation0 + $0x6] sm:$0xc] %vm2603_vm3, %v2602_v11  }
 0x171   :  { %2608 = vst.msk [vmem:[#allocation0 + $0xc] sm:$0x30] %vm2603_vm3, %v2602_v11   ;;  %2610 = vst.msk [vmem:[#allocation0 + $0x12] sm:$0xc0] %vm2603_vm3, %v2602_v11  }
 0x172   :  { %2645 = vst.msk [vmem:[#allocation0 + $0x20] sm:$0x3] %vm2603_vm3, %v2642_v12   ;;  %2647 = vst.msk [vmem:[#allocation0 + $0x26] sm:$0xc] %vm2603_vm3, %v2642_v12   ;;  %v3009_v63 = vpop.permute.xlu0 %3008  }
 0x173   :  { %2649 = vst.msk [vmem:[#allocation0 + $0x2c] sm:$0x30] %vm2603_vm3, %v2642_v12   ;;  %2651 = vst.msk [vmem:[#allocation0 + $0x32] sm:$0xc0] %vm2603_vm3, %v2642_v12  }
 0x174   :  { %2686 = vst.msk [vmem:[#allocation0 + $0x40] sm:$0x3] %vm2603_vm3, %v2683_v14   ;;  %2688 = vst.msk [vmem:[#allocation0 + $0x46] sm:$0xc] %vm2603_vm3, %v2683_v14   ;;  %v2887_v26 = vpop.permute.xlu1 %2886  }
 0x175   :  { %2690 = vst.msk [vmem:[#allocation0 + $0x4c] sm:$0x30] %vm2603_vm3, %v2683_v14   ;;  %2692 = vst.msk [vmem:[#allocation0 + $0x52] sm:$0xc0] %vm2603_vm3, %v2683_v14  }
 0x176   :  { %2727 = vst.msk [vmem:[#allocation0 + $0x60] sm:$0x3] %vm2603_vm3, %v2724_v15   ;;  %2729 = vst.msk [vmem:[#allocation0 + $0x66] sm:$0xc] %vm2603_vm3, %v2724_v15  }
 0x177   :  { %2731 = vst.msk [vmem:[#allocation0 + $0x6c] sm:$0x30] %vm2603_vm3, %v2724_v15   ;;  %2733 = vst.msk [vmem:[#allocation0 + $0x72] sm:$0xc0] %vm2603_vm3, %v2724_v15  }
 0x178   :  { %2767 = vst.msk [vmem:[#allocation0] sm:$0x3] %vm2766_vm4, %v2765_v21   ;;  %2769 = vst.msk [vmem:[#allocation0 + $0x6] sm:$0xc] %vm2766_vm4, %v2765_v21   ;;  %v2968_v28 = vpop.permute.xlu1 %2967  }
 0x179   :  { %2771 = vst.msk [vmem:[#allocation0 + $0xc] sm:$0x30] %vm2766_vm4, %v2765_v21   ;;  %2773 = vst.msk [vmem:[#allocation0 + $0x12] sm:$0xc0] %vm2766_vm4, %v2765_v21   ;;  %v3091_v30 = vpop.permute.xlu0 %3090  }
 0x17a   :  { %2808 = vst.msk [vmem:[#allocation0 + $0x20] sm:$0x3] %vm2766_vm4, %v2805_v22   ;;  %2810 = vst.msk [vmem:[#allocation0 + $0x26] sm:$0xc] %vm2766_vm4, %v2805_v22  }
 0x17b   :  { %2812 = vst.msk [vmem:[#allocation0 + $0x2c] sm:$0x30] %vm2766_vm4, %v2805_v22   ;;  %2814 = vst.msk [vmem:[#allocation0 + $0x32] sm:$0xc0] %vm2766_vm4, %v2805_v22  }
 0x17c   :  { %2849 = vst.msk [vmem:[#allocation0 + $0x40] sm:$0x3] %vm2766_vm4, %v2846_v23   ;;  %2851 = vst.msk [vmem:[#allocation0 + $0x46] sm:$0xc] %vm2766_vm4, %v2846_v23   ;;  %v3050_v32 = vpop.permute.xlu1 %3049  }
 0x17d   :  { %2853 = vst.msk [vmem:[#allocation0 + $0x4c] sm:$0x30] %vm2766_vm4, %v2846_v23   ;;  %2855 = vst.msk [vmem:[#allocation0 + $0x52] sm:$0xc0] %vm2766_vm4, %v2846_v23  }
 0x17e   :  { %2930 = vst.msk [vmem:[#allocation0] sm:$0x3] %vm2929_vm5, %v2928_v25   ;;  %2932 = vst.msk [vmem:[#allocation0 + $0x6] sm:$0xc] %vm2929_vm5, %v2928_v25  }
 0x17f   :  { %2934 = vst.msk [vmem:[#allocation0 + $0xc] sm:$0x30] %vm2929_vm5, %v2928_v25   ;;  %2936 = vst.msk [vmem:[#allocation0 + $0x12] sm:$0xc0] %vm2929_vm5, %v2928_v25  }
 0x180   :  { %2890 = vst.msk [vmem:[#allocation0 + $0x60] sm:$0x3] %vm2766_vm4, %v2887_v26   ;;  %2892 = vst.msk [vmem:[#allocation0 + $0x66] sm:$0xc] %vm2766_vm4, %v2887_v26   ;;  %v3131_v34 = vpop.permute.xlu1 %3130  }
 0x181   :  { %2894 = vst.msk [vmem:[#allocation0 + $0x6c] sm:$0x30] %vm2766_vm4, %v2887_v26   ;;  %2896 = vst.msk [vmem:[#allocation0 + $0x72] sm:$0xc0] %vm2766_vm4, %v2887_v26  }
 0x182   :  { %3012 = vst.msk [vmem:[#allocation0 + $0x40] sm:$0x3] %vm2929_vm5, %v3009_v63   ;;  %3014 = vst.msk [vmem:[#allocation0 + $0x46] sm:$0xc] %vm2929_vm5, %v3009_v63  }
 0x183   :  { %3016 = vst.msk [vmem:[#allocation0 + $0x4c] sm:$0x30] %vm2929_vm5, %v3009_v63   ;;  %3018 = vst.msk [vmem:[#allocation0 + $0x52] sm:$0xc0] %vm2929_vm5, %v3009_v63  }
 0x184   :  { %2971 = vst.msk [vmem:[#allocation0 + $0x20] sm:$0x3] %vm2929_vm5, %v2968_v28   ;;  %2973 = vst.msk [vmem:[#allocation0 + $0x26] sm:$0xc] %vm2929_vm5, %v2968_v28  }
 0x185   :  { %2975 = vst.msk [vmem:[#allocation0 + $0x2c] sm:$0x30] %vm2929_vm5, %v2968_v28   ;;  %2977 = vst.msk [vmem:[#allocation0 + $0x32] sm:$0xc0] %vm2929_vm5, %v2968_v28  }
 0x186   :  { %3093 = vst.msk [vmem:[#allocation0] sm:$0x3] %vm3092_vm6, %v3091_v30   ;;  %3095 = vst.msk [vmem:[#allocation0 + $0x6] sm:$0xc] %vm3092_vm6, %v3091_v30  }
 0x187   :  { %3097 = vst.msk [vmem:[#allocation0 + $0xc] sm:$0x30] %vm3092_vm6, %v3091_v30   ;;  %3099 = vst.msk [vmem:[#allocation0 + $0x12] sm:$0xc0] %vm3092_vm6, %v3091_v30  }
 0x188   :  { %3053 = vst.msk [vmem:[#allocation0 + $0x60] sm:$0x3] %vm2929_vm5, %v3050_v32   ;;  %3055 = vst.msk [vmem:[#allocation0 + $0x66] sm:$0xc] %vm2929_vm5, %v3050_v32  }
 0x189   :  { %3057 = vst.msk [vmem:[#allocation0 + $0x6c] sm:$0x30] %vm2929_vm5, %v3050_v32   ;;  %3059 = vst.msk [vmem:[#allocation0 + $0x72] sm:$0xc0] %vm2929_vm5, %v3050_v32  }
 0x18a   :  { %3134 = vst.msk [vmem:[#allocation0 + $0x20] sm:$0x3] %vm3092_vm6, %v3131_v34   ;;  %3136 = vst.msk [vmem:[#allocation0 + $0x26] sm:$0xc] %vm3092_vm6, %v3131_v34  }
 0x18b   :  { %3138 = vst.msk [vmem:[#allocation0 + $0x2c] sm:$0x30] %vm3092_vm6, %v3131_v34   ;;  %3140 = vst.msk [vmem:[#allocation0 + $0x32] sm:$0xc0] %vm3092_vm6, %v3131_v34  }
 0x18d   :  { %v3227_v35 = vld [vmem:[#allocation0] sm:$0x3]  ;;  %v3232_v55 = vld [vmem:[#allocation0 + $0x8] sm:$0x3] }
 0x18e   :  { %v3238_v36 = vld [vmem:[#allocation0 + $0x10] sm:$0x3]  ;;  %3230 = vst [vmem:[%s5020_s1] sm:$0x3] %v3227_v35  ;;  %3602 = vst [vmem:[%s5020_s1 + $0x2] sm:$0x3] %v3232_v55 }
 0x18f   :  { %3603 = vst [vmem:[%s5020_s1 + $0x4] sm:$0x3] %v3238_v36  ;;  %v3245_v37 = vld [vmem:[#allocation0 + $0x18] sm:$0x3] }
 0x190   :  { %3604 = vst [vmem:[%s5020_s1 + $0x6] sm:$0x3] %v3245_v37 }
 0x191   :  { %v3252_v38 = vld [vmem:[#allocation0 + $0x20] sm:$0x3]  ;;  %v3259_v40 = vld [vmem:[#allocation0 + $0x28] sm:$0x3] }
 0x192   :  { %v3266_v41 = vld [vmem:[#allocation0 + $0x30] sm:$0x3]  ;;  %3605 = vst [vmem:[%s5020_s1 + $0x8] sm:$0x3] %v3252_v38  ;;  %3606 = vst [vmem:[%s5020_s1 + $0xa] sm:$0x3] %v3259_v40 }
 0x193   :  { %3607 = vst [vmem:[%s5020_s1 + $0xc] sm:$0x3] %v3266_v41  ;;  %v3273_v42 = vld [vmem:[#allocation0 + $0x38] sm:$0x3] }
 0x194   :  { %3608 = vst [vmem:[%s5020_s1 + $0xe] sm:$0x3] %v3273_v42  ;;  %v3172_v45 = vpop.permute.xlu0 %3171  }
 0x195   :  { %3175 = vst.msk [vmem:[#allocation0 + $0x40] sm:$0x3] %vm3092_vm6, %v3172_v45   ;;  %3177 = vst.msk [vmem:[#allocation0 + $0x46] sm:$0xc] %vm3092_vm6, %v3172_v45  }
 0x196   :  { %3179 = vst.msk [vmem:[#allocation0 + $0x4c] sm:$0x30] %vm3092_vm6, %v3172_v45   ;;  %3181 = vst.msk [vmem:[#allocation0 + $0x52] sm:$0xc0] %vm3092_vm6, %v3172_v45  }
 0x19c   :  { %v3280_v48 = vld [vmem:[#allocation0 + $0x40] sm:$0x3]  ;;  %v3287_v49 = vld [vmem:[#allocation0 + $0x48] sm:$0x3] }
 0x19d   :  { %v3294_v51 = vld [vmem:[#allocation0 + $0x50] sm:$0x3]  ;;  %3609 = vst [vmem:[%s5020_s1 + $0x10] sm:$0x3] %v3280_v48  ;;  %3610 = vst [vmem:[%s5020_s1 + $0x12] sm:$0x3] %v3287_v49 }
 0x19e   :  { %3611 = vst [vmem:[%s5020_s1 + $0x14] sm:$0x3] %v3294_v51  ;;  %v3301_v52 = vld [vmem:[#allocation0 + $0x58] sm:$0x3] }
 0x19f   :  { %v3213_v47 = vpop.permute.xlu1 %3212   ;;  %3612 = vst [vmem:[%s5020_s1 + $0x16] sm:$0x3] %v3301_v52 }
 0x1a0   :  { %3216 = vst.msk [vmem:[#allocation0 + $0x60] sm:$0x3] %vm3092_vm6, %v3213_v47   ;;  %3218 = vst.msk [vmem:[#allocation0 + $0x66] sm:$0xc] %vm3092_vm6, %v3213_v47  }
 0x1a1   :  { %3220 = vst.msk [vmem:[#allocation0 + $0x6c] sm:$0x30] %vm3092_vm6, %v3213_v47   ;;  %3222 = vst.msk [vmem:[#allocation0 + $0x72] sm:$0xc0] %vm3092_vm6, %v3213_v47  }
 0x1a7   :  { %v3308_v53 = vld [vmem:[#allocation0 + $0x60] sm:$0x3]  ;;  %v3315_v58 = vld [vmem:[#allocation0 + $0x68] sm:$0x3] }
 0x1a8   :  { %v3322_v59 = vld [vmem:[#allocation0 + $0x70] sm:$0x3]  ;;  %3613 = vst [vmem:[%s5020_s1 + $0x18] sm:$0x3] %v3308_v53  ;;  %3614 = vst [vmem:[%s5020_s1 + $0x1a] sm:$0x3] %v3315_v58 }
 0x1a9   :  { %3615 = vst [vmem:[%s5020_s1 + $0x1c] sm:$0x3] %v3322_v59  ;;  %v3329_v60 = vld [vmem:[#allocation0 + $0x78] sm:$0x3] }
 0x1aa   :  { %3616 = vst [vmem:[%s5020_s1 + $0x1e] sm:$0x3] %v3329_v60 }

// kernel: carla_ego_forward.3
= control target key start
LH: loop header
LB: loop body
LE: loop exit
PB: predicated region body
PF: predicated region fallthrough
CT: control target
= control target key end

     0   :  { %v115_v0 = vlaneseq  ;;  %vm356_vm0 = vcmask 1040384   ;;  %vm455_vm1 = vcmask 130112   ;;  %vm466_vm2 = vcmask 1041409   ;;  %s964_s0 = inlined_call_operand.vmem [shape: f32[2,2048], index: 0, kind: input, shape index: {}]   ;;  %s965_s1 = inlined_call_operand.vmem [shape: f32[2,9,2048], index: 1, kind: input, shape index: {}]   ;;  %s966_s2 = inlined_call_operand.vmem [shape: f32[2,9], index: 2, kind: output, shape index: {}]  }
   0x1   :  { %v475_v1 = vld.sshfl [vmem:[%s964_s0] sm:$0xff pattern:$0x75316420]  ;;  %v476_v2 = vld.sshfl [vmem:[%s964_s0 + $0x8] sm:$0xff pattern:$0x75316420] }
   0x2   :  { %v98_v3 = vcombine.high %v475_v1, %v476_v2  ;;  %v500_v4 = vshrl.u32 %v115_v0, 7  ;;  %v502_v5 = vand.u32 127, %v115_v0  ;;  %v47_v13 = vld [vmem:[%s965_s1 + $0x100] sm:$0xff]  ;;  %v48_v14 = vld [vmem:[%s965_s1 + $0x108] sm:$0xff]  ;;  %v49_v19 = vld [vmem:[%s965_s1 + $0x110] sm:$0xff]  ;;  %v561_v26 = vcombine.low %v475_v1, %v476_v2 }
   0x3   :  { %v477_v15 = vld.sshfl [vmem:[%s964_s0 + $0x10] sm:$0xff pattern:$0x75316420]  ;;  %v478_v18 = vld.sshfl [vmem:[%s964_s0 + $0x18] sm:$0xff pattern:$0x75316420] }
   0x4   :  { %v505_v6 = vsub.s32 0, %v500_v4  ;;  %v508_v7 = vsub.s32 1, %v500_v4  ;;  %v511_v8 = vsub.s32 2, %v500_v4  ;;  %v515_v9 = vsub.s32 %v502_v5, %v500_v4  ;;  %v50_v24 = vld [vmem:[%s965_s1 + $0x118] sm:$0xff]  ;;  %v51_v31 = vld [vmem:[%s965_s1 + $0x120] sm:$0xff]  ;;  %v52_v35 = vld [vmem:[%s965_s1 + $0x128] sm:$0xff] }
   0x5   :  { %v518_v10 = vsub.s32 3, %v500_v4  ;;  %v536_v16 = vsub.s32 4, %v500_v4  ;;  %v548_v20 = vsub.s32 5, %v500_v4  ;;  %v559_v25 = vsub.s32 6, %v500_v4  ;;  %v15_v44 = vld [vmem:[%s965_s1] sm:$0xff]  ;;  %v16_v45 = vld [vmem:[%s965_s1 + $0x8] sm:$0xff] }
   0x6   :  { %v521_v11 = vrot.slane %v98_v3, %v505_v6  ;;  %v524_v12 = vrot.slane %v98_v3, %v508_v7  ;;  %v539_v17 = vrot.slane %v98_v3, %v511_v8  ;;  %v114_v27 = vcombine.high %v477_v15, %v478_v18  ;;  %v53_v46 = vld [vmem:[%s965_s1 + $0x130] sm:$0xff]  ;;  %v54_v47 = vld [vmem:[%s965_s1 + $0x138] sm:$0xff]  ;;  %v55_v52 = vld [vmem:[%s965_s1 + $0x140] sm:$0xff] }
   0x7   :  { %v551_v21 = vrot.slane %v98_v3, %v518_v10  ;;  %v564_v28 = vsub.s32 7, %v500_v4  ;;  %v567_v29 = vrot.slane %v98_v3, %v536_v16  ;;  %v574_v32 = vrot.slane %v98_v3, %v548_v20  ;;  %v56_v53 = vld [vmem:[%s965_s1 + $0x148] sm:$0xff]  ;;  %v17_v58 = vld [vmem:[%s965_s1 + $0x10] sm:$0xff]  ;;  %v58_v60 = vld [vmem:[%s965_s1 + $0x158] sm:$0xff] }
   0x8   :  { %v307_v22 = vmul.f32 %v521_v11, %v47_v13  ;;  %v308_v23 = vmul.f32 %v524_v12, %v48_v14  ;;  %v309_v30 = vmul.f32 %v539_v17, %v49_v19  ;;  %v581_v36 = vrot.slane %v98_v3, %v559_v25  ;;  %v57_v59 = vld [vmem:[%s965_s1 + $0x150] sm:$0xff]  ;;  %v59_v61 = vld [vmem:[%s965_s1 + $0x160] sm:$0xff]  ;;  %v60_v2 = vld [vmem:[%s965_s1 + $0x168] sm:$0xff] }
   0x9   :  { %v310_v33 = vmul.f32 %v551_v21, %v50_v24  ;;  %v583_v37 = vcombine.low %v477_v15, %v478_v18  ;;  %v587_v38 = vrot.slane %v561_v26, %v505_v6  ;;  %v591_v39 = vrot.slane %v561_v26, %v508_v7  ;;  %v18_v18 = vld [vmem:[%s965_s1 + $0x18] sm:$0xff]  ;;  %v61_v19 = vld [vmem:[%s965_s1 + $0x170] sm:$0xff] }
   0xa   :  { %v390_v34 = vadd.f32 %v308_v23, %v307_v22  ;;  %v594_v40 = vrot.slane %v98_v3, %v564_v28  ;;  %v597_v41 = vrot.slane %v114_v27, %v505_v6  ;;  %v311_v42 = vmul.f32 %v567_v29, %v51_v31  ;;  %v62_v22 = vld [vmem:[%s965_s1 + $0x178] sm:$0xff] }
   0xb   :  { %v613_v48 = vrot.slane %v114_v27, %v508_v7  ;;  %v616_v49 = vrot.slane %v114_v27, %v511_v8  ;;  %v619_v50 = vrot.slane %v114_v27, %v518_v10  ;;  %v623_v51 = vrot.slane %v561_v26, %v511_v8 }
   0xc   :  { %v391_v43 = vadd.f32 %v390_v34, %v309_v30  ;;  %v632_v54 = vrot.slane %v114_v27, %v536_v16  ;;  %v635_v55 = vrot.slane %v114_v27, %v548_v20  ;;  %v312_v56 = vmul.f32 %v574_v32, %v52_v35 }
   0xd   :  { %v651_v62 = vrot.slane %v114_v27, %v559_v25  ;;  %v655_v63 = vrot.slane %v561_v26, %v518_v10  ;;  %v275_v0 = vmul.f32 %v587_v38, %v15_v44  ;;  %v276_v1 = vmul.f32 %v591_v39, %v16_v45  ;;  %v64_v44 = vld [vmem:[%s965_s1 + $0x188] sm:$0x1] }
   0xe   :  { %v392_v57 = vadd.f32 %v391_v43, %v310_v33  ;;  %v663_v3 = vrot.slane %v114_v27, %v564_v28  ;;  %v313_v13 = vmul.f32 %v581_v36, %v53_v46  ;;  %v314_v14 = vmul.f32 %v594_v40, %v54_v47  ;;  %v63_v43 = vld [vmem:[%s965_s1 + $0x180] sm:$0x1] }
   0xf   :  { %v315_v23 = vmul.f32 %v597_v41, %v55_v52  ;;  %v316_v24 = vmul.f32 %v613_v48, %v56_v53  ;;  %v680_v27 = vrot.slane %v561_v26, %v536_v16  ;;  %v277_v30 = vmul.f32 %v623_v51, %v17_v58  ;;  %v65_v53 = vld [vmem:[%s965_s1 + $0x190] sm:$0x1] }
  0x10   :  { %v393_v15 = vadd.f32 %v392_v57, %v311_v42  ;;  %v317_v31 = vmul.f32 %v616_v49, %v57_v59  ;;  %v685_v33 = vmul.f32 %v619_v50, %v58_v60  ;;  %v688_v34 = vmul.f32 %v632_v54, %v59_v61  ;;  %v19_v42 = vld [vmem:[%s965_s1 + $0x20] sm:$0xff]  ;;  %v20_v59 = vld [vmem:[%s965_s1 + $0x28] sm:$0xff]  ;;  %v66_v61 = vld [vmem:[%s965_s1 + $0x198] sm:$0x1] }
  0x11   :  { %v700_v45 = vmul.f32 %v635_v55, %v60_v2  ;;  %v704_v46 = vrot.slane %v561_v26, %v548_v20  ;;  %v278_v47 = vmul.f32 %v655_v63, %v18_v18  ;;  %v339_v52 = vadd.f32 %v276_v1, %v275_v0  ;;  %v21_v0 = vld [vmem:[%s965_s1 + $0x30] sm:$0xff] }
  0x12   :  { %v394_v35 = vadd.f32 %v393_v15, %v312_v56  ;;  %v711_v56 = vmul.f32 %v651_v62, %v61_v19  ;;  %v714_v57 = vmul.f32 %v663_v3, %v62_v22  ;;  %v721_v60 = vrot.slane %v561_v26, %v559_v25 }
  0x13   :  { %v279_v1 = vmul.f32 %v680_v27, %v19_v42  ;;  %v340_v2 = vadd.f32 %v339_v52, %v277_v30  ;;  %v324_v15 = vmul.f32 %v524_v12, %v64_v44  ;;  %v734_v19 = vrot.slane %v561_v26, %v564_v28  ;;  %v68_v44 = vld [vmem:[%s965_s1 + $0x1a8] sm:$0x1] }
  0x14   :  { %v395_v58 = vadd.f32 %v394_v35, %v313_v13  ;;  %v323_v13 = vmul.f32 %v521_v11, %v63_v43  ;;  %v738_v22 = vrot.slane %v583_v37, %v505_v6  ;;  %v67_v35 = vld [vmem:[%s965_s1 + $0x1a0] sm:$0x1]  ;;  %v325_v42 = vmul.f32 %v539_v17, %v65_v53  ;;  %v22_v6 = vld [vmem:[%s965_s1 + $0x38] sm:$0xff] }
  0x15   :  { %v746_v11 = vrot.slane %v583_v37, %v508_v7  ;;  %v280_v12 = vmul.f32 %v704_v46, %v20_v59  ;;  %v326_v26 = vmul.f32 %v551_v21, %v66_v61  ;;  %v755_v43 = vrot.slane %v583_v37, %v511_v8  ;;  %v23_v8 = vld [vmem:[%s965_s1 + $0x40] sm:$0xff]  ;;  %v24_v61 = vld [vmem:[%s965_s1 + $0x48] sm:$0xff] }
  0x16   :  { %v396_v18 = vadd.f32 %v395_v58, %v314_v14  ;;  %v341_v14 = vadd.f32 %v340_v2, %v278_v47  ;;  %v759_v17 = vrot.slane %v583_v37, %v518_v10  ;;  %v281_v7 = vmul.f32 %v721_v60, %v21_v0  ;;  %v69_v58 = vld [vmem:[%s965_s1 + $0x1b0] sm:$0x1] }
  0x17   :  { %v407_v47 = vsel %vm356_vm0, %v323_v13, 0.0  ;;  %v408_v52 = vsel %vm356_vm0, %v324_v15, 0.0  ;;  %v773_v10 = vrot.slane %v583_v37, %v536_v16  ;;  %v412_v2 = vsel %vm356_vm0, %v326_v26, 0.0  ;;  %v25_v13 = vld [vmem:[%s965_s1 + $0x50] sm:$0xff] }
  0x18   :  { %v397_v30 = vadd.f32 %v396_v18, %v315_v23  ;;  %v342_v21 = vadd.f32 %v341_v14, %v279_v1  ;;  %v327_v23 = vmul.f32 %v567_v29, %v67_v35  ;;  %v409_v59 = vadd.f32 %v408_v52, %v407_v47  ;;  %v70_v35 = vld [vmem:[%s965_s1 + $0x1b8] sm:$0x1]  ;;  %v31_v52 = vld [vmem:[%s965_s1 + $0x80] sm:$0x1] }
  0x19   :  { %v410_v29 = vsel %vm356_vm0, %v325_v42, 0.0  ;;  %v328_v1 = vmul.f32 %v574_v32, %v68_v44  ;;  %v790_v15 = vrot.slane %v583_v37, %v548_v20  ;;  %v794_v18 = vrot.slane %v583_v37, %v559_v25  ;;  %v27_v42 = vld [vmem:[%s965_s1 + $0x60] sm:$0xff] }
  0x1a   :  { %v398_v53 = vadd.f32 %v397_v30, %v316_v24  ;;  %v282_v24 = vmul.f32 %v734_v19, %v22_v6  ;;  %v343_v0 = vadd.f32 %v342_v21, %v280_v12  ;;  %v411_v32 = vadd.f32 %v410_v29, %v409_v59  ;;  %v28_v30 = vld [vmem:[%s965_s1 + $0x68] sm:$0xff]  ;;  %v33_v59 = vld [vmem:[%s965_s1 + $0x90] sm:$0x1] }
  0x1b   :  { %v283_v20 = vmul.f32 %v738_v22, %v23_v8  ;;  %v329_v14 = vmul.f32 %v581_v36, %v69_v58  ;;  %v414_v25 = vsel %vm356_vm0, %v327_v23, 0.0  ;;  %v814_v6 = vrot.slane %v583_v37, %v564_v28  ;;  %v32_v28 = vld [vmem:[%s965_s1 + $0x88] sm:$0x1] }
  0x1c   :  { %v399_v16 = vadd.f32 %v398_v53, %v317_v31  ;;  %v26_v31 = vld [vmem:[%s965_s1 + $0x58] sm:$0xff]  ;;  %v344_v12 = vadd.f32 %v343_v0, %v281_v7  ;;  %v284_v44 = vmul.f32 %v746_v11, %v24_v61  ;;  %v71_v7 = vld [vmem:[%s965_s1 + $0x1c0] sm:$0x1]  ;;  %v413_v21 = vadd.f32 %v412_v2, %v411_v32 }
  0x1d   :  { %v285_v36 = vmul.f32 %v755_v43, %v25_v13  ;;  %v416_v47 = vsel %vm356_vm0, %v328_v1, 0.0  ;;  %v286_v53 = vmul.f32 %v759_v17, %v26_v31  ;;  %v287_v8 = vmul.f32 %v773_v10, %v27_v42  ;;  %v34_v1 = vld [vmem:[%s965_s1 + $0x98] sm:$0x1] }
  0x1e   :  { %v400_v26 = vadd.f32 %v399_v16, %v685_v33  ;;  %v345_v23 = vadd.f32 %v344_v12, %v282_v24  ;;  %v330_v33 = vmul.f32 %v594_v40, %v70_v35  ;;  %v72_v40 = vld [vmem:[%s965_s1 + $0x1c8] sm:$0x1]  ;;  %v415_v58 = vadd.f32 %v414_v25, %v413_v21  ;;  %v74_v16 = vld [vmem:[%s965_s1 + $0x1d8] sm:$0x1]  ;;  %v35_v35 = vld [vmem:[%s965_s1 + $0xa0] sm:$0x1] }
  0x1f   :  { %v288_v29 = vmul.f32 %v790_v15, %v28_v30  ;;  %v331_v24 = vmul.f32 %v597_v41, %v71_v7  ;;  %v418_v0 = vsel %vm356_vm0, %v329_v14, 0.0  ;;  %v291_v32 = vmul.f32 %v587_v38, %v31_v52  ;;  %v29_v38 = vld [vmem:[%s965_s1 + $0x70] sm:$0xff]  ;;  %v76_v52 = vld [vmem:[%s965_s1 + $0x1e8] sm:$0x1] }
  0x20   :  { %v401_v37 = vadd.f32 %v400_v26, %v688_v34  ;;  %v346_v61 = vadd.f32 %v345_v23, %v283_v20  ;;  %v73_v34 = vld [vmem:[%s965_s1 + $0x1d0] sm:$0x1]  ;;  %v417_v13 = vadd.f32 %v416_v47, %v415_v58  ;;  %v292_v41 = vmul.f32 %v591_v39, %v32_v28 }
  0x21   :  { %v332_v42 = vmul.f32 %v613_v48, %v72_v40  ;;  %v420_v20 = vsel %vm356_vm0, %v330_v33, 0.0  ;;  %v333_v14 = vmul.f32 %v616_v49, %v73_v34  ;;  %v294_v26 = vmul.f32 %v655_v63, %v34_v1  ;;  %v75_v63 = vld [vmem:[%s965_s1 + $0x1e0] sm:$0x1] }
  0x22   :  { %v402_v2 = vadd.f32 %v401_v37, %v700_v45  ;;  %v347_v31 = vadd.f32 %v346_v61, %v284_v44  ;;  %v293_v45 = vmul.f32 %v623_v51, %v33_v59  ;;  %v419_v25 = vadd.f32 %v418_v0, %v417_v13  ;;  %v36_v51 = vld [vmem:[%s965_s1 + $0xa8] sm:$0x1]  ;;  %v38_v61 = vld [vmem:[%s965_s1 + $0xb8] sm:$0x1]  ;;  %v77_v0 = vld [vmem:[%s965_s1 + $0x1f0] sm:$0x1] }
  0x23   :  { %v334_v39 = vmul.f32 %v619_v50, %v74_v16  ;;  %v422_v48 = vsel %vm356_vm0, %v331_v24, 0.0  ;;  %v357_v7 = vsel %vm356_vm0, %v291_v32, 0.0  ;;  %v358_v21 = vsel %vm356_vm0, %v292_v41, 0.0  ;;  %v30_v50 = vld [vmem:[%s965_s1 + $0x78] sm:$0xff]  ;;  %v39_v13 = vld [vmem:[%s965_s1 + $0xc0] sm:$0x1] }
  0x24   :  { %v403_v12 = vadd.f32 %v402_v2, %v711_v56  ;;  %v348_v30 = vadd.f32 %v347_v31, %v285_v36  ;;  %v295_v56 = vmul.f32 %v680_v27, %v35_v35  ;;  %v421_v44 = vadd.f32 %v420_v20, %v419_v25  ;;  %v37_v27 = vld [vmem:[%s965_s1 + $0xb0] sm:$0x1]  ;;  %v78_v32 = vld [vmem:[%s965_s1 + $0x1f8] sm:$0x1]  ;;  %v40_v20 = vld [vmem:[%s965_s1 + $0xc8] sm:$0x1] }
  0x25   :  { %v424_v23 = vsel %vm356_vm0, %v332_v42, 0.0  ;;  %v360_v33 = vsel %vm356_vm0, %v293_v45, 0.0  ;;  %v289_v47 = vmul.f32 %v794_v18, %v29_v38  ;;  %v296_v37 = vmul.f32 %v704_v46, %v36_v51 }
  0x26   :  { %v404_v49 = vadd.f32 %v403_v12, %v714_v57  ;;  %v349_v36 = vadd.f32 %v348_v30, %v286_v53  ;;  %v359_v57 = vadd.f32 %v358_v21, %v357_v7  ;;  %v423_v28 = vadd.f32 %v422_v48, %v421_v44 }
  0x27   :  { %v362_v53 = vsel %vm356_vm0, %v294_v26, 0.0  ;;  %v335_v58 = vmul.f32 %v632_v54, %v75_v63  ;;  %v426_v59 = vsel %vm356_vm0, %v333_v14, 0.0  ;;  %v290_v24 = vmul.f32 %v814_v6, %v30_v50 }
  0x28   :  { %405 = vadd.xlane.f32.xlu1 %v404_v49  ;;  %v350_v40 = vadd.f32 %v349_v36, %v287_v8  ;;  %v361_v34 = vadd.f32 %v360_v33, %v359_v57  ;;  %v425_v1 = vadd.f32 %v424_v23, %v423_v28  ;;  %v297_v46 = vmul.f32 %v721_v60, %v37_v27  ;;  %v44_v27 = vld [vmem:[%s965_s1 + $0xe8] sm:$0x1] }
  0x29   :  { %v364_v8 = vsel %vm356_vm0, %v295_v56, 0.0  ;;  %v336_v54 = vmul.f32 %v635_v55, %v76_v52  ;;  %v428_v16 = vsel %vm356_vm0, %v334_v39, 0.0  ;;  %v298_v31 = vmul.f32 %v734_v19, %v38_v61  ;;  %v42_v56 = vld [vmem:[%s965_s1 + $0xd8] sm:$0x1]  ;;  %v45_v52 = vld [vmem:[%s965_s1 + $0xf0] sm:$0x1] }
  0x2a   :  { %v351_v2 = vadd.f32 %v350_v40, %v288_v29  ;;  %v363_v35 = vadd.f32 %v362_v53, %v361_v34  ;;  %v427_v41 = vadd.f32 %v426_v59, %v425_v1  ;;  %v366_v60 = vsel %vm356_vm0, %v296_v37, 0.0  ;;  %v46_v53 = vld [vmem:[%s965_s1 + $0xf8] sm:$0x1] }
  0x2b   :  { %v337_v29 = vmul.f32 %v651_v62, %v77_v0  ;;  %v430_v55 = vsel %vm356_vm0, %v335_v58, 0.0  ;;  %v299_v14 = vmul.f32 %v738_v22, %v39_v13  ;;  %v368_v25 = vsel %vm356_vm0, %v297_v46, 0.0  ;;  %v41_v62 = vld [vmem:[%s965_s1 + $0xd0] sm:$0x1] }
  0x2c   :  { %v352_v42 = vadd.f32 %v351_v2, %v289_v47  ;;  %v365_v45 = vadd.f32 %v364_v8, %v363_v35  ;;  %v429_v12 = vadd.f32 %v428_v16, %v427_v41  ;;  %v338_v19 = vmul.f32 %v663_v3, %v78_v32 }
  0x2d   :  { %v432_v38 = vsel %vm356_vm0, %v336_v54, 0.0  ;;  %v300_v48 = vmul.f32 %v746_v11, %v40_v20  ;;  %v370_v51 = vsel %vm356_vm0, %v298_v31, 0.0  ;;  %v434_v22 = vsel %vm356_vm0, %v337_v29, 0.0  ;;  %v43_v11 = vld [vmem:[%s965_s1 + $0xe0] sm:$0x1] }
  0x2e   :  { %v353_v26 = vadd.f32 %v352_v42, %v290_v24  ;;  %v367_v30 = vadd.f32 %v366_v60, %v365_v45  ;;  %v431_v39 = vadd.f32 %v430_v55, %v429_v12  ;;  %v301_v63 = vmul.f32 %v755_v43, %v41_v62 }
  0x2f   :  { %v372_v44 = vsel %vm356_vm0, %v299_v14, 0.0  ;;  %v436_v7 = vsel %vm356_vm0, %v338_v19, 0.0  ;;  %v302_v36 = vmul.f32 %v759_v17, %v42_v56  ;;  %v374_v23 = vsel %vm356_vm0, %v300_v48, 0.0 }
  0x30   :  { %354 = vadd.xlane.f32.xlu0 %v353_v26  ;;  %v369_v3 = vadd.f32 %v368_v25, %v367_v30  ;;  %v433_v49 = vadd.f32 %v432_v38, %v431_v39  ;;  %v303_v33 = vmul.f32 %v773_v10, %v43_v11  ;;  %v376_v47 = vsel %vm356_vm0, %v301_v63, 0.0 }
  0x31   :  { %v304_v17 = vmul.f32 %v790_v15, %v44_v27  ;;  %v378_v37 = vsel %vm356_vm0, %v302_v36, 0.0  ;;  %v305_v58 = vmul.f32 %v794_v18, %v45_v52  ;;  %v450_v61 = vadd.s32 4294967288, %v502_v5 }
  0x32   :  { %v371_v21 = vadd.f32 %v370_v51, %v369_v3  ;;  %v435_v50 = vadd.f32 %v434_v22, %v433_v49  ;;  %v380_v10 = vsel %vm356_vm0, %v303_v33, 0.0  ;;  %v306_v34 = vmul.f32 %v814_v6, %v46_v53 }
  0x33   :  { %v382_v24 = vsel %vm356_vm0, %v304_v17, 0.0  ;;  %v453_v15 = vsub.s32 %v450_v61, %v500_v4  ;;  %v384_v1 = vsel %vm356_vm0, %v305_v58, 0.0  ;;  %vm469_vm3 = vcmask 66560  }
  0x34   :  { %v373_v57 = vadd.f32 %v372_v44, %v371_v21  ;;  %v437_v43 = vadd.f32 %v436_v7, %v435_v50  ;;  %v386_v8 = vsel %vm356_vm0, %v306_v34, 0.0 }
  0x36   :  { %v375_v28 = vadd.f32 %v374_v23, %v373_v57  ;;  %438 = vadd.xlane.f32.xlu1 %v437_v43 }
  0x38   :  { %v377_v40 = vadd.f32 %v376_v47, %v375_v28 }
  0x3a   :  { %v379_v59 = vadd.f32 %v378_v37, %v377_v40 }
  0x3c   :  { %v381_v0 = vadd.f32 %v380_v10, %v379_v59 }
  0x3e   :  { %v383_v46 = vadd.f32 %v382_v24, %v381_v0 }
  0x40   :  { %v385_v2 = vadd.f32 %v384_v1, %v383_v46 }
  0x42   :  { %v387_v54 = vadd.f32 %v386_v8, %v385_v2 }
  0x44   :  { %388 = vadd.xlane.f32.xlu0 %v387_v54 }
  0xb1   :  { %v406_v18 = vpop.xlane.xlu1 %405 }
  0xb2   :  { %v460_v5 = vrot.slane %v406_v18, %v515_v9 }
  0xb9   :  { %v355_v35 = vpop.xlane.xlu0 %354 }
  0xba   :  { %v449_v41 = vrot.slane %v355_v35, %v515_v9 }
  0xbf   :  { %v439_v16 = vpop.xlane.xlu1 %438 }
  0xc0   :  { %v464_v13 = vrot.slane %v439_v16, %v453_v15 }
  0xc2   :  { %v465_v6 = vsel %vm455_vm1, %v464_v13, %v460_v5 }
  0xcd   :  { %v389_v32 = vpop.xlane.xlu0 %388 }
  0xce   :  { %v454_v4 = vrot.slane %v389_v32, %v453_v15 }
  0xd0   :  { %v456_v31 = vsel %vm455_vm1, %v454_v4, %v449_v41 }
  0xd1   :  { %v467_v60 = vsel %vm466_vm2, %v465_v6, %v456_v31 }
  0xd2   :  { %470 = vst.msk [vmem:[%s966_s2] sm:$0x3] %vm469_vm3, %v467_v60 }

</bundles_post_ra>
